<compile_context>
chip_gen: v7x
topology: tpu7x:2x2x1
jax: 0.10.0
libtpu: 0.0.40
codegen_flags: <defaults>
</compile_context>

<pallas_src>
import functools
import numpy as np
import jax
import jax.numpy as jnp
from jax.experimental import pallas as pl
from jax.experimental.pallas import tpu as pltpu


def _silu(x):
    return x * jax.nn.sigmoid(x)


# --------------------------------------------------------------------------- fused kernel
def painn_fused_kernel(
    # constants across the layer grid
    mask_ref, rbf_ref, s0_ref, v0_ref,
    # per-layer weight slabs (leading L dim squeezed by BlockSpec)
    wA_ref, wB_ref, bias_ref,
    # output MLP weights (constant)
    ow1_ref, ob1_ref, ow2_ref, ob2_ref, ow3_ref, ob3_ref,
    # output
    out_ref,
    # VMEM residents across all layers
    s_ref, v_ref,
):
    l = pl.program_id(0)
    num_layers = pl.num_programs(0)
    N, F = s_ref.shape
    R = rbf_ref.shape[-1]
    NN = N * N
    F2 = 2 * F
    bf16 = jnp.bfloat16
    dot = functools.partial(jnp.dot, preferred_element_type=jnp.float32)

    @pl.when(l == 0)
    def _():
        s_ref[...] = s0_ref[...]
        v_ref[...] = v0_ref[...]

    s = s_ref[...]                       # [N, F]    f32
    v = v_ref[...]                       # [3, N, F] f32
    m = mask_ref[...]                    # [N, N]    f32 (i = source row, j = target col)
    rbf2 = rbf_ref[...]                  # [N*N, R]  bf16

    # ---- unpack per-layer weight slabs with static sublane slices (1 DMA per slab)
    wA = wA_ref[...]                     # [3F+R, 2F] bf16
    w1s = wA[:F, :]                      # [F, 2F]  fused ms1|mv1 node weights
    w1r = wA[F:F + R, :]                 # [R, 2F]  fused ms1|mv1 rbf  weights
    msmv2 = wA[F + R:, :]                # [2F, 2F] blockdiag(ms2, mv2)
    wB = wB_ref[...]                     # [6F, F]  bf16
    usw1 = wB[:F2, :]
    usw2 = wB[F2:3 * F, :]
    uvw1 = wB[3 * F:5 * F, :]
    uvw2 = wB[5 * F:, :]
    bias = bias_ref[...]                 # [8, 2F]  f32
    b1 = bias[0:1, :]                    # [1, 2F]
    mvb2 = bias[1:2, :F]
    msb2 = bias[2:3, :F]
    usb1 = bias[3:4, :F]
    usb2 = bias[4:5, :F]
    uvb1 = bias[5:6, :F]
    uvb2 = bias[6:7, :F]

    # ---- fused first layers of scalar-message + vector-gate MLPs (bf16 MXU, f32 acc)
    node_term = dot(s.astype(bf16), w1s) + b1                # [N, 2F] (b1 folded here)
    edge_term = dot(rbf2, w1r)                                # [NN, 2F]
    hg = _silu(node_term[:, None, :] + edge_term.reshape(N, N, F2))    # [N, N, 2F]

    # ---- fused second layers: single block-diagonal matmul -> ds (no bias) | gate
    ds_gate = dot(hg.reshape(NN, F2).astype(bf16), msmv2).reshape(N, N, F2)
    ds_nb = ds_gate[:, :, :F]
    gate = ds_gate[:, :, F:] + mvb2

    # ---- pairwise vector-difference inverse norm (streamed, f32)
    nrm2 = jnp.zeros((N, N, F), jnp.float32)
    for d in range(3):
        vd = v[d]
        vdiff = vd[:, None, :] - vd[None, :, :]
        nrm2 = nrm2 + vdiff * vdiff

    mexp = m[:, :, None]
    # edge mask and zero-difference guard folded into a single select; non-edges and
    # degenerate (v_i == v_j) edges contribute exactly 0 (matches the reference's 0/eps).
    inv_nrm = jnp.where((mexp > 0.0) & (nrm2 > 0.0), jax.lax.rsqrt(nrm2), 0.0)
    w = gate * inv_nrm                                        # [N, N, F] f32
    wsum = jnp.sum(w, axis=0)                                 # [N, F]
    # msb2 deferred out of the [N,N,F] pass: + msb2 * (#incoming edges per target)
    ds_agg = jnp.sum(ds_nb * mexp, axis=0) + msb2 * jnp.sum(mexp, axis=0)

    # ---- scalar update: s + MLP(concat[s, ds_agg])      (K = 2F fused matmul)
    hu = _silu(dot(jnp.concatenate([s, ds_agg], axis=-1).astype(bf16), usw1) + usb1)
    s_new = s + dot(hu.astype(bf16), usw2) + usb2

    # ---- vector update via w-decomposition; 3 spatial components batched as [3N, F]
    #      dv_agg[d,j,:] = sum_i w[i,j,:]*v[d,i,:] - v[d,j,:]*sum_i w[i,j,:]
    dv_parts = [jnp.sum(w * v[d][:, None, :], axis=0) - v[d] * wsum for d in range(3)]
    dv3 = jnp.concatenate(dv_parts, axis=0)                   # [3N, F]
    v3 = v.reshape(3 * N, F)
    hv = _silu(dot(jnp.concatenate([v3, dv3], axis=-1).astype(bf16), uvw1) + uvb1)
    v_new = v3 + dot(hv.astype(bf16), uvw2) + uvb2

    s_ref[...] = s_new
    v_ref[...] = v_new.reshape(3, N, F)

    # ---- output MLP folded into the last layer (s never leaves VMEM); lane-dense store
    @pl.when(l == num_layers - 1)
    def _():
        h1 = _silu(dot(s_new.astype(bf16), ow1_ref[...]) + ob1_ref[...])
        h2 = _silu(dot(h1.astype(bf16), ow2_ref[...]) + ob2_ref[...])
        out_ref[...] = dot(h2.astype(bf16), ow3_ref[...]) + ob3_ref[...]


# --------------------------------------------------------------------------- wrapper
def _const_spec(x):
    nd = x.ndim
    return pl.BlockSpec(x.shape, lambda l, nd=nd: (0,) * nd)


def _layer_spec(x):
    # leading L dim squeezed; index map picks layer l
    return pl.BlockSpec((None,) + x.shape[1:], lambda l: (l, 0, 0))


def run_painn_fused(s0, v0, mask, rbf2, wA, wB, bias, out_w, o_pad):
    L = wA.shape[0]
    N, F = s0.shape

    const_in = (mask, rbf2, s0, v0)
    layer_in = (wA, wB, bias)
    ow_in = tuple(out_w)

    in_specs = ([_const_spec(x) for x in const_in]
                + [_layer_spec(x) for x in layer_in]
                + [_const_spec(x) for x in ow_in])

    return pl.pallas_call(
        painn_fused_kernel,
        out_shape=jax.ShapeDtypeStruct((N, o_pad), jnp.float32),
        grid_spec=pltpu.PrefetchScalarGridSpec(
            num_scalar_prefetch=0,
            grid=(L,),                                  # sequential layer axis
            in_specs=in_specs,
            out_specs=pl.BlockSpec((N, o_pad), lambda l: (0, 0)),
            scratch_shapes=[pltpu.VMEM((N, F), jnp.float32),
                            pltpu.VMEM((3, N, F), jnp.float32)],
        ),
        compiler_params=pltpu.CompilerParams(
            dimension_semantics=("arbitrary",),
            vmem_limit_bytes=32 * 1024 * 1024,
        ),
    )(*const_in, *layer_in, *ow_in)


# --------------------------------------------------------------------------- params
def _linear(key, fan_in, fan_out):
    kw, kb = jax.random.split(key)
    lim = 1.0 / np.sqrt(fan_in)
    W = jax.random.uniform(kw, (fan_in, fan_out), minval=-lim, maxval=lim, dtype=jnp.float32)
    b = jax.random.uniform(kb, (1, fan_out), minval=-lim, maxval=lim, dtype=jnp.float32)
    return W, b


def init_params(key, num_layers, F, R, num_unique_atoms, num_outputs):
    params = {}
    key, k = jax.random.split(key)
    params['embedding'] = jax.random.normal(k, (num_unique_atoms, F), dtype=jnp.float32)
    key, k = jax.random.split(key)
    params['init_W'], params['init_b'] = _linear(k, F, 3 * F)

    blocks = []
    for _ in range(num_layers):
        blk = {}
        for name, fin in [('ms1', F + R), ('ms2', F), ('mv1', F + R), ('mv2', F),
                          ('us1', 2 * F), ('us2', F), ('uv1', 2 * F), ('uv2', F)]:
            key, k = jax.random.split(key)
            blk[name] = _linear(k, fin, F)
        blocks.append(blk)
    params['blocks'] = blocks

    outs = []
    for fin, fout in [(F, F), (F, F), (F, num_outputs)]:
        key, k = jax.random.split(key)
        outs.append(_linear(k, fin, fout))
    params['out'] = outs
    return params


def stack_block_weights(blocks, F):
    """Pack per-layer weights into three stacked slabs (one DMA each per grid step)."""
    bf16 = jnp.bfloat16
    zFF = jnp.zeros((F, F), jnp.float32)
    z1F = jnp.zeros((1, F), jnp.float32)
    wA_l, wB_l, b_l = [], [], []

    def pad(b):
        return jnp.concatenate([b, z1F], axis=1)                      # [1, F] -> [1, 2F]

    for blk in blocks:
        ms1W, ms1b = blk['ms1']; mv1W, mv1b = blk['mv1']
        ms2W, ms2b = blk['ms2']; mv2W, mv2b = blk['mv2']
        us1W, us1b = blk['us1']; us2W, us2b = blk['us2']
        uv1W, uv1b = blk['uv1']; uv2W, uv2b = blk['uv2']

        w1s = jnp.concatenate([ms1W[:F], mv1W[:F]], axis=1)           # [F, 2F]
        w1r = jnp.concatenate([ms1W[F:], mv1W[F:]], axis=1)           # [R, 2F]
        msmv2 = jnp.concatenate(                                      # blockdiag [2F, 2F]
            [jnp.concatenate([ms2W, zFF], axis=1),
             jnp.concatenate([zFF, mv2W], axis=1)], axis=0)
        wA = jnp.concatenate([w1s, w1r, msmv2], axis=0)               # [3F+R, 2F]
        wB = jnp.concatenate([us1W, us2W, uv1W, uv2W], axis=0)        # [6F, F]

        b1 = jnp.concatenate([ms1b, mv1b], axis=1)                    # [1, 2F]
        bias = jnp.concatenate(
            [b1, pad(mv2b), pad(ms2b), pad(us1b), pad(us2b),
             pad(uv1b), pad(uv2b), jnp.zeros((1, 2 * F), jnp.float32)], axis=0)  # [8, 2F]

        wA_l.append(wA.astype(bf16))
        wB_l.append(wB.astype(bf16))
        b_l.append(bias)
    return jnp.stack(wA_l), jnp.stack(wB_l), jnp.stack(b_l)


# --------------------------------------------------------------------------- forward
def painn_forward(params, atoms, pos, graph_idx, cutoff, num_rbf):
    N = atoms.shape[0]
    F = params['embedding'].shape[1]

    # glue: embedding, initial vector features, dense pair mask / RBF (static shapes)
    s = params['embedding'][atoms]                                            # [N, F]
    v0 = jnp.dot(s, params['init_W'], precision=jax.lax.Precision.HIGHEST) + params['init_b']
    v = jnp.transpose(v0.reshape(N, 3, F), (1, 0, 2))                         # [3, N, F]

    diff = pos[:, None, :] - pos[None, :, :]
    dmat = jnp.sqrt(jnp.sum(diff * diff, axis=-1))                            # [N, N]
    same_graph = graph_idx[:, None] == graph_idx[None, :]
    not_self = ~jnp.eye(N, dtype=bool)
    mask = (not_self & (dmat < cutoff) & same_graph).astype(jnp.float32)      # [N, N]

    means = jnp.linspace(0.0, cutoff, num_rbf).astype(jnp.float32)
    sigma = means[1] - means[0]
    rbf = jnp.exp(-(dmat[..., None] - means) ** 2 / (2.0 * sigma ** 2))
    rbf = rbf * (dmat[..., None] < cutoff).astype(jnp.float32)
    rbf2 = rbf.reshape(N * N, num_rbf).astype(jnp.bfloat16)   # pre-reshaped / pre-cast

    wA, wB, bias = stack_block_weights(params['blocks'], F)

    # pad the output MLP's last layer to a lane-dense 128-wide slab; slice back outside
    (ow1, ob1), (ow2, ob2), (ow3, ob3) = params['out']
    O = ow3.shape[1]
    o_pad = ((O + 127) // 128) * 128
    ow3p = jnp.zeros((F, o_pad), jnp.float32).at[:, :O].set(ow3)
    ob3p = jnp.zeros((1, o_pad), jnp.float32).at[:, :O].set(ob3)
    out_w = (ow1.astype(jnp.bfloat16), ob1, ow2.astype(jnp.bfloat16), ob2,
             ow3p.astype(jnp.bfloat16), ob3p)

    out = run_painn_fused(s, v, mask, rbf2, wA, wB, bias, out_w, o_pad)
    return out[:, :O]


# --------------------------------------------------------------------------- numpy reference (edge-based, mirrors PyTorch)
def _np_silu(x):
    return x / (1.0 + np.exp(-x))


def _np_linear(x, Wb):
    W, b = Wb
    return x @ np.asarray(W) + np.asarray(b)


def reference_forward_np(params, atoms, pos, graph_idx, cutoff, num_rbf):
    atoms = np.asarray(atoms); pos = np.asarray(pos); gi = np.asarray(graph_idx)
    N = atoms.shape[0]
    F = params['embedding'].shape[1]

    s = np.asarray(params['embedding'])[atoms]
    v = (s @ np.asarray(params['init_W']) + np.asarray(params['init_b'])).reshape(N, 3, F)

    rows, cols = np.meshgrid(np.arange(N), np.arange(N), indexing='ij')
    rows, cols = rows.ravel(), cols.ravel()
    keep = rows != cols
    rows, cols = rows[keep], cols[keep]
    d = np.linalg.norm(pos[rows] - pos[cols], axis=-1)
    keep = d < cutoff
    rows, cols = rows[keep], cols[keep]
    keep = gi[rows] == gi[cols]
    rows, cols = rows[keep], cols[keep]
    d = np.linalg.norm(pos[rows] - pos[cols], axis=-1)

    means = np.linspace(0.0, cutoff, num_rbf, dtype=np.float32)
    sigma = means[1] - means[0]
    rbf = np.exp(-(d[:, None] - means) ** 2 / (2.0 * sigma ** 2)) * (d[:, None] < cutoff)

    for blk in params['blocks']:
        v_diff = v[rows] - v[cols]                                   # [E, 3, F]
        s_msg = np.concatenate([s[rows], rbf], axis=-1)
        ds = _np_linear(_np_silu(_np_linear(s_msg, blk['ms1'])), blk['ms2'])
        gate = _np_linear(_np_silu(_np_linear(s_msg, blk['mv1'])), blk['mv2'])
        vdn = v_diff / (np.linalg.norm(v_diff, axis=1, keepdims=True) + 1e-08)
        dv = gate[:, None, :] * vdn
        ds_agg = np.zeros_like(s); np.add.at(ds_agg, cols, ds)
        dv_agg = np.zeros_like(v); np.add.at(dv_agg, cols, dv)
        s_upd = np.concatenate([s, ds_agg], axis=-1)
        v_upd = np.concatenate([v, dv_agg], axis=-1).reshape(-1, 2 * F)
        s = s + _np_linear(_np_silu(_np_linear(s_upd, blk['us1'])), blk['us2'])
        v = v + _np_linear(_np_silu(_np_linear(v_upd, blk['uv1'])), blk['uv2']).reshape(N, 3, F)

    out = s
    for i, Wb in enumerate(params['out']):
        out = _np_linear(out, Wb)
        if i < 2:
            out = _np_silu(out)
    return out


# --------------------------------------------------------------------------- main
if __name__ == "__main__":
    N = 16           # num atoms (nodes)
    F = 32           # num_features
    R = 16           # num_rbf_features
    A = 10           # num_unique_atoms
    O = 4            # num_outputs
    L = 2            # num_message_passing_layers
    CUTOFF = 5.0

    key = jax.random.PRNGKey(0)
    k_params, k_atoms, k_pos = jax.random.split(key, 3)

    params = init_params(k_params, L, F, R, A, O)
    atoms = jax.random.randint(k_atoms, (N,), 0, A, dtype=jnp.int32)
    pos = jax.random.uniform(k_pos, (N, 3), minval=0.0, maxval=4.0, dtype=jnp.float32)
    graph_idx = jnp.array([0] * (N // 2) + [1] * (N // 2), dtype=jnp.int32)

    out = painn_forward(params, atoms, pos, graph_idx, CUTOFF, R)
    out = jax.block_until_ready(out)

    ref = reference_forward_np(params, atoms, pos, graph_idx, CUTOFF, R)
    assert out.shape == (N, O)
    assert np.all(np.isfinite(np.asarray(out)))
    np.testing.assert_allclose(np.asarray(out), ref, rtol=5e-2, atol=5e-2)
    print("KERNEL_OK")
</pallas_src>

<mosaic_0001>
module attributes {stable_mosaic.version = 11 : i64} {
  func.func @painn_fused_kernel(%arg0: i32, %arg1: memref<16x16xf32, #tpu.memory_space<vmem>>, %arg2: memref<256x16xbf16, #tpu.memory_space<vmem>>, %arg3: memref<16x32xf32, #tpu.memory_space<vmem>>, %arg4: memref<3x16x32xf32, #tpu.memory_space<vmem>>, %arg5: memref<1x112x64xbf16, #tpu.memory_space<vmem>>, %arg6: memref<1x192x32xbf16, #tpu.memory_space<vmem>>, %arg7: memref<1x8x64xf32, #tpu.memory_space<vmem>>, %arg8: memref<32x32xbf16, #tpu.memory_space<vmem>>, %arg9: memref<1x32xf32, #tpu.memory_space<vmem>>, %arg10: memref<32x32xbf16, #tpu.memory_space<vmem>>, %arg11: memref<1x32xf32, #tpu.memory_space<vmem>>, %arg12: memref<32x128xbf16, #tpu.memory_space<vmem>>, %arg13: memref<1x128xf32, #tpu.memory_space<vmem>>, %arg14: memref<16x128xf32, #tpu.memory_space<vmem>>, %arg15: memref<16x32xf32, #tpu.memory_space<vmem>>, %arg16: memref<3x16x32xf32, #tpu.memory_space<vmem>>) attributes {dimension_semantics = [#tpu.dimension_semantics<arbitrary>], iteration_bounds = array<i64: 2>, scalar_prefetch = 0 : i64, scratch_operands = 2 : i64, tpu.core_type = #tpu.core_type<tc>, window_params = [{pipeline_mode = #tpu.pipeline_mode<synchronous>, transform_indices = @transform_0, window_bounds = array<i64: 16, 16>}, {pipeline_mode = #tpu.pipeline_mode<synchronous>, transform_indices = @transform_1, window_bounds = array<i64: 256, 16>}, {pipeline_mode = #tpu.pipeline_mode<synchronous>, transform_indices = @transform_2, window_bounds = array<i64: 16, 32>}, {pipeline_mode = #tpu.pipeline_mode<synchronous>, transform_indices = @transform_3, window_bounds = array<i64: 3, 16, 32>}, {transform_indices = @transform_4, window_bounds = array<i64: 1, 112, 64>}, {transform_indices = @transform_5, window_bounds = array<i64: 1, 192, 32>}, {transform_indices = @transform_6, window_bounds = array<i64: 1, 8, 64>}, {pipeline_mode = #tpu.pipeline_mode<synchronous>, transform_indices = @transform_7, window_bounds = array<i64: 32, 32>}, {pipeline_mode = #tpu.pipeline_mode<synchronous>, transform_indices = @transform_8, window_bounds = array<i64: 1, 32>}, {pipeline_mode = #tpu.pipeline_mode<synchronous>, transform_indices = @transform_9, window_bounds = array<i64: 32, 32>}, {pipeline_mode = #tpu.pipeline_mode<synchronous>, transform_indices = @transform_10, window_bounds = array<i64: 1, 32>}, {pipeline_mode = #tpu.pipeline_mode<synchronous>, transform_indices = @transform_11, window_bounds = array<i64: 32, 128>}, {pipeline_mode = #tpu.pipeline_mode<synchronous>, transform_indices = @transform_12, window_bounds = array<i64: 1, 128>}, {pipeline_mode = #tpu.pipeline_mode<synchronous>, transform_indices = @transform_13, window_bounds = array<i64: 16, 128>}]} {
    %c0_i32 = arith.constant 0 : i32
    %0 = arith.cmpi eq, %arg0, %c0_i32 : i32
    %1 = arith.extui %0 : i1 to i32
    %c0_i32_0 = arith.constant 0 : i32
    %2 = arith.cmpi ne, %1, %c0_i32_0 : i32
    scf.if %2 {
      %c0_43 = arith.constant 0 : index
      %c0_44 = arith.constant 0 : index
      %169 = vector.load %arg3[%c0_43, %c0_44] : memref<16x32xf32, #tpu.memory_space<vmem>>, vector<16x32xf32>
      %c0_45 = arith.constant 0 : index
      %c0_46 = arith.constant 0 : index
      %170 = vector.load %arg15[%c0_45, %c0_46] : memref<16x32xf32, #tpu.memory_space<vmem>>, vector<16x32xf32>
      tpu.vector_store %arg15[%c0_45, %c0_46], %169 {strides = array<i32>} : memref<16x32xf32, #tpu.memory_space<vmem>>, vector<16x32xf32>,
      %c0_47 = arith.constant 0 : index
      %c0_48 = arith.constant 0 : index
      %c0_49 = arith.constant 0 : index
      %171 = vector.load %arg4[%c0_47, %c0_48, %c0_49] : memref<3x16x32xf32, #tpu.memory_space<vmem>>, vector<3x16x32xf32>
      %c0_50 = arith.constant 0 : index
      %c0_51 = arith.constant 0 : index
      %c0_52 = arith.constant 0 : index
      %172 = vector.load %arg16[%c0_50, %c0_51, %c0_52] : memref<3x16x32xf32, #tpu.memory_space<vmem>>, vector<3x16x32xf32>
      tpu.vector_store %arg16[%c0_50, %c0_51, %c0_52], %171 {strides = array<i32>} : memref<3x16x32xf32, #tpu.memory_space<vmem>>, vector<3x16x32xf32>,
    } else {
    }
    %c0 = arith.constant 0 : index
    %c0_1 = arith.constant 0 : index
    %3 = vector.load %arg15[%c0, %c0_1] : memref<16x32xf32, #tpu.memory_space<vmem>>, vector<16x32xf32>
    %c0_2 = arith.constant 0 : index
    %c0_3 = arith.constant 0 : index
    %c0_4 = arith.constant 0 : index
    %4 = vector.load %arg16[%c0_2, %c0_3, %c0_4] : memref<3x16x32xf32, #tpu.memory_space<vmem>>, vector<3x16x32xf32>
    %c0_5 = arith.constant 0 : index
    %c0_6 = arith.constant 0 : index
    %5 = vector.load %arg1[%c0_5, %c0_6] : memref<16x16xf32, #tpu.memory_space<vmem>>, vector<16x16xf32>
    %c0_7 = arith.constant 0 : index
    %c0_8 = arith.constant 0 : index
    %6 = vector.load %arg2[%c0_7, %c0_8] : memref<256x16xbf16, #tpu.memory_space<vmem>>, vector<256x16xbf16>
    %c0_9 = arith.constant 0 : index
    %c0_10 = arith.constant 0 : index
    %c0_11 = arith.constant 0 : index
    %7 = vector.load %arg5[%c0_9, %c0_10, %c0_11] : memref<1x112x64xbf16, #tpu.memory_space<vmem>>, vector<1x112x64xbf16>
    %8 = vector.shape_cast %7 : vector<1x112x64xbf16> to vector<112x64xbf16>
    %9 = vector.extract_strided_slice %8 {offsets = [0, 0], sizes = [32, 64], strides = [1, 1]} : vector<112x64xbf16> to vector<32x64xbf16>
    %10 = vector.extract_strided_slice %8 {offsets = [32, 0], sizes = [16, 64], strides = [1, 1]} : vector<112x64xbf16> to vector<16x64xbf16>
    %11 = vector.extract_strided_slice %8 {offsets = [48, 0], sizes = [64, 64], strides = [1, 1]} : vector<112x64xbf16> to vector<64x64xbf16>
    %c0_12 = arith.constant 0 : index
    %c0_13 = arith.constant 0 : index
    %c0_14 = arith.constant 0 : index
    %12 = vector.load %arg6[%c0_12, %c0_13, %c0_14] : memref<1x192x32xbf16, #tpu.memory_space<vmem>>, vector<1x192x32xbf16>
    %13 = vector.shape_cast %12 : vector<1x192x32xbf16> to vector<192x32xbf16>
    %14 = vector.extract_strided_slice %13 {offsets = [0, 0], sizes = [64, 32], strides = [1, 1]} : vector<192x32xbf16> to vector<64x32xbf16>
    %15 = vector.extract_strided_slice %13 {offsets = [64, 0], sizes = [32, 32], strides = [1, 1]} : vector<192x32xbf16> to vector<32x32xbf16>
    %16 = vector.extract_strided_slice %13 {offsets = [96, 0], sizes = [64, 32], strides = [1, 1]} : vector<192x32xbf16> to vector<64x32xbf16>
    %17 = vector.extract_strided_slice %13 {offsets = [160, 0], sizes = [32, 32], strides = [1, 1]} : vector<192x32xbf16> to vector<32x32xbf16>
    %c0_15 = arith.constant 0 : index
    %c0_16 = arith.constant 0 : index
    %c0_17 = arith.constant 0 : index
    %18 = vector.load %arg7[%c0_15, %c0_16, %c0_17] : memref<1x8x64xf32, #tpu.memory_space<vmem>>, vector<1x8x64xf32>
    %19 = vector.shape_cast %18 : vector<1x8x64xf32> to vector<8x64xf32>
    %20 = vector.extract_strided_slice %19 {offsets = [0, 0], sizes = [1, 64], strides = [1, 1]} : vector<8x64xf32> to vector<1x64xf32>
    %21 = vector.extract_strided_slice %19 {offsets = [1, 0], sizes = [1, 32], strides = [1, 1]} : vector<8x64xf32> to vector<1x32xf32>
    %22 = vector.extract_strided_slice %19 {offsets = [2, 0], sizes = [1, 32], strides = [1, 1]} : vector<8x64xf32> to vector<1x32xf32>
    %23 = vector.extract_strided_slice %19 {offsets = [3, 0], sizes = [1, 32], strides = [1, 1]} : vector<8x64xf32> to vector<1x32xf32>
    %24 = vector.extract_strided_slice %19 {offsets = [4, 0], sizes = [1, 32], strides = [1, 1]} : vector<8x64xf32> to vector<1x32xf32>
    %25 = vector.extract_strided_slice %19 {offsets = [5, 0], sizes = [1, 32], strides = [1, 1]} : vector<8x64xf32> to vector<1x32xf32>
    %26 = vector.extract_strided_slice %19 {offsets = [6, 0], sizes = [1, 32], strides = [1, 1]} : vector<8x64xf32> to vector<1x32xf32>
    %27 = arith.truncf %3 : vector<16x32xf32> to vector<16x32xbf16>
    %cst = arith.constant dense<0.000000e+00> : vector<16x64xf32>
    %28 = tpu.matmul %27, %9, %cst {dimension_numbers = #tpu.dot_dimension_numbers<[1], [0], [0], [1], [0, 0, 1, 1], [], []>} : vector<16x32xbf16>, vector<32x64xbf16>, vector<16x64xf32> -> vector<16x64xf32>
    %29 = vector.broadcast %20 : vector<1x64xf32> to vector<16x64xf32>
    %30 = arith.addf %28, %29 : vector<16x64xf32>
    %cst_18 = arith.constant dense<0.000000e+00> : vector<256x64xf32>
    %31 = tpu.matmul %6, %10, %cst_18 {dimension_numbers = #tpu.dot_dimension_numbers<[1], [0], [0], [1], [0, 0, 1, 1], [], []>} : vector<256x16xbf16>, vector<16x64xbf16>, vector<256x64xf32> -> vector<256x64xf32>
    %32 = vector.shape_cast %30 : vector<16x64xf32> to vector<16x1x64xf32>
    %33 = vector.shape_cast %31 : vector<256x64xf32> to vector<16x16x64xf32>
    %34 = vector.broadcast %32 : vector<16x1x64xf32> to vector<16x16x64xf32>
    %35 = arith.addf %34, %33 : vector<16x16x64xf32>
    %36 = arith.negf %35 : vector<16x16x64xf32>
    %37 = math.exp %36 : vector<16x16x64xf32>
    %cst_19 = arith.constant 1.000000e+00 : f32
    %38 = vector.broadcast %cst_19 : f32 to vector<16x16x64xf32>
    %39 = arith.addf %38, %37 : vector<16x16x64xf32>
    %40 = arith.divf %38, %39 : vector<16x16x64xf32>
    %41 = arith.mulf %35, %40 : vector<16x16x64xf32>
    %42 = vector.shape_cast %41 : vector<16x16x64xf32> to vector<256x64xf32>
    %43 = arith.truncf %42 : vector<256x64xf32> to vector<256x64xbf16>
    %cst_20 = arith.constant dense<0.000000e+00> : vector<256x64xf32>
    %44 = tpu.matmul %43, %11, %cst_20 {dimension_numbers = #tpu.dot_dimension_numbers<[1], [0], [0], [1], [0, 0, 1, 1], [], []>} : vector<256x64xbf16>, vector<64x64xbf16>, vector<256x64xf32> -> vector<256x64xf32>
    %45 = vector.shape_cast %44 : vector<256x64xf32> to vector<16x16x64xf32>
    %46 = vector.extract_strided_slice %45 {offsets = [0, 0, 0], sizes = [16, 16, 32], strides = [1, 1, 1]} : vector<16x16x64xf32> to vector<16x16x32xf32>
    %47 = vector.extract_strided_slice %45 {offsets = [0, 0, 32], sizes = [16, 16, 32], strides = [1, 1, 1]} : vector<16x16x64xf32> to vector<16x16x32xf32>
    %48 = vector.shape_cast %21 : vector<1x32xf32> to vector<1x1x32xf32>
    %49 = vector.broadcast %48 : vector<1x1x32xf32> to vector<16x16x32xf32>
    %50 = arith.addf %47, %49 : vector<16x16x32xf32>
    %cst_21 = arith.constant 0.000000e+00 : f32
    %51 = vector.broadcast %cst_21 : f32 to vector<16x16x32xf32>
    %52 = vector.extract_strided_slice %4 {offsets = [0, 0, 0], sizes = [1, 16, 32], strides = [1, 1, 1]} : vector<3x16x32xf32> to vector<1x16x32xf32>
    %53 = vector.shape_cast %52 : vector<1x16x32xf32> to vector<16x32xf32>
    %54 = vector.shape_cast %53 : vector<16x32xf32> to vector<16x1x32xf32>
    %55 = vector.shape_cast %53 : vector<16x32xf32> to vector<1x16x32xf32>
    %56 = vector.broadcast %54 : vector<16x1x32xf32> to vector<16x16x32xf32>
    %57 = vector.broadcast %55 : vector<1x16x32xf32> to vector<16x16x32xf32>
    %58 = arith.subf %56, %57 : vector<16x16x32xf32>
    %59 = arith.mulf %58, %58 : vector<16x16x32xf32>
    %60 = arith.addf %51, %59 : vector<16x16x32xf32>
    %61 = vector.extract_strided_slice %4 {offsets = [1, 0, 0], sizes = [1, 16, 32], strides = [1, 1, 1]} : vector<3x16x32xf32> to vector<1x16x32xf32>
    %62 = vector.shape_cast %61 : vector<1x16x32xf32> to vector<16x32xf32>
    %63 = vector.shape_cast %62 : vector<16x32xf32> to vector<16x1x32xf32>
    %64 = vector.shape_cast %62 : vector<16x32xf32> to vector<1x16x32xf32>
    %65 = vector.broadcast %63 : vector<16x1x32xf32> to vector<16x16x32xf32>
    %66 = vector.broadcast %64 : vector<1x16x32xf32> to vector<16x16x32xf32>
    %67 = arith.subf %65, %66 : vector<16x16x32xf32>
    %68 = arith.mulf %67, %67 : vector<16x16x32xf32>
    %69 = arith.addf %60, %68 : vector<16x16x32xf32>
    %70 = vector.extract_strided_slice %4 {offsets = [2, 0, 0], sizes = [1, 16, 32], strides = [1, 1, 1]} : vector<3x16x32xf32> to vector<1x16x32xf32>
    %71 = vector.shape_cast %70 : vector<1x16x32xf32> to vector<16x32xf32>
    %72 = vector.shape_cast %71 : vector<16x32xf32> to vector<16x1x32xf32>
    %73 = vector.shape_cast %71 : vector<16x32xf32> to vector<1x16x32xf32>
    %74 = vector.broadcast %72 : vector<16x1x32xf32> to vector<16x16x32xf32>
    %75 = vector.broadcast %73 : vector<1x16x32xf32> to vector<16x16x32xf32>
    %76 = arith.subf %74, %75 : vector<16x16x32xf32>
    %77 = arith.mulf %76, %76 : vector<16x16x32xf32>
    %78 = arith.addf %69, %77 : vector<16x16x32xf32>
    %79 = vector.shape_cast %5 : vector<16x16xf32> to vector<16x16x1xf32>
    %cst_22 = arith.constant 0.000000e+00 : f32
    %80 = vector.broadcast %cst_22 : f32 to vector<16x16x1xf32>
    %81 = arith.cmpf ogt, %79, %80 : vector<16x16x1xf32>
    %cst_23 = arith.constant 0.000000e+00 : f32
    %82 = vector.broadcast %cst_23 : f32 to vector<16x16x32xf32>
    %83 = arith.cmpf ogt, %78, %82 : vector<16x16x32xf32>
    %84 = vector.broadcast %81 : vector<16x16x1xi1> to vector<16x16x32xi1>
    %85 = arith.andi %84, %83 : vector<16x16x32xi1>
    %86 = math.rsqrt %78 : vector<16x16x32xf32>
    %cst_24 = arith.constant 0.000000e+00 : f32
    %87 = vector.broadcast %cst_24 : f32 to vector<16x16x32xf32>
    %88 = arith.select %85, %86, %87 : vector<16x16x32xi1>, vector<16x16x32xf32>
    %89 = arith.mulf %50, %88 : vector<16x16x32xf32>
    %cst_25 = arith.constant dense<0.000000e+00> : vector<16x32xf32>
    %90 = vector.multi_reduction <add>, %89, %cst_25 [0] : vector<16x16x32xf32> to vector<16x32xf32>
    %91 = vector.broadcast %79 : vector<16x16x1xf32> to vector<16x16x32xf32>
    %92 = arith.mulf %46, %91 : vector<16x16x32xf32>
    %cst_26 = arith.constant dense<0.000000e+00> : vector<16x32xf32>
    %93 = vector.multi_reduction <add>, %92, %cst_26 [0] : vector<16x16x32xf32> to vector<16x32xf32>
    %cst_27 = arith.constant dense<0.000000e+00> : vector<16x1xf32>
    %94 = vector.multi_reduction <add>, %79, %cst_27 [0] : vector<16x16x1xf32> to vector<16x1xf32>
    %95 = vector.broadcast %22 : vector<1x32xf32> to vector<16x32xf32>
    %96 = vector.broadcast %94 : vector<16x1xf32> to vector<16x32xf32>
    %97 = arith.mulf %95, %96 : vector<16x32xf32>
    %98 = arith.addf %93, %97 : vector<16x32xf32>
    %99 = tpu.concatenate %3, %98 in 1 : vector<16x32xf32>, vector<16x32xf32> -> vector<16x64xf32>
    %100 = arith.truncf %99 : vector<16x64xf32> to vector<16x64xbf16>
    %cst_28 = arith.constant dense<0.000000e+00> : vector<16x32xf32>
    %101 = tpu.matmul %100, %14, %cst_28 {dimension_numbers = #tpu.dot_dimension_numbers<[1], [0], [0], [1], [0, 0, 1, 1], [], []>} : vector<16x64xbf16>, vector<64x32xbf16>, vector<16x32xf32> -> vector<16x32xf32>
    %102 = vector.broadcast %23 : vector<1x32xf32> to vector<16x32xf32>
    %103 = arith.addf %101, %102 : vector<16x32xf32>
    %104 = arith.negf %103 : vector<16x32xf32>
    %105 = math.exp %104 : vector<16x32xf32>
    %cst_29 = arith.constant 1.000000e+00 : f32
    %106 = vector.broadcast %cst_29 : f32 to vector<16x32xf32>
    %107 = arith.addf %106, %105 : vector<16x32xf32>
    %108 = arith.divf %106, %107 : vector<16x32xf32>
    %109 = arith.mulf %103, %108 : vector<16x32xf32>
    %110 = arith.truncf %109 : vector<16x32xf32> to vector<16x32xbf16>
    %cst_30 = arith.constant dense<0.000000e+00> : vector<16x32xf32>
    %111 = tpu.matmul %110, %15, %cst_30 {dimension_numbers = #tpu.dot_dimension_numbers<[1], [0], [0], [1], [0, 0, 1, 1], [], []>} : vector<16x32xbf16>, vector<32x32xbf16>, vector<16x32xf32> -> vector<16x32xf32>
    %112 = arith.addf %3, %111 : vector<16x32xf32>
    %113 = vector.broadcast %24 : vector<1x32xf32> to vector<16x32xf32>
    %114 = arith.addf %112, %113 : vector<16x32xf32>
    %115 = vector.extract_strided_slice %4 {offsets = [0, 0, 0], sizes = [1, 16, 32], strides = [1, 1, 1]} : vector<3x16x32xf32> to vector<1x16x32xf32>
    %116 = vector.shape_cast %115 : vector<1x16x32xf32> to vector<16x32xf32>
    %117 = vector.shape_cast %116 : vector<16x32xf32> to vector<16x1x32xf32>
    %118 = vector.broadcast %117 : vector<16x1x32xf32> to vector<16x16x32xf32>
    %119 = arith.mulf %89, %118 : vector<16x16x32xf32>
    %cst_31 = arith.constant dense<0.000000e+00> : vector<16x32xf32>
    %120 = vector.multi_reduction <add>, %119, %cst_31 [0] : vector<16x16x32xf32> to vector<16x32xf32>
    %121 = vector.extract_strided_slice %4 {offsets = [0, 0, 0], sizes = [1, 16, 32], strides = [1, 1, 1]} : vector<3x16x32xf32> to vector<1x16x32xf32>
    %122 = vector.shape_cast %121 : vector<1x16x32xf32> to vector<16x32xf32>
    %123 = arith.mulf %122, %90 : vector<16x32xf32>
    %124 = arith.subf %120, %123 : vector<16x32xf32>
    %125 = vector.extract_strided_slice %4 {offsets = [1, 0, 0], sizes = [1, 16, 32], strides = [1, 1, 1]} : vector<3x16x32xf32> to vector<1x16x32xf32>
    %126 = vector.shape_cast %125 : vector<1x16x32xf32> to vector<16x32xf32>
    %127 = vector.shape_cast %126 : vector<16x32xf32> to vector<16x1x32xf32>
    %128 = vector.broadcast %127 : vector<16x1x32xf32> to vector<16x16x32xf32>
    %129 = arith.mulf %89, %128 : vector<16x16x32xf32>
    %cst_32 = arith.constant dense<0.000000e+00> : vector<16x32xf32>
    %130 = vector.multi_reduction <add>, %129, %cst_32 [0] : vector<16x16x32xf32> to vector<16x32xf32>
    %131 = vector.extract_strided_slice %4 {offsets = [1, 0, 0], sizes = [1, 16, 32], strides = [1, 1, 1]} : vector<3x16x32xf32> to vector<1x16x32xf32>
    %132 = vector.shape_cast %131 : vector<1x16x32xf32> to vector<16x32xf32>
    %133 = arith.mulf %132, %90 : vector<16x32xf32>
    %134 = arith.subf %130, %133 : vector<16x32xf32>
    %135 = vector.extract_strided_slice %4 {offsets = [2, 0, 0], sizes = [1, 16, 32], strides = [1, 1, 1]} : vector<3x16x32xf32> to vector<1x16x32xf32>
    %136 = vector.shape_cast %135 : vector<1x16x32xf32> to vector<16x32xf32>
    %137 = vector.shape_cast %136 : vector<16x32xf32> to vector<16x1x32xf32>
    %138 = vector.broadcast %137 : vector<16x1x32xf32> to vector<16x16x32xf32>
    %139 = arith.mulf %89, %138 : vector<16x16x32xf32>
    %cst_33 = arith.constant dense<0.000000e+00> : vector<16x32xf32>
    %140 = vector.multi_reduction <add>, %139, %cst_33 [0] : vector<16x16x32xf32> to vector<16x32xf32>
    %141 = vector.extract_strided_slice %4 {offsets = [2, 0, 0], sizes = [1, 16, 32], strides = [1, 1, 1]} : vector<3x16x32xf32> to vector<1x16x32xf32>
    %142 = vector.shape_cast %141 : vector<1x16x32xf32> to vector<16x32xf32>
    %143 = arith.mulf %142, %90 : vector<16x32xf32>
    %144 = arith.subf %140, %143 : vector<16x32xf32>
    %145 = tpu.concatenate %124, %134, %144 in 0 : vector<16x32xf32>, vector<16x32xf32>, vector<16x32xf32> -> vector<48x32xf32>
    %146 = vector.shape_cast %4 : vector<3x16x32xf32> to vector<48x32xf32>
    %147 = tpu.concatenate %146, %145 in 1 : vector<48x32xf32>, vector<48x32xf32> -> vector<48x64xf32>
    %148 = arith.truncf %147 : vector<48x64xf32> to vector<48x64xbf16>
    %cst_34 = arith.constant dense<0.000000e+00> : vector<48x32xf32>
    %149 = tpu.matmul %148, %16, %cst_34 {dimension_numbers = #tpu.dot_dimension_numbers<[1], [0], [0], [1], [0, 0, 1, 1], [], []>} : vector<48x64xbf16>, vector<64x32xbf16>, vector<48x32xf32> -> vector<48x32xf32>
    %150 = vector.broadcast %25 : vector<1x32xf32> to vector<48x32xf32>
    %151 = arith.addf %149, %150 : vector<48x32xf32>
    %152 = arith.negf %151 : vector<48x32xf32>
    %153 = math.exp %152 : vector<48x32xf32>
    %cst_35 = arith.constant 1.000000e+00 : f32
    %154 = vector.broadcast %cst_35 : f32 to vector<48x32xf32>
    %155 = arith.addf %154, %153 : vector<48x32xf32>
    %156 = arith.divf %154, %155 : vector<48x32xf32>
    %157 = arith.mulf %151, %156 : vector<48x32xf32>
    %158 = arith.truncf %157 : vector<48x32xf32> to vector<48x32xbf16>
    %cst_36 = arith.constant dense<0.000000e+00> : vector<48x32xf32>
    %159 = tpu.matmul %158, %17, %cst_36 {dimension_numbers = #tpu.dot_dimension_numbers<[1], [0], [0], [1], [0, 0, 1, 1], [], []>} : vector<48x32xbf16>, vector<32x32xbf16>, vector<48x32xf32> -> vector<48x32xf32>
    %160 = arith.addf %146, %159 : vector<48x32xf32>
    %161 = vector.broadcast %26 : vector<1x32xf32> to vector<48x32xf32>
    %162 = arith.addf %160, %161 : vector<48x32xf32>
    %c0_37 = arith.constant 0 : index
    %c0_38 = arith.constant 0 : index
    %163 = vector.load %arg15[%c0_37, %c0_38] : memref<16x32xf32, #tpu.memory_space<vmem>>, vector<16x32xf32>
    tpu.vector_store %arg15[%c0_37, %c0_38], %114 {strides = array<i32>} : memref<16x32xf32, #tpu.memory_space<vmem>>, vector<16x32xf32>,
    %164 = vector.shape_cast %162 : vector<48x32xf32> to vector<3x16x32xf32>
    %c0_39 = arith.constant 0 : index
    %c0_40 = arith.constant 0 : index
    %c0_41 = arith.constant 0 : index
    %165 = vector.load %arg16[%c0_39, %c0_40, %c0_41] : memref<3x16x32xf32, #tpu.memory_space<vmem>>, vector<3x16x32xf32>
    tpu.vector_store %arg16[%c0_39, %c0_40, %c0_41], %164 {strides = array<i32>} : memref<3x16x32xf32, #tpu.memory_space<vmem>>, vector<3x16x32xf32>,
    %c1_i32 = arith.constant 1 : i32
    %166 = arith.cmpi eq, %arg0, %c1_i32 : i32
    %167 = arith.extui %166 : i1 to i32
    %c0_i32_42 = arith.constant 0 : i32
    %168 = arith.cmpi ne, %167, %c0_i32_42 : i32
    scf.if %168 {
      %169 = arith.truncf %114 : vector<16x32xf32> to vector<16x32xbf16>
      %c0_43 = arith.constant 0 : index
      %c0_44 = arith.constant 0 : index
      %170 = vector.load %arg8[%c0_43, %c0_44] : memref<32x32xbf16, #tpu.memory_space<vmem>>, vector<32x32xbf16>
      %cst_45 = arith.constant dense<0.000000e+00> : vector<16x32xf32>
      %171 = tpu.matmul %169, %170, %cst_45 {dimension_numbers = #tpu.dot_dimension_numbers<[1], [0], [0], [1], [0, 0, 1, 1], [], []>} : vector<16x32xbf16>, vector<32x32xbf16>, vector<16x32xf32> -> vector<16x32xf32>
      %c0_46 = arith.constant 0 : index
      %c0_47 = arith.constant 0 : index
      %172 = vector.load %arg9[%c0_46, %c0_47] : memref<1x32xf32, #tpu.memory_space<vmem>>, vector<1x32xf32>
      %173 = vector.broadcast %172 : vector<1x32xf32> to vector<16x32xf32>
      %174 = arith.addf %171, %173 : vector<16x32xf32>
      %175 = arith.negf %174 : vector<16x32xf32>
      %176 = math.exp %175 : vector<16x32xf32>
      %cst_48 = arith.constant 1.000000e+00 : f32
      %177 = vector.broadcast %cst_48 : f32 to vector<16x32xf32>
      %178 = arith.addf %177, %176 : vector<16x32xf32>
      %179 = arith.divf %177, %178 : vector<16x32xf32>
      %180 = arith.mulf %174, %179 : vector<16x32xf32>
      %181 = arith.truncf %180 : vector<16x32xf32> to vector<16x32xbf16>
      %c0_49 = arith.constant 0 : index
      %c0_50 = arith.constant 0 : index
      %182 = vector.load %arg10[%c0_49, %c0_50] : memref<32x32xbf16, #tpu.memory_space<vmem>>, vector<32x32xbf16>
      %cst_51 = arith.constant dense<0.000000e+00> : vector<16x32xf32>
      %183 = tpu.matmul %181, %182, %cst_51 {dimension_numbers = #tpu.dot_dimension_numbers<[1], [0], [0], [1], [0, 0, 1, 1], [], []>} : vector<16x32xbf16>, vector<32x32xbf16>, vector<16x32xf32> -> vector<16x32xf32>
      %c0_52 = arith.constant 0 : index
      %c0_53 = arith.constant 0 : index
      %184 = vector.load %arg11[%c0_52, %c0_53] : memref<1x32xf32, #tpu.memory_space<vmem>>, vector<1x32xf32>
      %185 = vector.broadcast %184 : vector<1x32xf32> to vector<16x32xf32>
      %186 = arith.addf %183, %185 : vector<16x32xf32>
      %187 = arith.negf %186 : vector<16x32xf32>
      %188 = math.exp %187 : vector<16x32xf32>
      %cst_54 = arith.constant 1.000000e+00 : f32
      %189 = vector.broadcast %cst_54 : f32 to vector<16x32xf32>
      %190 = arith.addf %189, %188 : vector<16x32xf32>
      %191 = arith.divf %189, %190 : vector<16x32xf32>
      %192 = arith.mulf %186, %191 : vector<16x32xf32>
      %193 = arith.truncf %192 : vector<16x32xf32> to vector<16x32xbf16>
      %c0_55 = arith.constant 0 : index
      %c0_56 = arith.constant 0 : index
      %194 = vector.load %arg12[%c0_55, %c0_56] : memref<32x128xbf16, #tpu.memory_space<vmem>>, vector<32x128xbf16>
      %cst_57 = arith.constant dense<0.000000e+00> : vector<16x128xf32>
      %195 = tpu.matmul %193, %194, %cst_57 {dimension_numbers = #tpu.dot_dimension_numbers<[1], [0], [0], [1], [0, 0, 1, 1], [], []>} : vector<16x32xbf16>, vector<32x128xbf16>, vector<16x128xf32> -> vector<16x128xf32>
      %c0_58 = arith.constant 0 : index
      %c0_59 = arith.constant 0 : index
      %196 = vector.load %arg13[%c0_58, %c0_59] : memref<1x128xf32, #tpu.memory_space<vmem>>, vector<1x128xf32>
      %197 = vector.broadcast %196 : vector<1x128xf32> to vector<16x128xf32>
      %198 = arith.addf %195, %197 : vector<16x128xf32>
      %c0_60 = arith.constant 0 : index
      %c0_61 = arith.constant 0 : index
      %199 = vector.load %arg14[%c0_60, %c0_61] : memref<16x128xf32, #tpu.memory_space<vmem>>, vector<16x128xf32>
      tpu.vector_store %arg14[%c0_60, %c0_61], %198 {strides = array<i32>} : memref<16x128xf32, #tpu.memory_space<vmem>>, vector<16x128xf32>,
    } else {
    }
    return
  }
  func.func @transform_0(%arg0: i32) -> (i32, i32) {
    %c0_i32 = arith.constant 0 : i32
    %c0_i32_0 = arith.constant 0 : i32
    %c0_i32_1 = arith.constant 0 : i32
    return %c0_i32, %c0_i32_0 : i32, i32
  }
  func.func @transform_1(%arg0: i32) -> (i32, i32) {
    %c0_i32 = arith.constant 0 : i32
    %c0_i32_0 = arith.constant 0 : i32
    %c0_i32_1 = arith.constant 0 : i32
    return %c0_i32, %c0_i32_0 : i32, i32
  }
  func.func @transform_2(%arg0: i32) -> (i32, i32) {
    %c0_i32 = arith.constant 0 : i32
    %c0_i32_0 = arith.constant 0 : i32
    %c0_i32_1 = arith.constant 0 : i32
    return %c0_i32, %c0_i32_0 : i32, i32
  }
  func.func @transform_3(%arg0: i32) -> (i32, i32, i32) {
    %c0_i32 = arith.constant 0 : i32
    %c0_i32_0 = arith.constant 0 : i32
    %c0_i32_1 = arith.constant 0 : i32
    %c0_i32_2 = arith.constant 0 : i32
    return %c0_i32, %c0_i32_0, %c0_i32_1 : i32, i32, i32
  }
  func.func @transform_4(%arg0: i32) -> (i32, i32, i32) {
    %c0_i32 = arith.constant 0 : i32
    %c0_i32_0 = arith.constant 0 : i32
    %c0_i32_1 = arith.constant 0 : i32
    return %arg0, %c0_i32, %c0_i32_0 : i32, i32, i32
  }
  func.func @transform_5(%arg0: i32) -> (i32, i32, i32) {
    %c0_i32 = arith.constant 0 : i32
    %c0_i32_0 = arith.constant 0 : i32
    %c0_i32_1 = arith.constant 0 : i32
    return %arg0, %c0_i32, %c0_i32_0 : i32, i32, i32
  }
  func.func @transform_6(%arg0: i32) -> (i32, i32, i32) {
    %c0_i32 = arith.constant 0 : i32
    %c0_i32_0 = arith.constant 0 : i32
    %c0_i32_1 = arith.constant 0 : i32
    return %arg0, %c0_i32, %c0_i32_0 : i32, i32, i32
  }
  func.func @transform_7(%arg0: i32) -> (i32, i32) {
    %c0_i32 = arith.constant 0 : i32
    %c0_i32_0 = arith.constant 0 : i32
    %c0_i32_1 = arith.constant 0 : i32
    return %c0_i32, %c0_i32_0 : i32, i32
  }
  func.func @transform_8(%arg0: i32) -> (i32, i32) {
    %c0_i32 = arith.constant 0 : i32
    %c0_i32_0 = arith.constant 0 : i32
    %c0_i32_1 = arith.constant 0 : i32
    return %c0_i32, %c0_i32_0 : i32, i32
  }
  func.func @transform_9(%arg0: i32) -> (i32, i32) {
    %c0_i32 = arith.constant 0 : i32
    %c0_i32_0 = arith.constant 0 : i32
    %c0_i32_1 = arith.constant 0 : i32
    return %c0_i32, %c0_i32_0 : i32, i32
  }
  func.func @transform_10(%arg0: i32) -> (i32, i32) {
    %c0_i32 = arith.constant 0 : i32
    %c0_i32_0 = arith.constant 0 : i32
    %c0_i32_1 = arith.constant 0 : i32
    return %c0_i32, %c0_i32_0 : i32, i32
  }
  func.func @transform_11(%arg0: i32) -> (i32, i32) {
    %c0_i32 = arith.constant 0 : i32
    %c0_i32_0 = arith.constant 0 : i32
    %c0_i32_1 = arith.constant 0 : i32
    return %c0_i32, %c0_i32_0 : i32, i32
  }
  func.func @transform_12(%arg0: i32) -> (i32, i32) {
    %c0_i32 = arith.constant 0 : i32
    %c0_i32_0 = arith.constant 0 : i32
    %c0_i32_1 = arith.constant 0 : i32
    return %c0_i32, %c0_i32_0 : i32, i32
  }
  func.func @transform_13(%arg0: i32) -> (i32, i32) {
    %c0_i32 = arith.constant 0 : i32
    %c0_i32_0 = arith.constant 0 : i32
    %c0_i32_1 = arith.constant 0 : i32
    return %c0_i32, %c0_i32_0 : i32, i32
  }
}

</mosaic_0001>

<bundles_post_ra>
// kernel: tpu_custom_call.1
= control target key start
LH: loop header
LB: loop body
LE: loop exit
PB: predicated region body
PF: predicated region fallthrough
CT: control target
= control target key end

     0   :  { %18 = vsyncpa [#allocation5], 0  ;;  %s5254_s25 = smov 0   ;;  %s7480_s0 = inlined_call_operand.vmem [shape: f32[16,16], index: 0, kind: input, shape index: {}]   ;;  %s7481_s1 = inlined_call_operand.vmem [shape: bf16[256,16], index: 1, kind: input, shape index: {}]   ;;  %s7482_s2 = inlined_call_operand.vmem [shape: f32[16,32], index: 2, kind: input, shape index: {}]   ;;  %s7483_s3 = inlined_call_operand.vmem [shape: f32[3,16,32], index: 3, kind: input, shape index: {}]   ;;  %s7484_s4 = inlined_call_operand.vmem [shape: bf16[2,112,64], index: 4, kind: input, shape index: {}]   ;;  %s7485_s5 = inlined_call_operand.vmem [shape: bf16[2,192,32], index: 5, kind: input, shape index: {}]   ;;  %s7486_s6 = inlined_call_operand.vmem [shape: f32[2,8,64], index: 6, kind: input, shape index: {}]   ;;  %s7487_s7 = inlined_call_operand.vmem [shape: bf16[32,32], index: 7, kind: input, shape index: {}]   ;;  %s7488_s8 = inlined_call_operand.vmem [shape: f32[1,32], index: 8, kind: input, shape index: {}]   ;;  %s7489_s9 = inlined_call_operand.vmem [shape: bf16[32,32], index: 9, kind: input, shape index: {}]   ;;  %s7490_s10 = inlined_call_operand.vmem [shape: f32[1,32], index: 10, kind: input, shape index: {}]   ;;  %s7491_s11 = inlined_call_operand.vmem [shape: bf16[32,128], index: 11, kind: input, shape index: {}]   ;;  %s7492_s12 = inlined_call_operand.vmem [shape: f32[1,128], index: 12, kind: input, shape index: {}]   ;;  %s7493_s13 = inlined_call_operand.hbm [shape: f32[16,128], index: 13, kind: output, shape index: {}]  }
   0x1 LB: > { %s5260_s26 = sadd.s32 4294967295, %s5172_s25   ;;  %p4429_p0 = scmp.ge.s32.totalorder %s5172_s25, 1  ;;  %s5172_s25 = sphi %s5254_s25, %s24_s25  }
   0x2   : > { %p402_p1 = scmp.lt.s32.totalorder %s5172_s25, 3 }
   0x4   : > { %p403_p2 = pnand %p4429_p0, %p402_p1 }
   0x6   : > { %406 = sbr.rel (%p403_p2) target bundleno = 2031 (0x7ef), region = 72 }
   0xd   : > { %p450_p3 = scmp.lt.s32.totalorder %s5260_s26, 1  ;;  %p4433_p4 = scmp.ne.s32.totalorder %s5260_s26, 0 }
   0xe   : > { %v469_v0 = vld [vmem:[%s7482_s2] sm:$0xff] (!%p4433_p4)  ;;  %vm471_vm0 = vcmask (!%p4433_p4), 261120   ;;  %v470_v1 = vld [vmem:[%s7482_s2 + $0x8] sm:$0xff] (!%p4433_p4)  ;;  %v476_v4 = vld [vmem:[%s7483_s3 + $0x10] sm:$0xff] (!%p4433_p4) }
   0xf   : > { %s451_s27 = scalar_select %p450_p3, %s5260_s26, 1 }
  0x10   : > { %468 = sbr.rel (%p4433_p4) target bundleno = 23 (0x17), region = 76  ;;  %v474_v2 = vld [vmem:[%s7483_s3] sm:$0xff] (!%p4433_p4)  ;;  %472 = vst.msk [vmem:[#allocation2] sm:$0xff] (!%p4433_p4), %vm471_vm0, %v469_v0  ;;  %473 = vst.msk [vmem:[#allocation2 + $0x8] sm:$0xff] (!%p4433_p4), %vm471_vm0, %v470_v1  ;;  %v475_v3 = vld [vmem:[%s7483_s3 + $0x8] sm:$0xff] (!%p4433_p4) }
  0x11   : > { %s4802_s28 = smul.u32 56, %s451_s27  ;;  %s4432_s29 = sshll.u32 %s451_s27, 3  ;;  %480 = vst.msk [vmem:[#allocation3] sm:$0xff] (!%p4433_p4), %vm471_vm0, %v474_v2  ;;  %v477_v5 = vld [vmem:[%s7483_s3 + $0x18] sm:$0xff] (!%p4433_p4)  ;;  %481 = vst.msk [vmem:[#allocation3 + $0x8] sm:$0xff] (!%p4433_p4), %vm471_vm0, %v475_v3  ;;  %v478_v6 = vld [vmem:[%s7483_s3 + $0x20] sm:$0xff] (!%p4433_p4) }
  0x12   : > { %s4803_s30 = smul.u32 96, %s451_s27  ;;  %s5269_s16 = scalar_lea.vmem %s7486_s6, %s4432_s29  ;;  %482 = vst.msk [vmem:[#allocation3 + $0x10] sm:$0xff] (!%p4433_p4), %vm471_vm0, %v476_v4  ;;  %483 = vst.msk [vmem:[#allocation3 + $0x18] sm:$0xff] (!%p4433_p4), %vm471_vm0, %v477_v5  ;;  %v479_v7 = vld [vmem:[%s7483_s3 + $0x28] sm:$0xff] (!%p4433_p4) }
  0x13   : > { %s5274_s19 = scalar_lea.vmem %s7484_s4, %s4802_s28  ;;  %484 = vst.msk [vmem:[#allocation3 + $0x20] sm:$0xff] (!%p4433_p4), %vm471_vm0, %v478_v6  ;;  %485 = vst.msk [vmem:[#allocation3 + $0x28] sm:$0xff] (!%p4433_p4), %vm471_vm0, %v479_v7 }
  0x14   : > { %s5279_s22 = scalar_lea.vmem %s7485_s5, %s4803_s30 }
  0x17 PF: > { %v4833_v8 = vld [vmem:[%s5274_s19] sm:$0xff]   ;;  %v7494_v9 = vmov 0.0   ;;  %v4834_v10 = vld [vmem:[%s5274_s19 + $0x10] sm:$0xff]   ;;  %vm715_vm1 = vcmask 130048   ;;  %v4836_v12 = vld [vmem:[%s5274_s19 + $0x8] sm:$0xff]   ;;  %vm5175_vm2 = vmmov 0   ;;  %v568_v18 = vlaneseq }
  0x18   : > { %4640 = vmatprep.subr.bf16.mxu0 %v7494_v9  ;;  %v4835_v11 = vld [vmem:[%s7481_s1] sm:$0xff]   ;;  %4648 = vmatprep.subr.bf16.mxu1 %v4834_v10  ;;  %v4837_v13 = vld [vmem:[%s7481_s1 + $0x8] sm:$0xff]   ;;  %vm584_vm3 = vcmask 261120   ;;  %v4838_v17 = vld [vmem:[%s7481_s1 + $0x10] sm:$0xff]   ;;  %v5176_v59 = vmov 1966171168  }
  0x19   : > { %4641 = vmatpush3.bf16.msra.mxu0 %v4833_v8  ;;  %4649 = vmatpush3.bf16.msra.mxu1 %v4834_v10  ;;  %v486_v14 = vld [vmem:[#allocation2] sm:$0xff]  ;;  %v487_v15 = vld [vmem:[#allocation2 + $0x8] sm:$0xff]  ;;  %v4839_v19 = vld [vmem:[%s7481_s1 + $0x18] sm:$0xff]   ;;  %v5333_v21 = vshrl.u32 %v568_v18, 7  ;;  %v929_v60 = vunpack.c.l.s4 %v5176_v59  ;;  %s5178_s14 = smov 96   ;;  %p4550_p5 = scmp.ne.s32.totalorder %s5260_s26, 1 }
  0x1a   : > { %4642 = vmatprep.subr.bf16.mxu0 %v7494_v9  ;;  %4650 = vmatprep.mubr.msk.bf16.mxu1 %vm715_vm1, %v4835_v11  ;;  %v567_v16 = vpack.c.bf16 %v487_v15, %v486_v14  ;;  %v4840_v20 = vld [vmem:[%s7481_s1 + $0x20] sm:$0xff]   ;;  %v4841_v24 = vld [vmem:[%s7481_s1 + $0x28] sm:$0xff]   ;;  %v4842_v27 = vld [vmem:[%s7481_s1 + $0x30] sm:$0xff]  }
  0x1b   : > { %4644 = vmatprep.mubr.msk.bf16.mxu0 %vm5175_vm2, %v7494_v9  ;;  %4722 = vmatprep.subr.bf16.mxu1 %v7494_v9  ;;  %v5338_v22 = vsub.s32 0, %v5333_v21  ;;  %v5341_v23 = vsub.s32 1, %v5333_v21  ;;  %v494_v25 = vld [vmem:[%s7480_s0] sm:$0xff]  ;;  %v5350_v26 = vsub.s32 2, %v5333_v21  ;;  %v5358_v30 = vsub.s32 3, %v5333_v21  ;;  %v4843_v32 = vld [vmem:[%s7481_s1 + $0x38] sm:$0xff]  }
  0x1c   : > { %4651 = vmatmul.mubr.msk.bf16.vlgmr.msra.gmra.mrb[0].mxu1 %vm715_vm1, %v4837_v13  ;;  %v5361_v31 = vsub.s32 4, %v5333_v21  ;;  %v4844_v33 = vld [vmem:[%s7481_s1 + $0x40] sm:$0xff]   ;;  %v5377_v37 = vsub.s32 5, %v5333_v21  ;;  %v4845_v38 = vld [vmem:[%s7481_s1 + $0x48] sm:$0xff]   ;;  %v4846_v39 = vld [vmem:[%s7481_s1 + $0x50] sm:$0xff]   ;;  %v5387_v41 = vsub.s32 6, %v5333_v21  ;;  %v930_v61 = vunpack.c.0.s8 %v929_v60 }
  0x1d   : > { %4643 = vmatpush3.bf16.msra.mxu0 %v4836_v12  ;;  %4654 = vmatprep.mubr.msk.bf16.mxu1 %vm715_vm1, %v4838_v17  ;;  %7612 = vst [vmem:[#allocation7_spill] sm:$0xff] %v5350_v26  ;;  %v2482_v28 = vrot.slane %v494_v25, %v5338_v22  ;;  %v2493_v29 = vrot.slane %v494_v25, %v5341_v23  ;;  %7613 = vst [vmem:[#allocation8_spill] sm:$0xff] %v5358_v30  ;;  %v2558_v43 = vsub.s32 7, %v5333_v21  ;;  %v4847_v44 = vld [vmem:[%s7481_s1 + $0x58] sm:$0xff]   ;;  %v4848_v45 = vld [vmem:[%s7481_s1 + $0x60] sm:$0xff]  }
  0x1e   : > { %7614 = vst [vmem:[#allocation9_spill] sm:$0xff] %v5361_v31  ;;  %v2504_v34 = vrot.slane %v494_v25, %v5350_v26  ;;  %v2515_v35 = vrot.slane %v494_v25, %v5358_v30  ;;  %v2526_v36 = vrot.slane %v494_v25, %v5361_v31  ;;  %7615 = vst [vmem:[#allocation10_spill] sm:$0xff] %v5377_v37  ;;  %v495_v47 = vld [vmem:[%s7480_s0 + $0x8] sm:$0xff]  ;;  %v4850_v50 = vld [vmem:[%s7481_s1 + $0x70] sm:$0xff]  }
  0x1f   : > { %2484 = vbcast.lane.b32.xlu0 %v2482_v28, 256  ;;  %2495 = vbcast.lane.b32.xlu1 %v2493_v29, 256  ;;  %v2537_v40 = vrot.slane %v494_v25, %v5377_v37  ;;  %7616 = vst [vmem:[#allocation11_spill] sm:$0xff] %v5387_v41  ;;  %v2548_v42 = vrot.slane %v494_v25, %v5387_v41  ;;  %v4849_v49 = vld [vmem:[%s7481_s1 + $0x68] sm:$0xff]   ;;  %v4851_v53 = vld [vmem:[%s7481_s1 + $0x78] sm:$0xff]   ;;  %v5428_v63 = vld [vmem:[#allocation3] sm:$0xff] }
  0x20   : > { %4645 = vmatmul.mubr.msk.bf16.vlgmr.msra.gmra.mrb[0].mxu0 %vm584_vm3, %v567_v16  ;;  %v2559_v46 = vrot.slane %v494_v25, %v2558_v43  ;;  %v2570_v48 = vrot.slane %v495_v47, %v5338_v22  ;;  %v2581_v51 = vrot.slane %v495_v47, %v5341_v23  ;;  %v2592_v52 = vrot.slane %v495_v47, %v5350_v26  ;;  %v5430_v0 = vld [vmem:[#allocation3 + $0x10] sm:$0xff]  ;;  %v4852_v3 = vld [vmem:[%s5274_s19 + $0x18] sm:$0xff]   ;;  %v5437_v4 = vld [vmem:[#allocation3 + $0x20] sm:$0xff] }
  0x21   : > { %v2603_v54 = vrot.slane %v495_v47, %v5358_v30  ;;  %v2614_v55 = vrot.slane %v495_v47, %v5361_v31  ;;  %v2625_v56 = vrot.slane %v495_v47, %v5377_v37  ;;  %v2636_v57 = vrot.slane %v495_v47, %v5387_v41  ;;  %4682 = vmatprep.subr.bf16.mxu0 %v4852_v3  ;;  %v4853_v13 = vld [vmem:[%s5274_s19 + $0x20] sm:$0xff]  }
  0x22   : > { %v2647_v58 = vrot.slane %v495_v47, %v2558_v43  ;;  %v5426_v62 = vsub.s32 %v930_v61, %v5333_v21  ;;  %4683 = vmatpush3.bf16.msra.mxu0 %v4852_v3 }
  0x23   : > { %2488 = vbcast.lane.b32.xlu0 %v2482_v28, 264  ;;  %2499 = vbcast.lane.b32.xlu1 %v2493_v29, 264  ;;  %v4854_v28 = vld [vmem:[%s5274_s19 + $0x28] sm:$0xff]  }
  0x24   : > { %4655 = vmatmul.mubr.msk.bf16.gmra.mrb[4].mxu1 %vm715_vm1, %v4839_v19  ;;  %v1660_v1 = vrot.slane %v5428_v63, %v5426_v62  ;;  %v1936_v2 = vrot.slane %v5430_v0, %v5426_v62  ;;  %v2212_v7 = vrot.slane %v5437_v4, %v5426_v62  ;;  %4684 = vmatprep.subr.bf16.mxu0 %v4853_v13 }
  0x25   : > { %4658 = vmatprep.mubr.msk.bf16.mxu1 %vm715_vm1, %v4840_v20 }
  0x26   : > { %v1676_v5 = vrot.slane %v1660_v1, %v5426_v62  ;;  %v1952_v6 = vrot.slane %v1936_v2, %v5426_v62  ;;  %v2228_v11 = vrot.slane %v2212_v7, %v5426_v62  ;;  %v1668_v12 = vcombine.high %v1660_v1, %v1660_v1  ;;  %4685 = vmatpush3.bf16.msra.mxu0 %v4853_v13 }
  0x27   : > { %2506 = vbcast.lane.b32.xlu0 %v2504_v34, 256  ;;  %2510 = vbcast.lane.b32.xlu1 %v2504_v34, 264  ;;  %v1944_v14 = vcombine.high %v1936_v2, %v1936_v2  ;;  %v2220_v20 = vcombine.high %v2212_v7, %v2212_v7  ;;  %v1929_v7 = vcombine.high %v5430_v0, %v5430_v0 }
  0x28   : > { %v5444_v8 = vrot.slane %v1676_v5, %v5338_v22  ;;  %v5447_v10 = vrot.slane %v1952_v6, %v5338_v22  ;;  %v5456_v17 = vrot.slane %v2228_v11, %v5338_v22  ;;  %v1690_v18 = vrot.slane %v1668_v12, %v5426_v62  ;;  %4686 = vmatprep.subr.bf16.mxu0 %v4854_v28 }
  0x29   : > { %v1966_v19 = vrot.slane %v1944_v14, %v5426_v62 }
  0x2a   : > { %7617 = vst [vmem:[#allocation12_spill] sm:$0xff] %v5444_v8  ;;  %7618 = vst [vmem:[#allocation13_spill] sm:$0xff] %v5447_v10  ;;  %v1831_v15 = vsub.f32 %v5444_v8, %v5428_v63  ;;  %v2107_v16 = vsub.f32 %v5447_v10, %v5430_v0  ;;  %v2383_v25 = vsub.f32 %v5456_v17, %v5437_v4  ;;  %4687 = vmatpush3.bf16.msra.mxu0 %v4854_v28 }
  0x2b   : > { %2517 = vbcast.lane.b32.xlu0 %v2515_v35, 256  ;;  %2521 = vbcast.lane.b32.xlu1 %v2515_v35, 264  ;;  %7619 = vst [vmem:[#allocation14_spill] sm:$0xff] %v5456_v17  ;;  %v5467_v29 = vrot.slane %v1966_v19, %v5338_v22 }
  0x2c   : > { %4659 = vmatmul.mubr.msk.bf16.gmra.mrb[8].mxu1 %vm715_vm1, %v4841_v24  ;;  %v1863_v21 = vmul.f32 %v1831_v15, %v1831_v15  ;;  %v2139_v24 = vmul.f32 %v2107_v16, %v2107_v16  ;;  %v2415_v34 = vmul.f32 %v2383_v25, %v2383_v25  ;;  %v1943_v16 = vrot.slane %v1929_v7, %v5426_v62 }
  0x2d   : > { %4662 = vmatprep.mubr.msk.bf16.mxu1 %vm715_vm1, %v4842_v27  ;;  %v5463_v27 = vrot.slane %v1690_v18, %v5338_v22  ;;  %7621 = vst [vmem:[#allocation16_spill] sm:$0xff] %v5467_v29 }
  0x2e   : > { %v5525_v28 = vrot.slane %v1943_v16, %v5426_v62 }
  0x2f   : > { %2528 = vbcast.lane.b32.xlu0 %v2526_v36, 256  ;;  %2532 = vbcast.lane.b32.xlu1 %v2526_v36, 264  ;;  %7620 = vst [vmem:[#allocation15_spill] sm:$0xff] %v5463_v27  ;;  %v1833_v35 = vsub.f32 %v5463_v27, %v5428_v63  ;;  %v1698_v36 = vcombine.high %v1676_v5, %v1676_v5 }
  0x31   : > { %v1865_v43 = vmul.f32 %v1833_v35, %v1833_v35 }
  0x33   : > { %2539 = vbcast.lane.b32.xlu0 %v2537_v40, 256  ;;  %2543 = vbcast.lane.b32.xlu1 %v2537_v40, 264  ;;  %v1974_v40 = vcombine.high %v1952_v6, %v1952_v6  ;;  %v1653_v6 = vcombine.high %v5428_v63, %v5428_v63 }
  0x34   : > { %4663 = vmatmul.mubr.msk.bf16.gmra.mrb[12].mxu1 %vm715_vm1, %v4843_v32  ;;  %v2242_v32 = vrot.slane %v2220_v20, %v5426_v62 }
  0x35   : > { %4666 = vmatprep.mubr.msk.bf16.mxu1 %vm715_vm1, %v4844_v33  ;;  %v2171_v33 = vadd.f32 %v2139_v24, %v1863_v21  ;;  %v1667_v15 = vrot.slane %v1653_v6, %v5426_v62 }
  0x36   : > { %v2252_v2 = vcombine.high %v2242_v32, %v2242_v32 }
  0x37   : > { %2550 = vbcast.lane.b32.xlu0 %v2548_v42, 256  ;;  %2554 = vbcast.lane.b32.xlu1 %v2548_v42, 264  ;;  %v2447_v42 = vadd.f32 %v2415_v34, %v2171_v33  ;;  %v5522_v25 = vrot.slane %v1667_v15, %v5426_v62  ;;  %v1669_v33 = vcombine.high %v1667_v15, %v1667_v15 }
  0x38   : > { %v5511_v13 = vrot.slane %v2252_v2, %v5338_v22  ;;  %v1945_v15 = vcombine.high %v1943_v16, %v1943_v16 }
  0x39   : > { %4874 = vrsqrt.f32 %v2447_v42  ;;  %vm2687_vm5 = vcmp.gt.f32.partialorder %v2447_v42, 0.0 }
  0x3a   : > { %7628 = vst [vmem:[#allocation23_spill] sm:$0xff] %v5511_v13  ;;  %v2389_v24 = vsub.f32 %v5511_v13, %v5437_v4 }
  0x3b   : > { %2561 = vbcast.lane.b32.xlu0 %v2559_v46, 256  ;;  %2565 = vbcast.lane.b32.xlu1 %v2559_v46, 264  ;;  %v4855_v46 = vld [vmem:[%s5274_s19 + $0x30] sm:$0xff]   ;;  %s5177_s19 = smov 32  }
  0x3c   : > { %4667 = vmatmul.mubr.msk.bf16.gmra.mrb[16].mxu1 %vm715_vm1, %v4845_v38  ;;  %v2109_v38 = vsub.f32 %v5467_v29, %v5430_v0  ;;  %4688 = vmatprep.subr.bf16.mxu0 %v4855_v46 }
  0x3d   : > { %4670 = vmatprep.mubr.msk.bf16.mxu1 %vm715_vm1, %v4846_v39  ;;  %v5475_v39 = vrot.slane %v2242_v32, %v5338_v22  ;;  %4689 = vmatpush3.bf16.msra.mxu0 %v4855_v46  ;;  %v5542_v46 = vld [vmem:[#allocation3 + $0x18] sm:$0xff] }
  0x3e   : > { %v2141_v47 = vmul.f32 %v2109_v38, %v2109_v38  ;;  %4742 = vmatprep.subr.bf16.mxu0 %v7494_v9  ;;  %v5531_v38 = vrot.slane %v5522_v25, %v5338_v22 }
  0x3f   : > { %2572 = vbcast.lane.b32.xlu0 %v2570_v48, 256  ;;  %2576 = vbcast.lane.b32.xlu1 %v2570_v48, 264  ;;  %7622 = vst [vmem:[#allocation17_spill] sm:$0xff] %v5475_v39  ;;  %v2385_v48 = vsub.f32 %v5475_v39, %v5437_v4 }
  0x40   : > { %7630 = vst [vmem:[#allocation25_spill] sm:$0xff] %v5531_v38 }
  0x43   : > { %2583 = vbcast.lane.b32.xlu0 %v2581_v51, 256  ;;  %2587 = vbcast.lane.b32.xlu1 %v2581_v51, 264  ;;  %v4875_v35 = vpop.eup %4874 }
  0x44   : > { %4671 = vmatmul.mubr.msk.bf16.gmra.mrb[20].mxu1 %vm715_vm1, %v4847_v44  ;;  %v5478_v44 = vrot.slane %v1698_v36, %v5338_v22  ;;  %v2421_v36 = vmul.f32 %v2389_v24, %v2389_v24 }
  0x45   : > { %4674 = vmatprep.mubr.msk.bf16.mxu1 %vm715_vm1, %v4848_v45  ;;  %v2250_v45 = vcombine.high %v2228_v11, %v2228_v11 }
  0x46   : > { %7623 = vst [vmem:[#allocation18_spill] sm:$0xff] %v5478_v44 }
  0x47   : > { %2594 = vbcast.lane.b32.xlu0 %v2592_v52, 256  ;;  %2598 = vbcast.lane.b32.xlu1 %v2592_v52, 264  ;;  %v5489_v51 = vrot.slane %v2250_v45, %v5338_v22  ;;  %v1700_v52 = vcombine.high %v1690_v18, %v1690_v18  ;;  %v2205_v18 = vcombine.high %v5437_v4, %v5437_v4  ;;  %v5540_v45 = vld [vmem:[#allocation3 + $0x8] sm:$0xff] }
  0x49   : > { %7625 = vst [vmem:[#allocation20_spill] sm:$0xff] %v5489_v51  ;;  %v5496_v59 = vrot.slane %v1700_v52, %v5338_v22  ;;  %v2219_v32 = vrot.slane %v2205_v18, %v5426_v62 }
  0x4b   : > { %2605 = vbcast.lane.b32.xlu0 %v2603_v54, 256  ;;  %2609 = vbcast.lane.b32.xlu1 %v2603_v54, 264  ;;  %v2417_v54 = vmul.f32 %v2385_v48, %v2385_v48  ;;  %7626 = vst [vmem:[#allocation21_spill] sm:$0xff] %v5496_v59  ;;  %v1837_v5 = vsub.f32 %v5496_v59, %v5428_v63 }
  0x4c   : > { %4675 = vmatmul.mubr.msk.bf16.gmra.mrb[24].mxu1 %vm715_vm1, %v4849_v49  ;;  %v5484_v49 = vrot.slane %v1974_v40, %v5338_v22  ;;  %v5535_v40 = vrot.slane %v5525_v28, %v5338_v22  ;;  %v2108_v48 = vsub.f32 %v5447_v10, %v5542_v46 }
  0x4d   : > { %4678 = vmatprep.mubr.msk.bf16.mxu1 %vm715_vm1, %v4850_v50  ;;  %v1835_v50 = vsub.f32 %v5478_v44, %v5428_v63  ;;  %v1869_v14 = vmul.f32 %v1837_v5, %v1837_v5 }
  0x4e   : > { %7624 = vst [vmem:[#allocation19_spill] sm:$0xff] %v5484_v49  ;;  %7631 = vst [vmem:[#allocation26_spill] sm:$0xff] %v5535_v40  ;;  %v2140_v2 = vmul.f32 %v2108_v48, %v2108_v48 }
  0x4f   : > { %2616 = vbcast.lane.b32.xlu0 %v2614_v55, 256  ;;  %2620 = vbcast.lane.b32.xlu1 %v2614_v55, 264  ;;  %v2111_v55 = vsub.f32 %v5484_v49, %v5430_v0 }
  0x51   : > { %v2143_v61 = vmul.f32 %v2111_v55, %v2111_v55  ;;  %v1839_v55 = vsub.f32 %v5531_v38, %v5428_v63 }
  0x53   : > { %2627 = vbcast.lane.b32.xlu0 %v2625_v56, 256  ;;  %2631 = vbcast.lane.b32.xlu1 %v2625_v56, 264  ;;  %v1976_v56 = vcombine.high %v1966_v19, %v1966_v19 }
  0x54   : > { %4679 = vmatmul.mubr.msk.bf16.gmra.mrb[28].mxu1 %vm715_vm1, %v4851_v53  ;;  %v2173_v53 = vadd.f32 %v2141_v47, %v1865_v43  ;;  %v5538_v43 = vrot.slane %v2219_v32, %v5426_v62  ;;  %v1832_v47 = vsub.f32 %v5444_v8, %v5540_v45 }
  0x55   : > { %4730 = vmatprep.mubr.msk.bf16.mxu1 %vm5175_vm2, %v7494_v9  ;;  %v5499_v1 = vrot.slane %v1976_v56, %v5338_v22  ;;  %v2115_v56 = vsub.f32 %v5535_v40, %v5430_v0 }
  0x56   : > { %v2449_v60 = vadd.f32 %v2417_v54, %v2173_v53 }
  0x57   : > { %2638 = vbcast.lane.b32.xlu0 %v2636_v57, 256  ;;  %2642 = vbcast.lane.b32.xlu1 %v2636_v57, 264  ;;  %v1867_v57 = vmul.f32 %v1835_v50, %v1835_v50  ;;  %7627 = vst [vmem:[#allocation22_spill] sm:$0xff] %v5499_v1  ;;  %v2113_v12 = vsub.f32 %v5499_v1, %v5430_v0 }
  0x58   : > { %4876 = vrsqrt.f32 %v2449_v60  ;;  %v5549_v50 = vrot.slane %v1669_v33, %v5426_v62  ;;  %vm2689_vm8 = vcmp.gt.f32.partialorder %v2449_v60, 0.0  ;;  %v2147_v5 = vmul.f32 %v2115_v56, %v2115_v56 }
  0x59   : > { %v2175_v11 = vadd.f32 %v2143_v61, %v1867_v57  ;;  %v2145_v21 = vmul.f32 %v2113_v12, %v2113_v12  ;;  %v5562_v57 = vrot.slane %v5538_v43, %v5338_v22  ;;  %v1864_v61 = vmul.f32 %v1832_v47, %v1832_v47 }
  0x5a   : > { %v2221_v33 = vcombine.high %v2219_v32, %v2219_v32  ;;  %v1834_v32 = vsub.f32 %v5463_v27, %v5540_v45 }
  0x5b   : > { %2649 = vbcast.lane.b32.xlu0 %v2647_v58, 256  ;;  %2653 = vbcast.lane.b32.xlu1 %v2647_v58, 264  ;;  %v2387_v58 = vsub.f32 %v5489_v51, %v5437_v4  ;;  %v2177_v34 = vadd.f32 %v2145_v21, %v1869_v14  ;;  %7634 = vst [vmem:[#allocation29_spill] sm:$0xff] %v5562_v57 }
  0x5c   : > { %v2391_v6 = vsub.f32 %v5562_v57, %v5437_v4  ;;  %v5573_v14 = vrot.slane %v5549_v50, %v5338_v22  ;;  %v5585_v16 = vrot.slane %v2221_v33, %v5426_v62  ;;  %v1836_v33 = vsub.f32 %v5478_v44, %v5540_v45 }
  0x5d   : > { %v2419_v3 = vmul.f32 %v2387_v58, %v2387_v58  ;;  %v2453_v54 = vadd.f32 %v2421_v36, %v2177_v34  ;;  %v5564_v58 = vld [vmem:[#allocation3 + $0x28] sm:$0xff] }
  0x5e   : > { %v2384_v12 = vsub.f32 %v5456_v17, %v5564_v58  ;;  %7635 = vst [vmem:[#allocation30_spill] sm:$0xff] %v5573_v14  ;;  %v2423_v24 = vmul.f32 %v2391_v6, %v2391_v6  ;;  %v2386_v56 = vsub.f32 %v5475_v39, %v5564_v58  ;;  %v1866_v6 = vmul.f32 %v1834_v32, %v1834_v32 }
  0x5f   : > { %v2451_v20 = vadd.f32 %v2419_v3, %v2175_v11  ;;  %v1871_v3 = vmul.f32 %v1839_v55, %v1839_v55  ;;  %v2172_v11 = vadd.f32 %v2140_v2, %v1864_v61  ;;  %vm2693_vm14 = vcmp.gt.f32.partialorder %v2453_v54, 0.0 }
  0x60   : > { %v2416_v34 = vmul.f32 %v2384_v12, %v2384_v12  ;;  %v2392_v39 = vsub.f32 %v5562_v57, %v5564_v58 }
  0x61   : > { %4878 = vrsqrt.f32 %v2451_v20  ;;  %v2179_v21 = vadd.f32 %v2147_v5, %v1871_v3  ;;  %vm2691_vm11 = vcmp.gt.f32.partialorder %v2451_v20, 0.0  ;;  %v2110_v20 = vsub.f32 %v5467_v29, %v5542_v46 }
  0x62   : > { %4880 = vrsqrt.f32 %v2453_v54  ;;  %v4877_v7 = vpop.eup %4876  ;;  %v2448_v48 = vadd.f32 %v2416_v34, %v2172_v11  ;;  %v5601_v5 = vrot.slane %v5585_v16, %v5338_v22  ;;  %v1975_v54 = vcombine.high %v5525_v28, %v5525_v28 }
  0x63   : > { %v2455_v36 = vadd.f32 %v2423_v24, %v2179_v21  ;;  %v1699_v21 = vcombine.high %v5522_v25, %v5522_v25  ;;  %v2251_v24 = vcombine.high %v5538_v43, %v5538_v43  ;;  %v2112_v25 = vsub.f32 %v5484_v49, %v5542_v46 }
  0x64   : > { %7639 = vst [vmem:[#allocation34_spill] sm:$0xff] %v5601_v5  ;;  %v2393_v12 = vsub.f32 %v5601_v5, %v5437_v4 }
  0x65   : > { %4882 = vrsqrt.f32 %v2455_v36  ;;  %vm2695_vm1 = vcmp.gt.f32.partialorder %v2455_v36, 0.0  ;;  %v2388_v36 = vsub.f32 %v5489_v51, %v5564_v58 }
  0x66   : > { %4884 = vrsqrt.f32 %v2448_v48 }
  0x6b   : > { %v4879_v47 = vpop.eup %4878 }
  0x6c   : > { %v4881_v34 = vpop.eup %4880 }
  0x91   : > { %v5517_v19 = vpop.permute.xlu0 %2484  ;;  %v5551_v52 = vpop.permute.xlu1 %2495 }
  0x92   : > { %7629 = vst [vmem:[#allocation24_spill] sm:$0xff] %v5517_v19  ;;  %vm2655_vm4 = vcmp.gt.f32.partialorder %v5517_v19, 0.0  ;;  %7632 = vst [vmem:[#allocation27_spill] sm:$0xff] %v5551_v52  ;;  %vm2657_vm7 = vcmp.gt.f32.partialorder %v5551_v52, 0.0 }
  0x93   : > { %vm2783_vm6 = vmand %vm2655_vm4, %vm2687_vm5 }
  0x94   : > { %v2847_v42 = vsel %vm2783_vm6, %v4875_v35, 0.0  ;;  %vm2785_vm9 = vmand %vm2657_vm7, %vm2689_vm8  ;;  %v1841_v35 = vsub.f32 %v5573_v14, %v5428_v63  ;;  %vm2688_vm6 = vcmp.gt.f32.partialorder %v2448_v48, 0.0 }
  0x95   : > { %v5553_v53 = vpop.permute.xlu0 %2488  ;;  %2911 = vrot.lane.b32.xlu1 %v2847_v42, %s5177_s19  ;;  %v2849_v18 = vsel %vm2785_vm9, %v4877_v7, 0.0  ;;  %v5582_v42 = vrot.slane %v1945_v15, %v5426_v62  ;;  %v2142_v15 = vmul.f32 %v2110_v20, %v2110_v20  ;;  %v2425_v20 = vmul.f32 %v2393_v12, %v2393_v12 }
  0x96   : > { %7633 = vst [vmem:[#allocation28_spill] sm:$0xff] %v5553_v53  ;;  %v1873_v55 = vmul.f32 %v1841_v35, %v1841_v35  ;;  %v5622_v35 = vld [vmem:[%s5269_s16] sm:$0xff]  ;;  %v5642_v7 = vrot.slane %v2251_v24, %v5338_v22  ;;  %v1868_v12 = vmul.f32 %v1836_v33, %v1836_v33  ;;  %vm2656_vm5 = vcmp.gt.f32.partialorder %v5553_v53, 0.0 }
  0x97   : > { %v5597_v3 = vrot.slane %v5582_v42, %v5338_v22  ;;  %v1614_v43 = vrot.slane %v5622_v35, %v5341_v23  ;;  %v2144_v23 = vmul.f32 %v2112_v25, %v2112_v25  ;;  %vm5653_vm7 = vmand %vm2656_vm5, %vm2688_vm6  ;;  %v5666_v25 = vpop.permute.xlu1 %2499 }
  0x98   : > { %7645 = vst [vmem:[#allocation38_spill] sm:$0xff] %v5642_v7  ;;  %v2395_v33 = vsub.f32 %v5642_v7, %v5437_v4  ;;  %7651 = vst [vmem:[#allocation40_spill] sm:$0xff] %v5666_v25 }
  0x99   : > { %v5575_v60 = vpop.permute.xlu0 %2506  ;;  %2915 = vrot.lane.b32.xlu1 %v2849_v18, %s5177_s19  ;;  %7638 = vst [vmem:[#allocation33_spill] sm:$0xff] %v5597_v3  ;;  %v2117_v11 = vsub.f32 %v5597_v3, %v5430_v0  ;;  %v2418_v18 = vmul.f32 %v2386_v56, %v2386_v56  ;;  %v2174_v56 = vadd.f32 %v2142_v15, %v1866_v6 }
  0x9a   : > { %7636 = vst [vmem:[#allocation31_spill] sm:$0xff] %v5575_v60  ;;  %vm2659_vm10 = vcmp.gt.f32.partialorder %v5575_v60, 0.0  ;;  %v5638_v6 = vrot.slane %v1975_v54, %v5338_v22  ;;  %1616 = vrot.lane.b32.xlu0 %v1614_v43, %s5177_s19  ;;  %v2176_v48 = vadd.f32 %v2144_v23, %v1868_v12  ;;  %v1701_v23 = vcombine.high %v5549_v50, %v5549_v50 }
  0x9b   : > { %vm2787_vm12 = vmand %vm2659_vm10, %vm2691_vm11  ;;  %v2450_v9 = vadd.f32 %v2418_v18, %v2174_v56  ;;  %vm2658_vm10 = vcmp.gt.f32.partialorder %v5666_v25, 0.0 }
  0x9c   : > { %v2851_v2 = vsel %vm2787_vm12, %v4879_v47, 0.0  ;;  %v2149_v47 = vmul.f32 %v2117_v11, %v2117_v11  ;;  %v5635_v11 = vrot.slane %v1699_v21, %v5338_v22  ;;  %7644 = vst [vmem:[#allocation37_spill] sm:$0xff] %v5638_v6  ;;  %v2119_v24 = vsub.f32 %v5638_v6, %v5430_v0 }
  0x9d   : > { %v5593_v61 = vpop.permute.xlu0 %2517  ;;  %2919 = vrot.lane.b32.xlu1 %v2851_v2, %s5177_s19  ;;  %4886 = vrsqrt.f32 %v2450_v9  ;;  %vm2690_vm11 = vcmp.gt.f32.partialorder %v2450_v9, 0.0  ;;  %v1838_v21 = vsub.f32 %v5496_v59, %v5540_v45 }
  0x9e   : > { %7637 = vst [vmem:[#allocation32_spill] sm:$0xff] %v5593_v61  ;;  %vm2661_vm13 = vcmp.gt.f32.partialorder %v5593_v61, 0.0  ;;  %v2181_v2 = vadd.f32 %v2149_v47, %v1873_v55  ;;  %7643 = vst [vmem:[#allocation36_spill] sm:$0xff] %v5635_v11  ;;  %v1843_v54 = vsub.f32 %v5635_v11, %v5428_v63  ;;  %v2420_v47 = vmul.f32 %v2388_v36, %v2388_v36 }
  0x9f   : > { %vm5605_vm15 = vmand %vm2661_vm13, %vm2693_vm14  ;;  %v2151_v43 = vmul.f32 %v2119_v24, %v2119_v24  ;;  %v1977_v36 = vcombine.high %v5582_v42, %v5582_v42  ;;  %v2253_v55 = vcombine.high %v5585_v16, %v5585_v16  ;;  %v5683_v24 = vpop.permute.xlu1 %2510  ;;  %v2390_v42 = vsub.f32 %v5511_v13, %v5564_v58 }
  0xa0   : > { %v2853_v28 = vsel %vm5605_vm15, %v4881_v34, 0.0  ;;  %v2457_v18 = vadd.f32 %v2425_v20, %v2181_v2  ;;  %v4883_v34 = vpop.eup %4882  ;;  %v2427_v2 = vmul.f32 %v2395_v33, %v2395_v33  ;;  %v2452_v31 = vadd.f32 %v2420_v47, %v2176_v48  ;;  %7652 = vst [vmem:[#allocation41_spill] sm:$0xff] %v5683_v24  ;;  %vm5695_vm12 = vmand %vm2658_vm10, %vm2690_vm11 }
  0xa1   : > { %v5624_v32 = vpop.permute.xlu0 %2528  ;;  %2923 = vrot.lane.b32.xlu1 %v2853_v28, %s5177_s19  ;;  %v4885_v20 = vpop.eup %4884  ;;  %v1875_v28 = vmul.f32 %v1843_v54, %v1843_v54  ;;  %v2114_v54 = vsub.f32 %v5499_v1, %v5542_v46  ;;  %v5689_v50 = vrot.slane %v1977_v36, %v5338_v22  ;;  %v5700_v33 = vrot.slane %v2253_v55, %v5338_v22 }
  0xa2   : > { %7642 = vst [vmem:[#allocation35_spill] sm:$0xff] %v5624_v32  ;;  %vm2663_vm0 = vcmp.gt.f32.partialorder %v5624_v32, 0.0  ;;  %4888 = vrsqrt.f32 %v2457_v18  ;;  %v2848_v41 = vsel %vm5653_vm7, %v4885_v20, 0.0  ;;  %vm2697_vm9 = vcmp.gt.f32.partialorder %v2457_v18, 0.0 }
  0xa3   : > { %vm5648_vm4 = vmand %vm2663_vm0, %vm2695_vm1  ;;  %2913 = vrot.lane.b32.xlu0 %v2848_v41, %s5177_s19  ;;  %v2183_v12 = vadd.f32 %v2151_v43, %v1875_v28  ;;  %4890 = vrsqrt.f32 %v2452_v31  ;;  %v5686_v41 = vrot.slane %v1701_v23, %v5338_v22  ;;  %7654 = vst [vmem:[#allocation43_spill] sm:$0xff] %v5689_v50  ;;  %vm2660_vm13 = vcmp.gt.f32.partialorder %v5683_v24, 0.0 }
  0xa4   : > { %v2855_v56 = vsel %vm5648_vm4, %v4883_v34, 0.0  ;;  %7657 = vst [vmem:[#allocation44_spill] sm:$0xff] %v5700_v33  ;;  %v1870_v34 = vmul.f32 %v1838_v21, %v1838_v21  ;;  %v2121_v47 = vsub.f32 %v5689_v50, %v5430_v0  ;;  %vm2692_vm15 = vcmp.gt.f32.partialorder %v2452_v31, 0.0 }
  0xa5   : > { %v5646_v15 = vpop.permute.xlu0 %2539  ;;  %2927 = vrot.lane.b32.xlu1 %v2855_v56, %s5177_s19  ;;  %v2459_v9 = vadd.f32 %v2427_v2, %v2183_v12  ;;  %7653 = vst [vmem:[#allocation42_spill] sm:$0xff] %v5686_v41  ;;  %v1845_v48 = vsub.f32 %v5686_v41, %v5428_v63  ;;  %v2397_v28 = vsub.f32 %v5700_v33, %v5437_v4  ;;  %vm2788_vm4 = vmand %vm2660_vm13, %vm2692_vm15 }
  0xa6   : > { %7646 = vst [vmem:[#allocation39_spill] sm:$0xff] %v5646_v15  ;;  %vm2665_vm8 = vcmp.gt.f32.partialorder %v5646_v15, 0.0  ;;  %v2146_v43 = vmul.f32 %v2114_v54, %v2114_v54  ;;  %v2422_v2 = vmul.f32 %v2390_v42, %v2390_v42  ;;  %v2153_v55 = vmul.f32 %v2121_v47, %v2121_v47 }
  0xa7   : > { %4892 = vrsqrt.f32 %v2459_v9  ;;  %v4887_v20 = vpop.eup %4886  ;;  %vm5710_vm14 = vmand %vm2665_vm8, %vm2697_vm9  ;;  %v1877_v36 = vmul.f32 %v1845_v48, %v1845_v48  ;;  %v1709_v18 = vrot.slane %v5540_v45, %v5426_v62  ;;  %v2429_v37 = vmul.f32 %v2397_v28, %v2397_v28 }
  0xa8   : > { %v2850_v23 = vsel %vm5695_vm12, %v4887_v20, 0.0  ;;  %v2178_v30 = vadd.f32 %v2146_v43, %v1870_v34  ;;  %v1985_v13 = vrot.slane %v5542_v46, %v5426_v62  ;;  %v2261_v48 = vrot.slane %v5564_v58, %v5426_v62 }
  0xa9   : > { %v5716_v12 = vpop.permute.xlu0 %2550  ;;  %2917 = vrot.lane.b32.xlu0 %v2850_v23, %s5177_s19  ;;  %v2185_v42 = vadd.f32 %v2153_v55, %v1877_v36  ;;  %v5728_v16 = vrot.slane %v1709_v18, %v5426_v62  ;;  %vm2699_vm1 = vcmp.gt.f32.partialorder %v2459_v9, 0.0  ;;  %v1840_v43 = vsub.f32 %v5531_v38, %v5540_v45 }
  0xaa   : > { %7660 = vst [vmem:[#allocation45_spill] sm:$0xff] %v5716_v12  ;;  %vm2667_vm0 = vcmp.gt.f32.partialorder %v5716_v12, 0.0  ;;  %v2454_v34 = vadd.f32 %v2422_v2, %v2178_v30  ;;  %v5738_v47 = vrot.slane %v1985_v13, %v5426_v62  ;;  %v5745_v28 = vrot.slane %v2261_v48, %v5426_v62 }
  0xab   : > { %v2461_v20 = vadd.f32 %v2429_v37, %v2185_v42  ;;  %v5742_v56 = vrot.slane %v5728_v16, %v5338_v22  ;;  %vm5753_vm5 = vmand %vm2667_vm0, %vm2699_vm1  ;;  %v5757_v37 = vpop.permute.xlu1 %2521  ;;  %v1872_v51 = vmul.f32 %v1840_v43, %v1840_v43  ;;  %v2424_v43 = vmul.f32 %v2392_v39, %v2392_v39 }
  0xac   : > { %v4889_v21 = vpop.eup %4888  ;;  %4894 = vrsqrt.f32 %v2454_v34  ;;  %v5751_v31 = vrot.slane %v5738_v47, %v5338_v22  ;;  %7665 = vst [vmem:[#allocation48_spill] sm:$0xff] %v5757_v37  ;;  %v5766_v55 = vrot.slane %v5745_v28, %v5338_v22  ;;  %vm2662_vm6 = vcmp.gt.f32.partialorder %v5757_v37, 0.0 }
  0xad   : > { %v2857_v54 = vsel %vm5710_vm14, %v4889_v21, 0.0  ;;  %7661 = vst [vmem:[#allocation46_spill] sm:$0xff] %v5742_v56  ;;  %v4891_v9 = vpop.eup %4890  ;;  %4896 = vrsqrt.f32 %v2461_v20  ;;  %v1847_v23 = vsub.f32 %v5742_v56, %v5428_v63  ;;  %vm2694_vm7 = vcmp.gt.f32.partialorder %v2454_v34, 0.0 }
  0xae   : > { %2931 = vrot.lane.b32.xlu1 %v2857_v54, %s5177_s19  ;;  %7662 = vst [vmem:[#allocation47_spill] sm:$0xff] %v5751_v31  ;;  %v2852_v2 = vsel %vm2788_vm4, %v4891_v9, 0.0  ;;  %v2123_v36 = vsub.f32 %v5751_v31, %v5430_v0  ;;  %7666 = vst [vmem:[#allocation49_spill] sm:$0xff] %v5766_v55  ;;  %v5768_v54 = vpop.permute.xlu0 %2561  ;;  %v2116_v9 = vsub.f32 %v5535_v40, %v5542_v46  ;;  %vm2701_vm9 = vcmp.gt.f32.partialorder %v2461_v20, 0.0 }
  0xaf   : > { %2921 = vrot.lane.b32.xlu0 %v2852_v2, %s5177_s19  ;;  %7667 = vst [vmem:[#allocation50_spill] sm:$0xff] %v5768_v54  ;;  %v1879_v42 = vmul.f32 %v1847_v23, %v1847_v23  ;;  %v2399_v12 = vsub.f32 %v5766_v55, %v5437_v4  ;;  %vm2669_vm8 = vcmp.gt.f32.partialorder %v5768_v54, 0.0  ;;  %v1717_v32 = vcombine.high %v1709_v18, %v1709_v18  ;;  %vm5783_vm10 = vmand %vm2662_vm6, %vm2694_vm7 }
  0xb0   : > { %v2155_v26 = vmul.f32 %v2123_v36, %v2123_v36  ;;  %v2148_v23 = vmul.f32 %v2116_v9, %v2116_v9  ;;  %v1993_v30 = vcombine.high %v1985_v13, %v1985_v13  ;;  %vm5790_vm11 = vmand %vm2669_vm8, %vm2701_vm9 }
  0xb1   : > { %v4893_v21 = vpop.eup %4892  ;;  %v2431_v57 = vmul.f32 %v2399_v12, %v2399_v12  ;;  %v5788_v34 = vrot.slane %v1717_v32, %v5426_v62 }
  0xb2   : > { %v2859_v2 = vsel %vm5753_vm5, %v4893_v21, 0.0  ;;  %v2187_v15 = vadd.f32 %v2155_v26, %v1879_v42  ;;  %v2180_v24 = vadd.f32 %v2148_v23, %v1872_v51  ;;  %v2269_v21 = vcombine.high %v2261_v48, %v2261_v48  ;;  %v5800_v18 = vpop.permute.xlu0 %2572  ;;  %v5802_v48 = vpop.permute.xlu1 %2532 }
  0xb3   : > { %2935 = vrot.lane.b32.xlu1 %v2859_v2, %s5177_s19  ;;  %v5795_v12 = vrot.slane %v1993_v30, %v5426_v62  ;;  %7672 = vst [vmem:[#allocation51_spill] sm:$0xff] %v5800_v18  ;;  %7673 = vst [vmem:[#allocation52_spill] sm:$0xff] %v5802_v48  ;;  %v5806_v32 = vrot.slane %v5788_v34, %v5338_v22  ;;  %v1842_v42 = vsub.f32 %v5573_v14, %v5540_v45 }
  0xb4   : > { %v2463_v20 = vadd.f32 %v2431_v57, %v2187_v15  ;;  %v2456_v26 = vadd.f32 %v2424_v43, %v2180_v24  ;;  %v5798_v51 = vrot.slane %v2269_v21, %v5426_v62  ;;  %vm2671_vm12 = vcmp.gt.f32.partialorder %v5800_v18, 0.0 }
  0xb5   : > { %v1849_v9 = vsub.f32 %v5806_v32, %v5428_v63  ;;  %vm2664_vm13 = vcmp.gt.f32.partialorder %v5802_v48, 0.0  ;;  %v5822_v2 = vrot.slane %v5795_v12, %v5338_v22  ;;  %v1874_v43 = vmul.f32 %v1842_v42, %v1842_v42 }
  0xb6   : > { %v4895_v13 = vpop.eup %4894  ;;  %4898 = vrsqrt.f32 %v2463_v20  ;;  %v5826_v23 = vrot.slane %v5798_v51, %v5338_v22  ;;  %vm2703_vm14 = vcmp.gt.f32.partialorder %v2463_v20, 0.0  ;;  %v2118_v30 = vsub.f32 %v5597_v3, %v5542_v46 }
  0xb7   : > { %v4897_v57 = vpop.eup %4896  ;;  %v2854_v15 = vsel %vm5783_vm10, %v4895_v13, 0.0  ;;  %4900 = vrsqrt.f32 %v2456_v26  ;;  %7674 = vst [vmem:[#allocation53_spill] sm:$0xff] %v5822_v2  ;;  %v2394_v21 = vsub.f32 %v5601_v5, %v5564_v58  ;;  %v1881_v36 = vmul.f32 %v1849_v9, %v1849_v9  ;;  %vm5851_vm0 = vmand %vm2671_vm12, %vm2703_vm14 }
  0xb8   : > { %v2861_v24 = vsel %vm5790_vm11, %v4897_v57, 0.0  ;;  %2925 = vrot.lane.b32.xlu0 %v2854_v15, %s5177_s19  ;;  %7675 = vst [vmem:[#allocation54_spill] sm:$0xff] %v5826_v23  ;;  %v2125_v39 = vsub.f32 %v5822_v2, %v5430_v0  ;;  %v2401_v13 = vsub.f32 %v5826_v23, %v5437_v4  ;;  %v1747_v57 = vcombine.high %v5728_v16, %v5728_v16 }
  0xb9   : > { %2939 = vrot.lane.b32.xlu1 %v2861_v24, %s5177_s19  ;;  %vm2696_vm15 = vcmp.gt.f32.partialorder %v2456_v26, 0.0  ;;  %v2150_v15 = vmul.f32 %v2118_v30, %v2118_v30  ;;  %v2426_v24 = vmul.f32 %v2394_v21, %v2394_v21  ;;  %v2023_v42 = vcombine.high %v5738_v47, %v5738_v47 }
  0xba   : > { %v2157_v54 = vmul.f32 %v2125_v39, %v2125_v39  ;;  %v2433_v37 = vmul.f32 %v2401_v13, %v2401_v13  ;;  %v5841_v5 = vrot.slane %v1747_v57, %v5338_v22  ;;  %v2299_v9 = vcombine.high %v5745_v28, %v5745_v28  ;;  %vm5862_vm1 = vmand %vm2664_vm13, %vm2696_vm15 }
  0xbb   : > { %v2182_v61 = vadd.f32 %v2150_v15, %v1874_v43  ;;  %v5846_v25 = vrot.slane %v2023_v42, %v5338_v22  ;;  %v2025_v28 = vcombine.high %v5795_v12, %v5795_v12 }
  0xbc   : > { %7676 = vst [vmem:[#allocation55_spill] sm:$0xff] %v5841_v5  ;;  %v2189_v47 = vadd.f32 %v2157_v54, %v1881_v36  ;;  %v1851_v26 = vsub.f32 %v5841_v5, %v5428_v63  ;;  %v5858_v30 = vrot.slane %v2299_v9, %v5338_v22  ;;  %v1844_v36 = vsub.f32 %v5635_v11, %v5540_v45 }
  0xbd   : > { %7677 = vst [vmem:[#allocation56_spill] sm:$0xff] %v5846_v25  ;;  %v2458_v20 = vadd.f32 %v2426_v24, %v2182_v61  ;;  %v2127_v43 = vsub.f32 %v5846_v25, %v5430_v0  ;;  %v2120_v61 = vsub.f32 %v5638_v6, %v5542_v46  ;;  %v5876_v24 = vpop.permute.xlu0 %2583  ;;  %v2301_v6 = vcombine.high %v5798_v51, %v5798_v51 }
  0xbe   : > { %7680 = vst [vmem:[#allocation57_spill] sm:$0xff] %v5858_v30  ;;  %v2465_v39 = vadd.f32 %v2433_v37, %v2189_v47  ;;  %v1883_v13 = vmul.f32 %v1851_v26, %v1851_v26  ;;  %v2403_v54 = vsub.f32 %v5858_v30, %v5437_v4  ;;  %7683 = vst [vmem:[#allocation58_spill] sm:$0xff] %v5876_v24  ;;  %v5881_v47 = vpop.permute.xlu1 %2543  ;;  %vm2673_vm6 = vcmp.gt.f32.partialorder %v5876_v24, 0.0 }
  0xbf   : > { %4902 = vrsqrt.f32 %v2458_v20  ;;  %v2159_v42 = vmul.f32 %v2127_v43, %v2127_v43  ;;  %7684 = vst [vmem:[#allocation59_spill] sm:$0xff] %v5881_v47  ;;  %v571_v26 = vrot.slane %v5622_v35, %v5338_v22  ;;  %v2396_v43 = vsub.f32 %v5642_v7, %v5564_v58 }
  0xc0   : > { %v4899_v21 = vpop.eup %4898  ;;  %4904 = vrsqrt.f32 %v2465_v39  ;;  %v2435_v9 = vmul.f32 %v2403_v54, %v2403_v54  ;;  %v2152_v54 = vmul.f32 %v2120_v61, %v2120_v61  ;;  %vm2666_vm4 = vcmp.gt.f32.partialorder %v5881_v47, 0.0 }
  0xc1   : > { %v4901_v57 = vpop.eup %4900  ;;  %v2863_v15 = vsel %vm5851_vm0, %v4899_v21, 0.0  ;;  %v2191_v16 = vadd.f32 %v2159_v42, %v1883_v13  ;;  %v1749_v21 = vcombine.high %v5788_v34, %v5788_v34  ;;  %vm2698_vm5 = vcmp.gt.f32.partialorder %v2458_v20, 0.0  ;;  %v5905_v12 = vpop.permute.xlu0 %2594 }
  0xc2   : > { %2943 = vrot.lane.b32.xlu1 %v2863_v15, %s5177_s19  ;;  %v2856_v37 = vsel %vm5862_vm1, %v4901_v57, 0.0  ;;  %v1876_v15 = vmul.f32 %v1844_v36, %v1844_v36  ;;  %v5899_v13 = vrot.slane %v2025_v28, %v5338_v22  ;;  %vm2705_vm7 = vcmp.gt.f32.partialorder %v2465_v39, 0.0  ;;  %7688 = vst [vmem:[#allocation63_spill] sm:$0xff] %v5905_v12  ;;  %vm5915_vm8 = vmand %vm2666_vm4, %vm2698_vm5 }
  0xc3   : > { %2929 = vrot.lane.b32.xlu0 %v2856_v37, %s5177_s19  ;;  %v2467_v57 = vadd.f32 %v2435_v9, %v2191_v16  ;;  %v5896_v35 = vrot.slane %v1749_v21, %v5338_v22  ;;  %v5903_v34 = vrot.slane %v2301_v6, %v5338_v22  ;;  %v1846_v36 = vsub.f32 %v5686_v41, %v5540_v45  ;;  %vm5927_vm9 = vmand %vm2673_vm6, %vm2705_vm7 }
  0xc4   : > { %7686 = vst [vmem:[#allocation61_spill] sm:$0xff] %v5899_v13  ;;  %v2129_v20 = vsub.f32 %v5899_v13, %v5430_v0  ;;  %v2122_v42 = vsub.f32 %v5689_v50, %v5542_v46  ;;  %v2184_v6 = vadd.f32 %v2152_v54, %v1876_v15  ;;  %v2428_v61 = vmul.f32 %v2396_v43, %v2396_v43 }
  0xc5   : > { %7685 = vst [vmem:[#allocation60_spill] sm:$0xff] %v5896_v35  ;;  %4906 = vrsqrt.f32 %v2467_v57  ;;  %7687 = vst [vmem:[#allocation62_spill] sm:$0xff] %v5903_v34  ;;  %v1853_v51 = vsub.f32 %v5896_v35, %v5428_v63  ;;  %v2405_v37 = vsub.f32 %v5903_v34, %v5437_v4  ;;  %v2398_v63 = vsub.f32 %v5700_v33, %v5564_v58 }
  0xc6   : > { %v2161_v21 = vmul.f32 %v2129_v20, %v2129_v20  ;;  %v1878_v28 = vmul.f32 %v1846_v36, %v1846_v36  ;;  %v2154_v7 = vmul.f32 %v2122_v42, %v2122_v42  ;;  %vm2675_vm10 = vcmp.gt.f32.partialorder %v5905_v12, 0.0 }
  0xc7   : > { %v1885_v16 = vmul.f32 %v1853_v51, %v1853_v51  ;;  %vm2707_vm11 = vcmp.gt.f32.partialorder %v2467_v57, 0.0  ;;  %v2437_v4 = vmul.f32 %v2405_v37, %v2405_v37  ;;  %v2430_v48 = vmul.f32 %v2398_v63, %v2398_v63 }
  0xc8   : > { %v2186_v47 = vadd.f32 %v2154_v7, %v1878_v28  ;;  %v5937_v42 = vadd.f32 %v2428_v61, %v2184_v6  ;;  %v1702_v39 = vcombine.high %v5540_v45, %v5540_v45  ;;  %vm5946_vm12 = vmand %vm2675_vm10, %vm2707_vm11  ;;  %v5952_v6 = vpop.permute.xlu1 %2554 }
  0xc9   : > { %v4903_v15 = vpop.eup %4902  ;;  %v2193_v18 = vadd.f32 %v2161_v21, %v1885_v16  ;;  %7695 = vst [vmem:[#allocation64_spill] sm:$0xff] %v5952_v6  ;;  %vm2668_vm13 = vcmp.gt.f32.partialorder %v5952_v6, 0.0 }
  0xca   : > { %v4905_v54 = vpop.eup %4904  ;;  %v2858_v24 = vsel %vm5915_vm8, %v4903_v15, 0.0  ;;  %v5954_v61 = vadd.f32 %v2430_v48, %v2186_v47  ;;  %4908 = vrsqrt.f32 %v5937_v42  ;;  %vm2700_vm14 = vcmp.gt.f32.partialorder %v5937_v42, 0.0 }
  0xcb   : > { %v2865_v36 = vsel %vm5927_vm9, %v4905_v54, 0.0  ;;  %2933 = vrot.lane.b32.xlu0 %v2858_v24, %s5177_s19  ;;  %v5950_v24 = vadd.f32 %v2437_v4, %v2193_v18  ;;  %vm6038_vm4 = vmand %vm2668_vm13, %vm2700_vm14  ;;  %vm1401_vm8 = vcmask 523264  }
  0xcc   : > { %2947 = vrot.lane.b32.xlu1 %v2865_v36, %s5177_s19  ;;  %v5998_v3 = vpop.permute.xlu1 %2565  ;;  %vm2702_vm6 = vcmp.gt.f32.partialorder %v5954_v61, 0.0 }
  0xcd   : > { %4910 = vrsqrt.f32 %v5950_v24  ;;  %7697 = vst [vmem:[#allocation66_spill] sm:$0xff] %v5998_v3  ;;  %vm2709_vm0 = vcmp.gt.f32.partialorder %v5950_v24, 0.0  ;;  %vm2670_vm1 = vcmp.gt.f32.partialorder %v5998_v3, 0.0 }
  0xce   : > { %4912 = vrsqrt.f32 %v5954_v61  ;;  %vm6094_vm7 = vmand %vm2670_vm1, %vm2702_vm6 }
  0xcf   : > { %v4907_v16 = vpop.eup %4906 }
  0xd0   : > { %v2867_v18 = vsel %vm5946_vm12, %v4907_v16, 0.0 }
  0xd1   : > { %2951 = vrot.lane.b32.xlu1 %v2867_v18, %s5177_s19 }
  0xef   : > { %v5923_v9 = vpop.f32.mrb[0].mxu1 }
  0xf0   : > { %v798_v43 = vpop.f32.mrb[1].mxu1 }
  0xf1   : > { %v4653_v50 = vpop.f32.mrb[2].mxu1 }
  0xf2   : > { %v801_v20 = vpop.f32.mrb[3].mxu1 }
  0xf3   : > { %v622_v33 = vpop.f32.mrb[0].mxu0 }
  0xf4   : > { %v623_v53 = vadd.f32 %v622_v33, %v571_v26  ;;  %v4646_v51 = vpop.f32.mrb[1].mxu0 }
  0xf5   : > { %v625_v37 = vpop.f32.mrb[2].mxu0 }
  0xf6   : > { %v927_v15 = vcombine.high %v623_v53, %v623_v53  ;;  %v934_v7 = vrot.slane %v623_v53, %v5426_v62  ;;  %v626_v63 = vadd.f32 %v625_v37, %v571_v26  ;;  %v4647_v33 = vpop.f32.mrb[3].mxu0  ;;  %v5960_v26 = vpop.permute.xlu0 %2605  ;;  %v5976_v37 = vrot.slane %v1702_v39, %v5426_v62 }
  0xf7   : > { %7696 = vst [vmem:[#allocation65_spill] sm:$0xff] %v5960_v26  ;;  %v4656_v54 = vpop.f32.mrb[4].mxu1  ;;  %vm2677_vm15 = vcmp.gt.f32.partialorder %v5960_v26, 0.0 }
  0xf8   : > { %v941_v21 = vrot.slane %v927_v15, %v5426_v62  ;;  %v942_v28 = vcombine.high %v934_v7, %v934_v7  ;;  %v5958_v53 = vrot.slane %v626_v63, %v5426_v62  ;;  %v950_v57 = vrot.slane %v934_v7, %v5426_v62  ;;  %v814_v51 = vpop.f32.mrb[5].mxu1  ;;  %vm6049_vm5 = vmand %vm2677_vm15, %vm2709_vm0 }
  0xf9   : > { %v976_v15 = vcombine.high %v626_v63, %v626_v63  ;;  %v4657_v0 = vpop.f32.mrb[6].mxu1 }
  0xfa   : > { %v964_v4 = vrot.slane %v942_v28, %v5426_v62  ;;  %v943_v36 = vcombine.high %v941_v21, %v941_v21  ;;  %v1028_v7 = vrot.slane %v950_v57, %v5338_v22  ;;  %v972_v33 = vcombine.high %v950_v57, %v950_v57  ;;  %v817_v47 = vpop.f32.mrb[7].mxu1 }
  0xfb   : > { %v991_v16 = vcombine.high %v5958_v53, %v5958_v53  ;;  %v957_v12 = vrot.slane %v941_v21, %v5426_v62 }
  0xfc   : > { %v1032_v28 = vrot.slane %v964_v4, %v5338_v22  ;;  %v974_v18 = vcombine.high %v964_v4, %v964_v4  ;;  %v971_v48 = vrot.slane %v943_v36, %v5426_v62  ;;  %v5985_v39 = vadd.f32 %v1028_v7, %v798_v43 }
  0xfd   : > { %v5987_v63 = vadd.f32 %v1028_v7, %v801_v20  ;;  %v1036_v57 = vrot.slane %v972_v33, %v5338_v22  ;;  %v1044_v40 = vrot.slane %v957_v12, %v5338_v22  ;;  %v1013_v14 = vrot.slane %v991_v16, %v5426_v62 }
  0xfe   : > { %v5992_v60 = vadd.f32 %v5923_v9, %v1032_v28  ;;  %v5994_v52 = vadd.f32 %v4653_v50, %v1032_v28  ;;  %v1040_v19 = vrot.slane %v974_v18, %v5338_v22  ;;  %v1048_v4 = vrot.slane %v971_v48, %v5338_v22 }
  0xff   : > { %v4470_v43 = vmul.f32 -1.442695, %v5985_v39  ;;  %v4471_v20 = vmul.f32 -1.442695, %v5987_v63  ;;  %v6002_v36 = vadd.f32 %v1036_v57, %v814_v51  ;;  %v6004_v7 = vadd.f32 %v1036_v57, %v817_v47  ;;  %v4660_v18 = vpop.f32.mrb[8].mxu1  ;;  %v4909_v47 = vpop.eup %4908 }
 0x100   : > { %v4472_v21 = vmul.f32 -1.442695, %v5992_v60  ;;  %v4473_v9 = vmul.f32 -1.442695, %v5994_v52  ;;  %v6008_v50 = vadd.f32 %v4656_v54, %v1040_v19  ;;  %v6010_v33 = vadd.f32 %v4657_v0, %v1040_v19  ;;  %v830_v19 = vpop.f32.mrb[9].mxu1  ;;  %v4911_v49 = vpop.eup %4910 }
 0x101   : > { %v6013_v28 = vrot.slane %v976_v15, %v5426_v62  ;;  %4914 = vpow2.f32 %v4470_v43  ;;  %v4474_v54 = vmul.f32 -1.442695, %v6002_v36  ;;  %v6020_v57 = vadd.f32 %v4660_v18, %v1048_v4  ;;  %v4661_v43 = vpop.f32.mrb[10].mxu1  ;;  %v6029_v59 = vpop.eup %4912 }
 0x102   : > { %4916 = vpow2.f32 %v4472_v21  ;;  %v4476_v51 = vmul.f32 -1.442695, %v6008_v50  ;;  %v4477_v15 = vmul.f32 -1.442695, %v6010_v33  ;;  %v6023_v0 = vadd.f32 %v1044_v40, %v830_v19  ;;  %v833_v21 = vpop.f32.mrb[11].mxu1 }
 0x103   : > { %4918 = vpow2.f32 %v4473_v9  ;;  %v975_v1 = vcombine.high %v971_v48, %v971_v48  ;;  %v4475_v17 = vmul.f32 -1.442695, %v6004_v7  ;;  %v6026_v29 = vadd.f32 %v4661_v43, %v1048_v4 }
 0x104   : > { %4920 = vpow2.f32 %v4471_v20  ;;  %v4480_v9 = vmul.f32 -1.442695, %v6020_v57  ;;  %v6032_v18 = vadd.f32 %v1044_v40, %v833_v21  ;;  %v973_v19 = vcombine.high %v957_v12, %v957_v12 }
 0x105   : > { %4922 = vpow2.f32 %v4476_v51  ;;  %v4478_v4 = vmul.f32 -1.442695, %v6023_v0  ;;  %v999_v16 = vrot.slane %v5958_v53, %v5426_v62  ;;  %v4481_v12 = vmul.f32 -1.442695, %v6026_v29 }
 0x106   : > { %4924 = vpow2.f32 %v4474_v54  ;;  %v1056_v42 = vrot.slane %v975_v1, %v5338_v22  ;;  %v7702_v20 = vcombine.high %v5542_v46, %v5542_v46  ;;  %v4479_v24 = vmul.f32 -1.442695, %v6032_v18 }
 0x107   : > { %4926 = vpow2.f32 %v4477_v15  ;;  %v992_v51 = vcombine.high %v6013_v28, %v6013_v28  ;;  %v2860_v54 = vsel %vm6038_vm4, %v4909_v47, 0.0  ;;  %v4664_v15 = vpop.f32.mrb[12].mxu1  ;;  %v1052_v43 = vrot.slane %v973_v19, %v5338_v22 }
 0x108   : > { %v6060_v53 = vrot.slane %v7702_v20, %v5426_v62  ;;  %4928 = vpow2.f32 %v4475_v17  ;;  %v1023_v1 = vcombine.high %v1013_v14, %v1013_v14  ;;  %2937 = vrot.lane.b32.xlu0 %v2860_v54, %s5177_s19  ;;  %v2869_v46 = vsel %vm6049_vm5, %v4911_v49, 0.0  ;;  %v846_v21 = vpop.f32.mrb[13].mxu1 }
 0x109   : > { %4930 = vpow2.f32 %v4480_v9  ;;  %v6071_v17 = vadd.f32 %v4664_v15, %v1056_v42  ;;  %v1021_v20 = vcombine.high %v999_v16, %v999_v16  ;;  %v6075_v26 = vrot.slane %v6013_v28, %v5426_v62  ;;  %2955 = vrot.lane.b32.xlu1 %v2869_v46, %s5177_s19  ;;  %v4665_v19 = vpop.f32.mrb[14].mxu1 }
 0x10a   : > { %4932 = vpow2.f32 %v4478_v4  ;;  %v6078_v9 = vadd.f32 %v1052_v43, %v846_v21  ;;  %v1064_v48 = vrot.slane %v1013_v14, %v5338_v22  ;;  %v6083_v49 = vrot.slane %v5976_v37, %v5426_v62  ;;  %v849_v28 = vpop.f32.mrb[15].mxu1 }
 0x10b   : > { %v4915_v47 = vpop.eup %4914  ;;  %4934 = vpow2.f32 %v4481_v12  ;;  %v6085_v54 = vadd.f32 %v4665_v19, %v1056_v42  ;;  %v6088_v15 = vrot.slane %v992_v51, %v5426_v62  ;;  %v6098_v21 = vadd.f32 %v1052_v43, %v849_v28 }
 0x10c   : > { %v4917_v4 = vpop.eup %4916  ;;  %v1233_v40 = vadd.f32 1.0, %v4915_v47  ;;  %4936 = vpow2.f32 %v4479_v24  ;;  %v1060_v24 = vrot.slane %v999_v16, %v5338_v22  ;;  %v6102_v42 = vrot.slane %v1023_v1, %v5338_v22 }
 0x10d   : > { %v4919_v14 = vpop.eup %4918  ;;  %v1235_v46 = vadd.f32 1.0, %v4917_v4  ;;  %v6105_v61 = vrot.slane %v1021_v20, %v5338_v22  ;;  %v6109_v19 = vrot.slane %v6075_v26, %v5338_v22  ;;  %v2862_v16 = vsel %vm6094_vm7, %v6029_v59, 0.0 }
 0x10e   : > { %v4921_v47 = vpop.eup %4920  ;;  %4938 = vrcp.f32 %v1233_v40  ;;  %v1236_v51 = vadd.f32 1.0, %v4919_v14  ;;  %v6118_v20 = vrot.slane %v6088_v15, %v5338_v22  ;;  %2941 = vrot.lane.b32.xlu0 %v2862_v16, %s5177_s19  ;;  %v6123_v28 = vrot.slane %v6083_v49, %v5338_v22 }
 0x10f   : > { %v4923_v3 = vpop.eup %4922  ;;  %4940 = vrcp.f32 %v1235_v46  ;;  %v1234_v4 = vadd.f32 1.0, %v4921_v47  ;;  %v4668_v47 = vpop.f32.mrb[16].mxu1  ;;  %v4484_v16 = vmul.f32 -1.442695, %v6071_v17 }
 0x110   : > { %v4925_v1 = vpop.eup %4924  ;;  %4942 = vrcp.f32 %v1236_v51  ;;  %v1239_v40 = vadd.f32 1.0, %v4923_v3  ;;  %7705 = vst [vmem:[#allocation67_spill] sm:$0xff] %v6123_v28  ;;  %v6129_v3 = vrot.slane %v6060_v53, %v5426_v62  ;;  %v6132_v43 = vadd.f32 %v4668_v47, %v1064_v48  ;;  %v862_v6 = vpop.f32.mrb[17].mxu1 }
 0x111   : > { %v4927_v14 = vpop.eup %4926  ;;  %4944 = vrcp.f32 %v1234_v4  ;;  %v1237_v46 = vadd.f32 1.0, %v4925_v1  ;;  %v4482_v1 = vmul.f32 -1.442695, %v6078_v9  ;;  %v6135_v27 = vadd.f32 %v1060_v24, %v862_v6  ;;  %v4669_v59 = vpop.f32.mrb[18].mxu1 }
 0x112   : > { %7706 = vst [vmem:[#allocation68_spill] sm:$0xff] %v6129_v3  ;;  %v4929_v12 = vpop.eup %4928  ;;  %4946 = vrcp.f32 %v1239_v40  ;;  %v1240_v51 = vadd.f32 1.0, %v4927_v14  ;;  %v6137_v38 = vadd.f32 %v4669_v59, %v1064_v48  ;;  %v865_v40 = vpop.f32.mrb[19].mxu1  ;;  %v6139_v14 = vld [vmem:[#allocation3] sm:$0xff]  ;;  %v6147_v6 = vrot.slane %v6129_v3, %v5338_v22 }
 0x113   : > { %v4931_v41 = vpop.eup %4930  ;;  %4948 = vrcp.f32 %v1237_v46  ;;  %v1238_v4 = vadd.f32 1.0, %v4929_v12  ;;  %v1855_v47 = vsub.f32 %v6123_v28, %v6139_v14  ;;  %v6143_v12 = vadd.f32 %v1060_v24, %v865_v40 }
 0x114   : > { %v4933_v11 = vpop.eup %4932  ;;  %4950 = vrcp.f32 %v1240_v51  ;;  %v1243_v10 = vadd.f32 1.0, %v4931_v41  ;;  %7707 = vst [vmem:[#allocation69_spill] sm:$0xff] %v6147_v6  ;;  %v4485_v48 = vmul.f32 -1.442695, %v6085_v54  ;;  %v4483_v59 = vmul.f32 -1.442695, %v6098_v21 }
 0x115   : > { %v4935_v44 = vpop.eup %4934  ;;  %4952 = vrcp.f32 %v1238_v4  ;;  %v1241_v46 = vadd.f32 1.0, %v4933_v11  ;;  %v7708_v11 = vcombine.high %v5564_v58, %v5564_v58  ;;  %v1848_v4 = vsub.f32 %v5742_v56, %v5540_v45  ;;  %v6165_v58 = vld [vmem:[#allocation3 + $0x10] sm:$0xff] }
 0x116   : > { %v4937_v51 = vpop.eup %4936  ;;  %4954 = vrcp.f32 %v1243_v10  ;;  %v1244_v41 = vadd.f32 1.0, %v4935_v44  ;;  %v4488_v10 = vmul.f32 -1.442695, %v6132_v43  ;;  %v4486_v44 = vmul.f32 -1.442695, %v6135_v27 }
 0x117   : > { %4956 = vrcp.f32 %v1241_v46  ;;  %v1242_v8 = vadd.f32 1.0, %v4937_v51  ;;  %v6155_v24 = vrot.slane %v7708_v11, %v5426_v62  ;;  %v4489_v28 = vmul.f32 -1.442695, %v6137_v38  ;;  %v4672_v51 = vpop.f32.mrb[20].mxu1 }
 0x118   : > { %v4939_v40 = vpop.eup %4938  ;;  %4958 = vrcp.f32 %v1244_v41  ;;  %v4487_v46 = vmul.f32 -1.442695, %v6143_v12  ;;  %v6163_v13 = vmul.f32 %v1855_v47, %v1855_v47  ;;  %v2131_v45 = vsub.f32 %v6147_v6, %v6165_v58 }
 0x119   : > { %v4941_v34 = vpop.eup %4940  ;;  %4960 = vrcp.f32 %v1242_v8  ;;  %v1329_v56 = vmul.f32 %v4939_v40, %v5985_v39  ;;  %v6172_v35 = vadd.f32 %v4672_v51, %v6102_v42  ;;  %v878_v8 = vpop.f32.mrb[21].mxu1  ;;  %v6180_v6 = vrot.slane %v6155_v24, %v5426_v62 }
 0x11a   : > { %v4943_v11 = vpop.eup %4942  ;;  %v1331_v41 = vmul.f32 %v4941_v34, %v5992_v60  ;;  %4962 = vpow2.f32 %v4484_v16  ;;  %v6176_v47 = vadd.f32 %v6105_v61, %v878_v8  ;;  %v4673_v5 = vpop.f32.mrb[22].mxu1  ;;  %v6186_v40 = vmul.f32 %v1848_v4, %v1848_v4 }
 0x11b   : > { %v4945_v30 = vpop.eup %4944  ;;  %v1332_v25 = vmul.f32 %v4943_v11, %v5994_v52  ;;  %4964 = vpow2.f32 %v4482_v1  ;;  %v6184_v39 = vadd.f32 %v4673_v5, %v6102_v42  ;;  %v881_v16 = vpop.f32.mrb[23].mxu1  ;;  %v6191_v11 = vld [vmem:[#allocation3 + $0x18] sm:$0xff]  ;;  %v4492_v5 = vmul.f32 -1.442695, %v6172_v35 }
 0x11c   : > { %v4947_v60 = vpop.eup %4946  ;;  %v1330_v34 = vmul.f32 %v4945_v30, %v5987_v63  ;;  %4966 = vpow2.f32 %v4485_v48  ;;  %v2124_v8 = vsub.f32 %v5751_v31, %v6191_v11 }
 0x11d   : > { %v4949_v52 = vpop.eup %4948  ;;  %v1362_v1 = vpack.c.bf16 %v1332_v25, %v1331_v41  ;;  %v6189_v51 = vmul.f32 %v4947_v60, %v6008_v50  ;;  %4968 = vpow2.f32 %v4483_v59  ;;  %v4490_v25 = vmul.f32 -1.442695, %v6176_v47 }
 0x11e   : > { %v4951_v3 = vpop.eup %4950  ;;  %v1361_v30 = vpack.c.bf16 %v1330_v34, %v1329_v56  ;;  %v1333_v63 = vmul.f32 %v4949_v52, %v6002_v36  ;;  %4970 = vpow2.f32 %v4488_v10  ;;  %v6200_v50 = vadd.f32 %v6105_v61, %v881_v16 }
 0x11f   : > { %v4953_v42 = vpop.eup %4952  ;;  %v1336_v48 = vmul.f32 %v4951_v3, %v6010_v33  ;;  %4972 = vpow2.f32 %v4486_v44  ;;  %v4493_v56 = vmul.f32 -1.442695, %v6184_v39  ;;  %v2163_v36 = vmul.f32 %v2131_v45, %v2131_v45  ;;  %v4676_v3 = vpop.f32.mrb[24].mxu1 }
 0x120   : > { %v4955_v59 = vpop.eup %4954  ;;  %v1334_v4 = vmul.f32 %v4953_v42, %v6004_v7  ;;  %4974 = vpow2.f32 %v4489_v28  ;;  %4690 = vmatprep.mubr.msk.bf16.mxu0 %vm1401_vm8, %v1361_v30  ;;  %v4491_v33 = vmul.f32 -1.442695, %v6200_v50  ;;  %v6210_v61 = vrot.slane %v6180_v6, %v5338_v22  ;;  %v894_v60 = vpop.f32.mrb[25].mxu1 }
 0x121   : > { %v4957_v10 = vpop.eup %4956  ;;  %v1364_v41 = vpack.c.bf16 %v1336_v48, %v6189_v51  ;;  %4976 = vpow2.f32 %v4487_v46  ;;  %4691 = vmatmul.mubr.msk.bf16.vlgmr.msra.gmra.mrb[4].mxu0 %vm1401_vm8, %v1362_v1  ;;  %v6213_v44 = vmul.f32 %v4955_v59, %v6020_v57  ;;  %v6216_v45 = vadd.f32 %v4676_v3, %v6118_v20  ;;  %v4677_v1 = vpop.f32.mrb[26].mxu1  ;;  %v6233_v48 = vld [vmem:[#allocation3 + $0x28] sm:$0xff] }
 0x122   : > { %7709 = vst [vmem:[#allocation70_spill] sm:$0xff] %v6210_v61  ;;  %v4959_v7 = vpop.eup %4958  ;;  %v1363_v28 = vpack.c.bf16 %v1334_v4, %v1333_v63  ;;  %4978 = vpow2.f32 %v4492_v5  ;;  %v1337_v34 = vmul.f32 %v4957_v10, %v6023_v0  ;;  %v6223_v52 = vadd.f32 %v6109_v19, %v894_v60  ;;  %v897_v0 = vpop.f32.mrb[27].mxu1 }
 0x123   : > { %v4961_v46 = vpop.eup %4960  ;;  %v6220_v16 = vmul.f32 %v4959_v7, %v6026_v29  ;;  %4980 = vpow2.f32 %v4490_v25  ;;  %v4496_v30 = vmul.f32 -1.442695, %v6216_v45  ;;  %v6229_v63 = vadd.f32 %v4677_v1, %v6118_v20 }
 0x124   : > { %v4963_v51 = vpop.eup %4962  ;;  %v1338_v57 = vmul.f32 %v4961_v46, %v6032_v18  ;;  %4982 = vpow2.f32 %v4493_v56  ;;  %4694 = vmatprep.mubr.msk.bf16.mxu0 %vm1401_vm8, %v1363_v28  ;;  %v2400_v18 = vsub.f32 %v5766_v55, %v6233_v48  ;;  %v6237_v56 = vld [vmem:[#allocation3 + $0x20] sm:$0xff]  ;;  %v6242_v7 = vadd.f32 %v6109_v19, %v897_v0  ;;  %v7784_v55 = vld [vmem:[#allocation48_spill] sm:$0xff] }
 0x125   : > { %v4965_v5 = vpop.eup %4964  ;;  %v1366_v29 = vpack.c.bf16 %v6220_v16, %v6213_v44  ;;  %v1247_v42 = vadd.f32 1.0, %v4963_v51  ;;  %4984 = vpow2.f32 %v4491_v33  ;;  %v2407_v20 = vsub.f32 %v6210_v61, %v6237_v56 }
 0x126   : > { %v4967_v25 = vpop.eup %4966  ;;  %v1365_v59 = vpack.c.bf16 %v1338_v57, %v1337_v34  ;;  %v1245_v4 = vadd.f32 1.0, %v4965_v5  ;;  %4986 = vpow2.f32 %v4496_v30  ;;  %v2156_v33 = vmul.f32 %v2124_v8, %v2124_v8 }
 0x127   : > { %v4969_v10 = vpop.eup %4968  ;;  %4988 = vrcp.f32 %v1247_v42  ;;  %v1248_v3 = vadd.f32 1.0, %v4967_v25  ;;  %v7710_v46 = vcombine.high %v6088_v15, %v6088_v15  ;;  %v7711_v1 = vcombine.high %v6075_v26, %v6075_v26  ;;  %v4680_v19 = vpop.f32.mrb[28].mxu1 }
 0x128   : > { %v4971_v28 = vpop.eup %4970  ;;  %4990 = vrcp.f32 %v1245_v4  ;;  %v1246_v60 = vadd.f32 1.0, %v4969_v10  ;;  %v2195_v8 = vadd.f32 %v2163_v36, %v6163_v13  ;;  %v2432_v0 = vmul.f32 %v2400_v18, %v2400_v18  ;;  %v910_v25 = vpop.f32.mrb[29].mxu1 }
 0x129   : > { %v1088_v34 = vrot.slane %v7710_v46, %v5338_v22  ;;  %v1084_v51 = vrot.slane %v7711_v1, %v5338_v22  ;;  %v4973_v57 = vpop.eup %4972  ;;  %4992 = vrcp.f32 %v1248_v3  ;;  %v1251_v30 = vadd.f32 1.0, %v4971_v28  ;;  %4695 = vmatmul.mubr.msk.bf16.gmra.mrb[8].mxu0 %vm1401_vm8, %v1364_v41  ;;  %v4681_v28 = vpop.f32.mrb[30].mxu1 }
 0x12a   : > { %v4975_v5 = vpop.eup %4974  ;;  %4994 = vrcp.f32 %v1246_v60  ;;  %v1249_v42 = vadd.f32 1.0, %v4973_v57  ;;  %4698 = vmatprep.mubr.msk.bf16.mxu0 %vm1401_vm8, %v1365_v59  ;;  %v2439_v4 = vmul.f32 %v2407_v20, %v2407_v20  ;;  %v2188_v41 = vadd.f32 %v2156_v33, %v6186_v40  ;;  %v913_v59 = vpop.f32.mrb[31].mxu1 }
 0x12b   : > { %v6255_v15 = vadd.f32 %v4680_v19, %v1088_v34  ;;  %v4977_v26 = vpop.eup %4976  ;;  %4996 = vrcp.f32 %v1251_v30  ;;  %v1252_v10 = vadd.f32 1.0, %v4975_v5  ;;  %v6257_v3 = vadd.f32 %v1084_v51, %v910_v25 }
 0x12c   : > { %v4979_v46 = vpop.eup %4978  ;;  %4998 = vrcp.f32 %v1249_v42  ;;  %v1250_v13 = vadd.f32 1.0, %v4977_v26  ;;  %v4494_v36 = vmul.f32 -1.442695, %v6223_v52  ;;  %v6261_v18 = vadd.f32 %v4681_v28, %v1088_v34 }
 0x12d   : > { %v4981_v60 = vpop.eup %4980  ;;  %5000 = vrcp.f32 %v1252_v10  ;;  %v1255_v1 = vadd.f32 1.0, %v4979_v46  ;;  %v4497_v20 = vmul.f32 -1.442695, %v6229_v63  ;;  %v6264_v57 = vadd.f32 %v1084_v51, %v913_v59 }
 0x12e   : > { %v4983_v30 = vpop.eup %4982  ;;  %5002 = vrcp.f32 %v1250_v13  ;;  %v1253_v19 = vadd.f32 1.0, %v4981_v60  ;;  %v4495_v40 = vmul.f32 -1.442695, %v6242_v7  ;;  %v6267_v33 = vadd.f32 %v2439_v4, %v2195_v8 }
 0x12f   : > { %v4985_v5 = vpop.eup %4984  ;;  %5004 = vrcp.f32 %v1255_v1  ;;  %v1256_v42 = vadd.f32 1.0, %v4983_v30  ;;  %v4500_v34 = vmul.f32 -1.442695, %v6255_v15  ;;  %v6270_v25 = vadd.f32 %v2432_v0, %v2188_v41 }
 0x130   : > { %v4987_v26 = vpop.eup %4986  ;;  %5006 = vrcp.f32 %v1253_v19  ;;  %v1254_v10 = vadd.f32 1.0, %v4985_v5  ;;  %v1718_v51 = vcombine.high %v5976_v37, %v5976_v37  ;;  %v1994_v28 = vcombine.high %v6060_v53, %v6060_v53 }
 0x131   : > { %v4989_v46 = vpop.eup %4988  ;;  %5008 = vrcp.f32 %v1256_v42  ;;  %v4498_v8 = vmul.f32 -1.442695, %v6257_v3  ;;  %v4501_v4 = vmul.f32 -1.442695, %v6261_v18  ;;  %4699 = vmatmul.mubr.msk.bf16.gmra.mrb[12].mxu0 %vm1401_vm8, %v1366_v29  ;;  %v2270_v0 = vcombine.high %v6155_v24, %v6155_v24 }
 0x132   : > { %v4991_v41 = vpop.eup %4990  ;;  %5010 = vrcp.f32 %v1254_v10  ;;  %v4499_v37 = vmul.f32 -1.442695, %v6264_v57  ;;  %v6286_v53 = vrot.slane %v1718_v51, %v5426_v62  ;;  %v6289_v13 = vrot.slane %v1994_v28, %v5426_v62  ;;  %v6317_v10 = vpop.permute.xlu0 %2616 }
 0x133   : > { %v4993_v59 = vpop.eup %4992  ;;  %v1343_v60 = vmul.f32 %v4989_v46, %v6071_v17  ;;  %v1341_v44 = vmul.f32 %v4991_v41, %v6078_v9  ;;  %v1259_v16 = vadd.f32 1.0, %v4987_v26  ;;  %v6294_v29 = vrot.slane %v2270_v0, %v5426_v62  ;;  %v6310_v9 = vld [vmem:[#allocation3 + $0x8] sm:$0xff]  ;;  %7715 = vst [vmem:[#allocation74_spill] sm:$0xff] %v6317_v10 }
 0x134   : > { %v4995_v24 = vpop.eup %4994  ;;  %v1344_v1 = vmul.f32 %v4993_v59, %v6085_v54  ;;  %5012 = vpow2.f32 %v4494_v36  ;;  %v6299_v30 = vrot.slane %v6286_v53, %v5338_v22  ;;  %v6303_v19 = vrot.slane %v6289_v13, %v5338_v22 }
 0x135   : > { %v4997_v5 = vpop.eup %4996  ;;  %v1342_v17 = vmul.f32 %v4995_v24, %v6098_v21  ;;  %5014 = vpow2.f32 %v4497_v20  ;;  %v6308_v62 = vrot.slane %v6294_v29, %v5338_v22  ;;  %v1850_v54 = vsub.f32 %v5806_v32, %v6310_v9 }
 0x136   : > { %7712 = vst [vmem:[#allocation71_spill] sm:$0xff] %v6299_v30  ;;  %7713 = vst [vmem:[#allocation72_spill] sm:$0xff] %v6303_v19  ;;  %v4999_v36 = vpop.eup %4998  ;;  %v1368_v42 = vpack.c.bf16 %v1344_v1, %v1343_v60  ;;  %v6315_v26 = vmul.f32 %v4997_v5, %v6132_v43  ;;  %5016 = vpow2.f32 %v4495_v40  ;;  %v1857_v21 = vsub.f32 %v6299_v30, %v6139_v14 }
 0x137   : > { %7714 = vst [vmem:[#allocation73_spill] sm:$0xff] %v6308_v62  ;;  %v5001_v20 = vpop.eup %5000  ;;  %v1367_v51 = vpack.c.bf16 %v1342_v17, %v1341_v44  ;;  %v1345_v28 = vmul.f32 %v4999_v36, %v6135_v27  ;;  %5018 = vpow2.f32 %v4500_v34  ;;  %v2133_v46 = vsub.f32 %v6303_v19, %v6165_v58 }
 0x138   : > { %v5003_v0 = vpop.eup %5002  ;;  %v1348_v41 = vmul.f32 %v5001_v20, %v6137_v38  ;;  %5020 = vpow2.f32 %v4498_v8  ;;  %v1889_v43 = vmul.f32 %v1857_v21, %v1857_v21  ;;  %v2409_v40 = vsub.f32 %v6308_v62, %v6237_v56  ;;  %v6340_v21 = vpop.permute.xlu0 %2627 }
 0x139   : > { %v5005_v59 = vpop.eup %5004  ;;  %v1346_v60 = vmul.f32 %v5003_v0, %v6143_v12  ;;  %5022 = vpow2.f32 %v4501_v4  ;;  %4702 = vmatprep.mubr.msk.bf16.mxu0 %vm1401_vm8, %v1367_v51  ;;  %v2165_v44 = vmul.f32 %v2133_v46, %v2133_v46  ;;  %v2126_v27 = vsub.f32 %v5822_v2, %v6191_v11  ;;  %7716 = vst [vmem:[#allocation75_spill] sm:$0xff] %v6340_v21  ;;  %v7791_v2 = vld [vmem:[#allocation59_spill] sm:$0xff] }
 0x13a   : > { %v5007_v34 = vpop.eup %5006  ;;  %v1370_v24 = vpack.c.bf16 %v1348_v41, %v6315_v26  ;;  %5024 = vpow2.f32 %v4499_v37  ;;  %4703 = vmatmul.mubr.msk.bf16.gmra.mrb[16].mxu0 %vm1401_vm8, %v1368_v42  ;;  %v2441_v38 = vmul.f32 %v2409_v40, %v2409_v40  ;;  %v1882_v8 = vmul.f32 %v1850_v54, %v1850_v54  ;;  %v6349_v26 = vpop.permute.xlu1 %2576 }
 0x13b   : > { %v5009_v1 = vpop.eup %5008  ;;  %v1369_v5 = vpack.c.bf16 %v1346_v60, %v1345_v28  ;;  %v6334_v17 = vmul.f32 %v5005_v59, %v6172_v35  ;;  %5026 = vrsqrt.f32 %v6267_v33  ;;  %v2197_v12 = vadd.f32 %v2165_v44, %v1889_v43  ;;  %7717 = vst [vmem:[#allocation76_spill] sm:$0xff] %v6349_v26  ;;  %v7718_v60 = vld [vmem:[#allocation68_spill] sm:$0xff] }
 0x13c   : > { %v5011_v4 = vpop.eup %5010  ;;  %v6338_v36 = vmul.f32 %v5009_v1, %v6184_v39  ;;  %5028 = vrsqrt.f32 %v6270_v25  ;;  %v2158_v37 = vmul.f32 %v2126_v27, %v2126_v27  ;;  %v2402_v54 = vsub.f32 %v5826_v23, %v6233_v48  ;;  %v7783_v23 = vld [vmem:[#allocation35_spill] sm:$0xff] }
 0x13d   : > { %v1349_v42 = vmul.f32 %v5007_v34, %v6176_v47  ;;  %v1350_v35 = vmul.f32 %v5011_v4, %v6200_v50  ;;  %4706 = vmatprep.mubr.msk.bf16.mxu0 %vm1401_vm8, %v1369_v5  ;;  %vm2679_vm9 = vcmp.gt.f32.partialorder %v6317_v10, 0.0  ;;  %v2473_v39 = vadd.f32 %v2441_v38, %v2197_v12 }
 0x13e   : > { %v5013_v20 = vpop.eup %5012  ;;  %v1372_v51 = vpack.c.bf16 %v6338_v36, %v6334_v17  ;;  %5030 = vrcp.f32 %v1259_v16  ;;  %v2190_v28 = vadd.f32 %v2158_v37, %v1882_v8  ;;  %v2434_v46 = vmul.f32 %v2402_v54, %v2402_v54  ;;  %v7725_v54 = vld [vmem:[#allocation55_spill] sm:$0xff] }
 0x13f   : > { %v5015_v0 = vpop.eup %5014  ;;  %v1371_v41 = vpack.c.bf16 %v1350_v35, %v1349_v42  ;;  %v1257_v43 = vadd.f32 1.0, %v5013_v20  ;;  %vm2681_vm10 = vcmp.gt.f32.partialorder %v6340_v21, 0.0  ;;  %5032 = vrsqrt.f32 %v2473_v39 }
 0x140   : > { %v5017_v47 = vpop.eup %5016  ;;  %v1260_v50 = vadd.f32 1.0, %v5015_v0  ;;  %vm2711_vm11 = vcmp.gt.f32.partialorder %v6267_v33, 0.0  ;;  %vm2672_vm12 = vcmp.gt.f32.partialorder %v6349_v26, 0.0  ;;  %vm2704_vm13 = vcmp.gt.f32.partialorder %v6270_v25, 0.0 }
 0x141   : > { %v5019_v40 = vpop.eup %5018  ;;  %5034 = vrcp.f32 %v1257_v43  ;;  %v1258_v59 = vadd.f32 1.0, %v5017_v47  ;;  %v1748_v16 = vcombine.high %v6083_v49, %v6083_v49  ;;  %v2024_v44 = vcombine.high %v7718_v60, %v7718_v60  ;;  %vm6369_vm15 = vmand %vm2679_vm9, %vm2711_vm11 }
 0x142   : > { %v5021_v27 = vpop.eup %5020  ;;  %5036 = vrcp.f32 %v1260_v50  ;;  %v1263_v34 = vadd.f32 1.0, %v5019_v40  ;;  %4707 = vmatmul.mubr.msk.bf16.gmra.mrb[20].mxu0 %vm1401_vm8, %v1370_v24  ;;  %vm2713_vm14 = vcmp.gt.f32.partialorder %v2473_v39, 0.0  ;;  %v6362_v38 = vadd.f32 %v2434_v46, %v2190_v28  ;;  %vm6383_vm0 = vmand %vm2672_vm12, %vm2704_vm13  ;;  %v7731_v39 = vld [vmem:[#allocation57_spill] sm:$0xff] }
 0x143   : > { %v5023_v8 = vpop.eup %5022  ;;  %5038 = vrcp.f32 %v1258_v59  ;;  %v1261_v1 = vadd.f32 1.0, %v5021_v27  ;;  %4710 = vmatprep.mubr.msk.bf16.mxu0 %vm1401_vm8, %v1371_v41  ;;  %v6374_v5 = vrot.slane %v1748_v16, %v5338_v22  ;;  %v6377_v24 = vrot.slane %v2024_v44, %v5338_v22  ;;  %v6397_v41 = vpop.permute.xlu1 %2587  ;;  %vm6408_vm1 = vmand %vm2681_vm10, %vm2713_vm14  ;;  %v7730_v44 = vld [vmem:[#allocation56_spill] sm:$0xff] }
 0x144   : > { %v5025_v12 = vpop.eup %5024  ;;  %5040 = vrcp.f32 %v1263_v34  ;;  %v1264_v4 = vadd.f32 1.0, %v5023_v8  ;;  %v2300_v37 = vcombine.high %v6180_v6, %v6180_v6  ;;  %v1852_v42 = vsub.f32 %v7725_v54, %v6310_v9  ;;  %7726 = vst [vmem:[#allocation78_spill] sm:$0xff] %v6397_v41  ;;  %v7795_v54 = vld [vmem:[#allocation64_spill] sm:$0xff] }
 0x145   : > { %7721 = vst [vmem:[#allocation68_spill] sm:$0xff] %v6374_v5  ;;  %7722 = vst [vmem:[#allocation77_spill] sm:$0xff] %v6377_v24  ;;  %v5027_v35 = vpop.eup %5026  ;;  %5042 = vrcp.f32 %v1261_v1  ;;  %v1262_v20 = vadd.f32 1.0, %v5025_v12  ;;  %v1859_v28 = vsub.f32 %v6374_v5, %v6139_v14  ;;  %v2135_v25 = vsub.f32 %v6377_v24, %v6165_v58 }
 0x146   : > { %v5029_v46 = vpop.eup %5028  ;;  %5044 = vrcp.f32 %v1264_v4  ;;  %v2871_v0 = vsel %vm6369_vm15, %v5027_v35, 0.0  ;;  %v6400_v6 = vrot.slane %v2300_v37, %v5338_v22  ;;  %v1884_v43 = vmul.f32 %v1852_v42, %v1852_v42 }
 0x147   : > { %5046 = vrcp.f32 %v1262_v20  ;;  %2959 = vrot.lane.b32.xlu1 %v2871_v0, %s5177_s19  ;;  %v2864_v47 = vsel %vm6383_vm0, %v5029_v46, 0.0  ;;  %v1891_v40 = vmul.f32 %v1859_v28, %v1859_v28  ;;  %v2167_v59 = vmul.f32 %v2135_v25, %v2135_v25  ;;  %v6441_v20 = vpop.permute.xlu1 %2598 }
 0x148   : > { %7727 = vst [vmem:[#allocation79_spill] sm:$0xff] %v6400_v6  ;;  %v5031_v16 = vpop.eup %5030  ;;  %2945 = vrot.lane.b32.xlu0 %v2864_v47, %s5177_s19  ;;  %5048 = vrsqrt.f32 %v6362_v38  ;;  %v2411_v60 = vsub.f32 %v6400_v6, %v6237_v56  ;;  %v2128_v27 = vsub.f32 %v7730_v44, %v6191_v11  ;;  %v2404_v34 = vsub.f32 %v7731_v39, %v6233_v48  ;;  %v6445_v47 = vpop.permute.xlu0 %2638  ;;  %v7788_v44 = vld [vmem:[#allocation52_spill] sm:$0xff] }
 0x149   : > { %v5033_v8 = vpop.eup %5032  ;;  %v2199_v1 = vadd.f32 %v2167_v59, %v1891_v40  ;;  %v1750_v49 = vcombine.high %v6286_v53, %v6286_v53  ;;  %v2026_v12 = vcombine.high %v6289_v13, %v6289_v13  ;;  %vm2674_vm4 = vcmp.gt.f32.partialorder %v6397_v41, 0.0  ;;  %7734 = vst [vmem:[#allocation82_spill] sm:$0xff] %v6441_v20  ;;  %7735 = vst [vmem:[#allocation83_spill] sm:$0xff] %v6445_v47 }
 0x14a   : > { %4711 = vmatmul.mubr.msk.bf16.gmra.mrb[24].mxu0 %vm1401_vm8, %v1372_v51  ;;  %v2873_v4 = vsel %vm6408_vm1, %v5033_v8, 0.0  ;;  %v2443_v33 = vmul.f32 %v2411_v60, %v2411_v60  ;;  %v2160_v37 = vmul.f32 %v2128_v27, %v2128_v27  ;;  %v2436_v42 = vmul.f32 %v2404_v34, %v2404_v34 }
 0x14b   : > { %v5035_v35 = vpop.eup %5034  ;;  %2963 = vrot.lane.b32.xlu1 %v2873_v4, %s5177_s19  ;;  %v6433_v53 = vrot.slane %v1750_v49, %v5338_v22  ;;  %v6436_v13 = vrot.slane %v2026_v12, %v5338_v22  ;;  %v2302_v17 = vcombine.high %v6294_v29, %v6294_v29  ;;  %v1355_v51 = vmul.f32 %v5031_v16, %v6216_v45 }
 0x14c   : > { %v5037_v36 = vpop.eup %5036  ;;  %vm2706_vm5 = vcmp.gt.f32.partialorder %v6362_v38, 0.0  ;;  %v2475_v28 = vadd.f32 %v2443_v33, %v2199_v1  ;;  %v2192_v25 = vadd.f32 %v2160_v37, %v1884_v43  ;;  %v1353_v59 = vmul.f32 %v5035_v35, %v6223_v52  ;;  %v6472_v38 = vpop.permute.xlu1 %2609  ;;  %v7740_v33 = vld [vmem:[#allocation60_spill] sm:$0xff] }
 0x14d   : > { %7732 = vst [vmem:[#allocation80_spill] sm:$0xff] %v6433_v53  ;;  %7733 = vst [vmem:[#allocation81_spill] sm:$0xff] %v6436_v13  ;;  %v5039_v46 = vpop.eup %5038  ;;  %v1356_v0 = vmul.f32 %v5037_v36, %v6229_v63  ;;  %v1861_v50 = vsub.f32 %v6433_v53, %v6139_v14  ;;  %v2137_v29 = vsub.f32 %v6436_v13, %v6165_v58  ;;  %vm2683_vm6 = vcmp.gt.f32.partialorder %v6445_v47, 0.0 }
 0x14e   : > { %v6452_v40 = vrot.slane %v2302_v17, %v5338_v22  ;;  %v5041_v45 = vpop.eup %5040  ;;  %v1354_v16 = vmul.f32 %v5039_v46, %v6242_v7  ;;  %5050 = vrsqrt.f32 %v2475_v28  ;;  %v2468_v43 = vadd.f32 %v2436_v42, %v2192_v25  ;;  %vm6462_vm7 = vmand %vm2674_vm4, %vm2706_vm5  ;;  %7739 = vst [vmem:[#allocation85_spill] sm:$0xff] %v6472_v38  ;;  %v7741_v42 = vld [vmem:[#allocation61_spill] sm:$0xff] }
 0x14f   : > { %v5043_v60 = vpop.eup %5042  ;;  %v1374_v63 = vpack.c.bf16 %v1356_v0, %v1355_v51  ;;  %v1893_v27 = vmul.f32 %v1861_v50, %v1861_v50  ;;  %v2169_v34 = vmul.f32 %v2137_v29, %v2137_v29  ;;  %v1359_v14 = vmul.f32 %v5041_v45, %v6255_v15  ;;  %v7743_v50 = vld [vmem:[#allocation67_spill] sm:$0xff] }
 0x150   : > { %7736 = vst [vmem:[#allocation84_spill] sm:$0xff] %v6452_v40  ;;  %v5045_v8 = vpop.eup %5044  ;;  %v1373_v1 = vpack.c.bf16 %v1354_v16, %v1353_v59  ;;  %5052 = vrsqrt.f32 %v2468_v43  ;;  %v1357_v52 = vmul.f32 %v5043_v60, %v6257_v3  ;;  %v2413_v15 = vsub.f32 %v6452_v40, %v6237_v56  ;;  %v7742_v3 = vld [vmem:[#allocation62_spill] sm:$0xff]  ;;  %v7746_v59 = vld [vmem:[#allocation69_spill] sm:$0xff] }
 0x151   : > { %v5047_v58 = vpop.eup %5046  ;;  %v1360_v7 = vmul.f32 %v5045_v8, %v6261_v18  ;;  %v2201_v49 = vadd.f32 %v2169_v34, %v1893_v27  ;;  %v1854_v37 = vsub.f32 %v7740_v33, %v6310_v9  ;;  %v2130_v35 = vsub.f32 %v7741_v42, %v6191_v11  ;;  %v6504_v8 = vpop.permute.xlu1 %2620 }
 0x152   : > { %v5049_v12 = vpop.eup %5048  ;;  %v1358_v4 = vmul.f32 %v5047_v58, %v6264_v57  ;;  %4714 = vmatprep.mubr.msk.bf16.mxu0 %vm1401_vm8, %v1373_v1  ;;  %v2406_v18 = vsub.f32 %v7742_v3, %v6233_v48  ;;  %vm2715_vm9 = vcmp.gt.f32.partialorder %v2475_v28, 0.0  ;;  %v2445_v57 = vmul.f32 %v2413_v15, %v2413_v15  ;;  %7749 = vst [vmem:[#allocation86_spill] sm:$0xff] %v6504_v8  ;;  %v7780_v3 = vld [vmem:[#allocation41_spill] sm:$0xff] }
 0x153   : > { %v1376_v17 = vpack.c.bf16 %v1360_v7, %v1359_v14  ;;  %4715 = vmatmul.mubr.msk.bf16.gmra.mrb[28].mxu0 %vm1401_vm8, %v1374_v63  ;;  %v2866_v56 = vsel %vm6462_vm7, %v5049_v12, 0.0  ;;  %v1886_v51 = vmul.f32 %v1854_v37, %v1854_v37  ;;  %v2162_v25 = vmul.f32 %v2130_v35, %v2130_v35  ;;  %vm6490_vm12 = vmand %vm2683_vm6, %vm2715_vm9 }
 0x154   : > { %v1375_v36 = vpack.c.bf16 %v1358_v4, %v1357_v52  ;;  %2949 = vrot.lane.b32.xlu0 %v2866_v56, %s5177_s19  ;;  %v2438_v46 = vmul.f32 %v2406_v18, %v2406_v18  ;;  %vm2676_vm10 = vcmp.gt.f32.partialorder %v6441_v20, 0.0  ;;  %vm2708_vm11 = vcmp.gt.f32.partialorder %v2468_v43, 0.0  ;;  %v6498_v43 = vpop.permute.xlu0 %2649 }
 0x155   : > { %v2477_v0 = vadd.f32 %v2445_v57, %v2201_v49  ;;  %v1856_v29 = vsub.f32 %v7743_v50, %v6310_v9  ;;  %v2194_v45 = vadd.f32 %v2162_v25, %v1886_v51  ;;  %v2132_v16 = vsub.f32 %v7746_v59, %v6191_v11  ;;  %vm6500_vm13 = vmand %vm2676_vm10, %vm2708_vm11  ;;  %v6533_v28 = vpop.permute.xlu1 %2631 }
 0x156   : > { %4718 = vmatprep.mubr.msk.bf16.mxu0 %vm1401_vm8, %v1375_v36  ;;  %v2408_v60 = vsub.f32 %v6210_v61, %v6233_v48  ;;  %v1858_v58 = vsub.f32 %v6299_v30, %v6310_v9  ;;  %v2134_v7 = vsub.f32 %v6303_v19, %v6191_v11  ;;  %v2410_v49 = vsub.f32 %v6308_v62, %v6233_v48  ;;  %v7779_v62 = vld [vmem:[#allocation32_spill] sm:$0xff] }
 0x157   : > { %5054 = vrsqrt.f32 %v2477_v0  ;;  %v1888_v63 = vmul.f32 %v1856_v29, %v1856_v29  ;;  %v2470_v1 = vadd.f32 %v2438_v46, %v2194_v45  ;;  %v2164_v14 = vmul.f32 %v2132_v16, %v2132_v16 }
 0x158   : > { %v5051_v27 = vpop.eup %5050  ;;  %v2440_v22 = vmul.f32 %v2408_v60, %v2408_v60  ;;  %vm2685_vm14 = vcmp.gt.f32.partialorder %v6498_v43, 0.0  ;;  %v1890_v4 = vmul.f32 %v1858_v58, %v1858_v58  ;;  %vm2717_vm15 = vcmp.gt.f32.partialorder %v2477_v0, 0.0 }
 0x159   : > { %v2875_v52 = vsel %vm6490_vm12, %v5051_v27, 0.0  ;;  %5056 = vrsqrt.f32 %v2470_v1  ;;  %v2196_v12 = vadd.f32 %v2164_v14, %v1888_v63  ;;  %v2166_v35 = vmul.f32 %v2134_v7, %v2134_v7  ;;  %vm2813_vm4 = vmand %vm2685_vm14, %vm2717_vm15 }
 0x15a   : > { %v5053_v15 = vpop.eup %5052  ;;  %2967 = vrot.lane.b32.xlu1 %v2875_v52, %s5177_s19  ;;  %v2442_v18 = vmul.f32 %v2410_v49, %v2410_v49  ;;  %v1860_v57 = vsub.f32 %v6374_v5, %v6310_v9  ;;  %v2136_v36 = vsub.f32 %v6377_v24, %v6191_v11  ;;  %v2412_v51 = vsub.f32 %v6400_v6, %v6233_v48  ;;  %v6545_v49 = vpop.permute.xlu1 %2642 }
 0x15b   : > { %4719 = vmatmul.mubr.msk.bf16.gmra.mrb[32].mxu0 %vm1401_vm8, %v1376_v17  ;;  %v2868_v37 = vsel %vm6500_vm13, %v5053_v15, 0.0  ;;  %v2472_v56 = vadd.f32 %v2440_v22, %v2196_v12  ;;  %vm2678_vm0 = vcmp.gt.f32.partialorder %v6472_v38, 0.0  ;;  %v2198_v17 = vadd.f32 %v2166_v35, %v1890_v4 }
 0x15c   : > { %2953 = vrot.lane.b32.xlu0 %v2868_v37, %s5177_s19  ;;  %v1862_v25 = vsub.f32 %v6433_v53, %v6310_v9  ;;  %v2138_v46 = vsub.f32 %v6436_v13, %v6191_v11  ;;  %v7750_v29 = vmov 0.0   ;;  %vm2710_vm1 = vcmp.gt.f32.partialorder %v2470_v1, 0.0  ;;  %v7751_v1 = vld [vmem:[#allocation12_spill] sm:$0xff] }
 0x15d   : > { %4750 = vmatprep.mubr.msk.bf16.mxu0 %vm5175_vm2, %v7750_v29  ;;  %5058 = vrsqrt.f32 %v2472_v56  ;;  %v1892_v45 = vmul.f32 %v1860_v57, %v1860_v57  ;;  %v2168_v16 = vmul.f32 %v2136_v36, %v2136_v36  ;;  %v2474_v60 = vadd.f32 %v2442_v18, %v2198_v17  ;;  %vm2806_vm5 = vmand %vm2678_vm0, %vm2710_vm1  ;;  %v7752_v18 = vld [vmem:[#allocation18_spill] sm:$0xff]  ;;  %v7753_v36 = vld [vmem:[#allocation25_spill] sm:$0xff] }
 0x15e   : > { %v2444_v63 = vmul.f32 %v2412_v51, %v2412_v51  ;;  %v1894_v27 = vmul.f32 %v1862_v25, %v1862_v25  ;;  %v2170_v9 = vmul.f32 %v2138_v46, %v2138_v46  ;;  %v2414_v11 = vsub.f32 %v6452_v40, %v6233_v48  ;;  %v6553_v37 = vpop.permute.xlu1 %2653  ;;  %v7754_v25 = vld [vmem:[#allocation13_spill] sm:$0xff]  ;;  %v7778_v40 = vld [vmem:[#allocation40_spill] sm:$0xff] }
 0x15f   : > { %v2200_v34 = vadd.f32 %v2168_v16, %v1892_v45  ;;  %5060 = vrsqrt.f32 %v2474_v60  ;;  %vm2680_vm6 = vcmp.gt.f32.partialorder %v6504_v8, 0.0  ;;  %vm2712_vm7 = vcmp.gt.f32.partialorder %v2472_v56, 0.0  ;;  %v7755_v45 = vld [vmem:[#allocation36_spill] sm:$0xff]  ;;  %v7756_v16 = vld [vmem:[#allocation15_spill] sm:$0xff] }
 0x160   : > { %v2202_v22 = vadd.f32 %v2170_v9, %v1894_v27  ;;  %v2446_v52 = vmul.f32 %v2414_v11, %v2414_v11  ;;  %vm2682_vm9 = vcmp.gt.f32.partialorder %v6533_v28, 0.0  ;;  %vm2808_vm10 = vmand %vm2680_vm6, %vm2712_vm7  ;;  %vm2714_vm11 = vcmp.gt.f32.partialorder %v2474_v60, 0.0  ;;  %v7757_v60 = vld [vmem:[#allocation42_spill] sm:$0xff] }
 0x161   : > { %v5055_v14 = vpop.eup %5054  ;;  %v2476_v0 = vadd.f32 %v2444_v63, %v2200_v34  ;;  %vm2684_vm12 = vcmp.gt.f32.partialorder %v6545_v49, 0.0  ;;  %vm2810_vm13 = vmand %vm2682_vm9, %vm2714_vm11  ;;  %vm2686_vm0 = vcmp.gt.f32.partialorder %v6553_v37, 0.0  ;;  %v7758_v63 = vld [vmem:[#allocation21_spill] sm:$0xff]  ;;  %v7759_v27 = vld [vmem:[#allocation46_spill] sm:$0xff] }
 0x162   : > { %v2877_v58 = vsel %vm2813_vm4, %v5055_v14, 0.0  ;;  %v2478_v48 = vadd.f32 %v2446_v52, %v2202_v22  ;;  %v7760_v9 = vld [vmem:[#allocation30_spill] sm:$0xff]  ;;  %v7761_v34 = vld [vmem:[#allocation16_spill] sm:$0xff]  ;;  %v7763_v14 = vld [vmem:[#allocation19_spill] sm:$0xff]  ;;  %v6585_v22 = vpop.permute.xlu1 %2911 }
 0x163   : > { %2971 = vrot.lane.b32.xlu1 %v2877_v58, %s5177_s19  ;;  %v5057_v7 = vpop.eup %5056  ;;  %5062 = vrsqrt.f32 %v2476_v0  ;;  %vm2716_vm14 = vcmp.gt.f32.partialorder %v2476_v0, 0.0  ;;  %v7762_v11 = vld [vmem:[#allocation14_spill] sm:$0xff]  ;;  %v6589_v0 = vpop.permute.xlu0 %1616 }
 0x164   : > { %v2870_v15 = vsel %vm2806_vm5, %v5057_v7, 0.0  ;;  %5064 = vrsqrt.f32 %v2478_v48  ;;  %vm2812_vm15 = vmand %vm2684_vm12, %vm2716_vm14  ;;  %vm2718_vm1 = vcmp.gt.f32.partialorder %v2478_v48, 0.0  ;;  %v7764_v58 = vld [vmem:[#allocation22_spill] sm:$0xff]  ;;  %v7766_v7 = vld [vmem:[#allocation33_spill] sm:$0xff]  ;;  %vm3039_vm5 = vcmask 523520  }
 0x165   : > { %2957 = vrot.lane.b32.xlu0 %v2870_v15, %s5177_s19  ;;  %vm2814_vm4 = vmand %vm2686_vm0, %vm2718_vm1 }
 0x166   : > { %v6591_v52 = vpop.permute.xlu1 %2915 }
 0x167   : > { %3396 = vrot.lane.b32.xlu1 %v7751_v1, %s5177_s19  ;;  %v5059_v12 = vpop.eup %5058  ;;  %v6597_v48 = vpop.permute.xlu0 %2913 }
 0x168   : > { %v2872_v4 = vsel %vm2808_vm10, %v5059_v12, 0.0 }
 0x169   : > { %2961 = vrot.lane.b32.xlu0 %v2872_v4, %s5177_s19  ;;  %v5061_v35 = vpop.eup %5060 }
 0x16a   : > { %v2874_v56 = vsel %vm2810_vm13, %v5061_v35, 0.0  ;;  %v6599_v15 = vpop.permute.xlu1 %2919 }
 0x16b   : > { %3400 = vrot.lane.b32.xlu1 %v7752_v18, %s5177_s19  ;;  %v6601_v1 = vpop.permute.xlu0 %2917 }
 0x16d   : > { %v5063_v57 = vpop.eup %5062  ;;  %2965 = vrot.lane.b32.xlu0 %v2874_v56, %s5177_s19 }
 0x16e   : > { %v2876_v51 = vsel %vm2812_vm15, %v5063_v57, 0.0  ;;  %v5065_v17 = vpop.eup %5064  ;;  %v6603_v12 = vpop.permute.xlu1 %2923 }
 0x16f   : > { %3404 = vrot.lane.b32.xlu1 %v7753_v36, %s5177_s19  ;;  %v2878_v46 = vsel %vm2814_vm4, %v5065_v17, 0.0  ;;  %v6605_v4 = vpop.permute.xlu0 %2921 }
 0x171   : > { %2969 = vrot.lane.b32.xlu0 %v2876_v51, %s5177_s19 }
 0x172   : > { %v6607_v35 = vpop.permute.xlu1 %2927 }
 0x173   : > { %3558 = vrot.lane.b32.xlu1 %v7754_v25, %s5177_s19  ;;  %v6609_v18 = vpop.permute.xlu0 %2925 }
 0x175   : > { %2973 = vrot.lane.b32.xlu0 %v2878_v46, %s5177_s19 }
 0x176   : > { %v6611_v56 = vpop.permute.xlu1 %2931 }
 0x177   : > { %3408 = vrot.lane.b32.xlu1 %v7755_v45, %s5177_s19  ;;  %v6613_v57 = vpop.permute.xlu0 %2929 }
 0x179   : > { %3398 = vrot.lane.b32.xlu0 %v7756_v16, %s5177_s19 }
 0x17a   : > { %v6615_v36 = vpop.permute.xlu1 %2935 }
 0x17b   : > { %3410 = vrot.lane.b32.xlu1 %v7757_v60, %s5177_s19  ;;  %v6617_v51 = vpop.permute.xlu0 %2933 }
 0x17d   : > { %3402 = vrot.lane.b32.xlu0 %v7758_v63, %s5177_s19 }
 0x17e   : > { %v6619_v17 = vpop.permute.xlu1 %2939 }
 0x17f   : > { %3412 = vrot.lane.b32.xlu1 %v7759_v27, %s5177_s19  ;;  %v6621_v25 = vpop.permute.xlu0 %2937  ;;  %v7772_v27 = vld [vmem:[#allocation24_spill] sm:$0xff] }
 0x181   : > { %3406 = vrot.lane.b32.xlu0 %v7760_v9, %s5177_s19  ;;  %v7773_v9 = vld [vmem:[#allocation27_spill] sm:$0xff] }
 0x182   : > { %v6623_v46 = vpop.permute.xlu1 %2943 }
 0x183   : > { %3414 = vrot.lane.b32.xlu1 %v5806_v32, %s5177_s19  ;;  %v7765_v32 = vld [vmem:[#allocation26_spill] sm:$0xff]  ;;  %7767 = vst [vmem:[#allocation12_spill] sm:$0xff] %v6623_v46  ;;  %v6625_v45 = vpop.permute.xlu0 %2941 }
 0x184   : > { %7768 = vst [vmem:[#allocation18_spill] sm:$0xff] %v6625_v45 }
 0x185   : > { %3560 = vrot.lane.b32.xlu0 %v7761_v34, %s5177_s19  ;;  %v3196_v34 = vadd.f32 %v7773_v9, %v7772_v27 }
 0x186   : > { %v6627_v16 = vpop.permute.xlu1 %2947 }
 0x187   : > { %3712 = vrot.lane.b32.xlu1 %v7762_v11, %s5177_s19  ;;  %7769 = vst [vmem:[#allocation25_spill] sm:$0xff] %v6627_v16  ;;  %v5104_v16 = vld [vmem:[%s5269_s16] sm:$0xff] }
 0x189   : > { %3562 = vrot.lane.b32.xlu0 %v7763_v14, %s5177_s19  ;;  %v7775_v14 = vld [vmem:[#allocation31_spill] sm:$0xff] }
 0x18a   : > { %v6631_v63 = vpop.permute.xlu1 %2951 }
 0x18b   : > { %7771 = vst [vmem:[#allocation36_spill] sm:$0xff] %v6631_v63 }
 0x18d   : > { %3564 = vrot.lane.b32.xlu0 %v7764_v58, %s5177_s19  ;;  %v3197_v58 = vadd.f32 %v3196_v34, %v7775_v14  ;;  %v7786_v34 = vld [vmem:[#allocation39_spill] sm:$0xff] }
 0x18f   : > { %v3198_v61 = vadd.f32 %v3197_v58, %v7779_v62  ;;  %v7790_v58 = vld [vmem:[#allocation45_spill] sm:$0xff] }
 0x191   : > { %3566 = vrot.lane.b32.xlu0 %v7765_v32, %s5177_s19  ;;  %v6638_v32 = vpop.permute.xlu1 %2955  ;;  %v3199_v19 = vadd.f32 %v3198_v61, %v7783_v23  ;;  %v7794_v61 = vld [vmem:[#allocation50_spill] sm:$0xff] }
 0x192   : > { %7776 = vst [vmem:[#allocation42_spill] sm:$0xff] %v6638_v32 }
 0x193   : > { %v3200_v42 = vadd.f32 %v3199_v19, %v7786_v34  ;;  %v7797_v19 = vld [vmem:[#allocation51_spill] sm:$0xff] }
 0x195   : > { %3568 = vrot.lane.b32.xlu0 %v7766_v7, %s5177_s19  ;;  %v7777_v7 = vld [vmem:[#allocation28_spill] sm:$0xff] }
 0x196   : > { %v3211_v6 = vadd.f32 %v7778_v40, %v7777_v7 }
 0x198   : > { %v3212_v13 = vadd.f32 %v3211_v6, %v7780_v3  ;;  %v3201_v6 = vadd.f32 %v3200_v42, %v7790_v58  ;;  %v7801_v42 = vld [vmem:[#allocation58_spill] sm:$0xff] }
 0x19a   : > { %v3213_v59 = vadd.f32 %v3212_v13, %v7784_v55  ;;  %v3202_v13 = vadd.f32 %v3201_v6, %v7794_v61 }
 0x19c   : > { %v3214_v5 = vadd.f32 %v3213_v59, %v7788_v44  ;;  %v7799_v59 = vld [vmem:[#allocation66_spill] sm:$0xff] }
 0x19e   : > { %v3215_v31 = vadd.f32 %v3214_v5, %v7791_v2 }
 0x1b9   : > { %v6646_v24 = vpop.permute.xlu1 %2959 }
 0x1ba   : > { %v6629_v60 = vpop.permute.xlu0 %2945  ;;  %7782 = vst [vmem:[#allocation46_spill] sm:$0xff] %v6646_v24  ;;  %v3216_v24 = vadd.f32 %v3215_v31, %v7795_v54 }
 0x1bb   : > { %7770 = vst [vmem:[#allocation13_spill] sm:$0xff] %v6629_v60  ;;  %v7802_v60 = vld [vmem:[#allocation63_spill] sm:$0xff] }
 0x1bd   : > { %v6653_v53 = vpop.permute.xlu1 %2963 }
 0x1be   : > { %7787 = vst [vmem:[#allocation16_spill] sm:$0xff] %v6653_v53  ;;  %v3203_v53 = vadd.f32 %v3202_v13, %v7797_v19 }
 0x1c0   : > { %v3204_v5 = vadd.f32 %v3203_v53, %v7801_v42  ;;  %v7808_v42 = vld [vmem:[#allocation7_spill] sm:$0xff] }
 0x1c1   : > { %v6737_v45 = vrot.slane %v5104_v16, %v7808_v42 }
 0x1c2   : > { %v3205_v6 = vadd.f32 %v3204_v5, %v7802_v60 }
 0x1c6   : > { %v6635_v11 = vpop.permute.xlu0 %2949 }
 0x1c7   : > { %7774 = vst [vmem:[#allocation15_spill] sm:$0xff] %v6635_v11 }
 0x1cc   : > { %v6660_v50 = vpop.permute.xlu1 %2967 }
 0x1cd   : > { %7792 = vst [vmem:[#allocation19_spill] sm:$0xff] %v6660_v50 }
 0x1ce   : > { %v6644_v39 = vpop.permute.xlu0 %2953 }
 0x1cf   : > { %7781 = vst [vmem:[#allocation21_spill] sm:$0xff] %v6644_v39 }
 0x1d7   : > { %v6650_v29 = vpop.permute.xlu0 %2957 }
 0x1d8   : > { %7785 = vst [vmem:[#allocation30_spill] sm:$0xff] %v6650_v29  ;;  %v6669_v29 = vpop.permute.xlu1 %2971 }
 0x1d9   : > { %7798 = vst [vmem:[#allocation33_spill] sm:$0xff] %v6669_v29 }
 0x1db   : > { %v6656_v30 = vpop.permute.xlu0 %2961 }
 0x1dc   : > { %7789 = vst [vmem:[#allocation14_spill] sm:$0xff] %v6656_v30  ;;  %v3217_v30 = vadd.f32 %v3216_v24, %v7799_v59  ;;  %v3397_v32 = vpop.permute.xlu1 %3396 }
 0x1de   : > { %v3218_v50 = vadd.f32 %v3217_v30, %v6349_v26 }
 0x1df   : > { %v6662_v33 = vpop.permute.xlu0 %2965 }
 0x1e0   : > { %7793 = vst [vmem:[#allocation22_spill] sm:$0xff] %v6662_v33  ;;  %v3219_v31 = vadd.f32 %v3218_v50, %v6397_v41  ;;  %v6681_v19 = vpop.permute.xlu1 %3400 }
 0x1e2   : > { %v3220_v24 = vadd.f32 %v3219_v31, %v6441_v20 }
 0x1e3   : > { %v6666_v39 = vpop.permute.xlu0 %2969 }
 0x1e4   : > { %7796 = vst [vmem:[#allocation26_spill] sm:$0xff] %v6666_v39  ;;  %v7803_v39 = vld [vmem:[#allocation65_spill] sm:$0xff]  ;;  %v3221_v50 = vadd.f32 %v3220_v24, %v6472_v38  ;;  %v6692_v41 = vpop.permute.xlu1 %3404 }
 0x1e5   : > { %v3206_v13 = vadd.f32 %v3205_v6, %v7803_v39 }
 0x1e7   : > { %v6672_v63 = vpop.permute.xlu0 %2973 }
 0x1e8   : > { %7800 = vst [vmem:[#allocation24_spill] sm:$0xff] %v6672_v63  ;;  %v3207_v63 = vadd.f32 %v3206_v13, %v6317_v10 }
 0x1ea   : > { %v3208_v38 = vadd.f32 %v3207_v63, %v6340_v21 }
 0x1eb   : > { %v3399_v33 = vpop.permute.xlu0 %3398 }
 0x1ef   : > { %v6678_v11 = vpop.permute.xlu0 %3402 }
 0x1f3   : > { %v6685_v53 = vpop.permute.xlu0 %3406 }
 0x1f4   : > { %v4692_v29 = vpop.f32.mrb[4].mxu0 }
 0x1f5   : > { %v1621_v30 = vadd.f32 %v4692_v29, %v6589_v0  ;;  %v3104_v26 = vmul.f32 %v4692_v29, %v7773_v9  ;;  %v1484_v5 = vpop.f32.mrb[5].mxu0 }
 0x1f6   : > { %v1619_v60 = vadd.f32 %v6589_v0, %v1484_v5  ;;  %v3102_v6 = vmul.f32 %v7772_v27, %v1484_v5  ;;  %v4693_v39 = vpop.f32.mrb[6].mxu0 }
 0x1f7   : > { %v6695_v31 = vmul.f32 %v6591_v52, %v1621_v30  ;;  %v3135_v13 = vsel %vm584_vm3, %v3104_v26, 0.0  ;;  %v1622_v10 = vadd.f32 %v4693_v39, %v6589_v0  ;;  %v3105_v20 = vmul.f32 %v4693_v39, %v7778_v40  ;;  %v1487_v29 = vpop.f32.mrb[7].mxu0 }
 0x1f8   : > { %v6701_v9 = vmul.f32 %v6585_v22, %v1619_v60  ;;  %v3134_v24 = vsel %vm584_vm3, %v3102_v6, 0.0  ;;  %v1620_v27 = vadd.f32 %v6589_v0, %v1487_v29  ;;  %v3103_v5 = vmul.f32 %v7777_v7, %v1487_v29  ;;  %v3561_v6 = vpop.permute.xlu0 %3560 }
 0x1f9   : > { %7804 = vst [vmem:[#allocation27_spill] sm:$0xff] %v6695_v31  ;;  %v3446_v52 = vmul.f32 %v3399_v33, %v6695_v31  ;;  %v3136_v30 = vadd.f32 %v3135_v13, %v3134_v24  ;;  %v6709_v26 = vmul.f32 %v6601_v1, %v1622_v10  ;;  %v3166_v40 = vsel %vm584_vm3, %v3105_v20, 0.0  ;;  %v3559_v20 = vpop.permute.xlu1 %3558 }
 0x1fa   : > { %7805 = vst [vmem:[#allocation31_spill] sm:$0xff] %v6701_v9  ;;  %v3444_v39 = vmul.f32 %v3397_v32, %v6701_v9  ;;  %v6714_v22 = vmul.f32 %v6597_v48, %v1620_v27  ;;  %v3222_v60 = vadd.f32 %v3221_v50, %v6504_v8  ;;  %v3165_v10 = vsel %vm584_vm3, %v3103_v5, 0.0 }
 0x1fb   : > { %7806 = vst [vmem:[#allocation28_spill] sm:$0xff] %v6709_v26  ;;  %v3477_v7 = vsel %vm3039_vm5, %v3446_v52, 0.0  ;;  %v3447_v63 = vmul.f32 %v3399_v33, %v6709_v26  ;;  %v3209_v24 = vadd.f32 %v3208_v38, %v6445_v47  ;;  %v3167_v27 = vadd.f32 %v3166_v40, %v3165_v10 }
 0x1fc   : > { %7807 = vst [vmem:[#allocation40_spill] sm:$0xff] %v6714_v22  ;;  %v3476_v13 = vsel %vm3039_vm5, %v3444_v39, 0.0  ;;  %v3445_v1 = vmul.f32 %v3397_v32, %v6714_v22  ;;  %v4696_v29 = vpop.f32.mrb[8].mxu0  ;;  %v3606_v33 = vmul.f32 %v3559_v20, %v6701_v9  ;;  %v3607_v39 = vmul.f32 %v3559_v20, %v6714_v22  ;;  %v3563_v47 = vpop.permute.xlu0 %3562 }
 0x1fd   : > { %v3478_v21 = vadd.f32 %v3477_v7, %v3476_v13  ;;  %v3508_v48 = vsel %vm3039_vm5, %v3447_v63, 0.0  ;;  %v1500_v50 = vpop.f32.mrb[9].mxu0  ;;  %v3608_v5 = vmul.f32 %v3561_v6, %v6695_v31  ;;  %v3223_v32 = vadd.f32 %v3222_v60, %v6533_v28 }
 0x1fe   : > { %v3507_v52 = vsel %vm3039_vm5, %v3445_v1, 0.0  ;;  %v4697_v8 = vpop.f32.mrb[10].mxu0  ;;  %v3609_v38 = vmul.f32 %v3561_v6, %v6709_v26  ;;  %v3638_v63 = vsel %vm3039_vm5, %v3606_v33, 0.0  ;;  %v3669_v13 = vsel %vm3039_vm5, %v3607_v39, 0.0 }
 0x1ff   : > { %v3509_v46 = vadd.f32 %v3508_v48, %v3507_v52  ;;  %v1503_v7 = vpop.f32.mrb[11].mxu0  ;;  %v3639_v40 = vsel %vm3039_vm5, %v3608_v5, 0.0  ;;  %v1625_v20 = vadd.f32 %v4696_v29, %v6589_v0  ;;  %v3210_v60 = vadd.f32 %v3209_v24, %v6498_v43 }
 0x200   : > { %v3640_v10 = vadd.f32 %v3639_v40, %v3638_v63  ;;  %v3670_v1 = vsel %vm3039_vm5, %v3609_v38, 0.0  ;;  %v1623_v48 = vadd.f32 %v6589_v0, %v1500_v50  ;;  %v3224_v52 = vadd.f32 %v3223_v32, %v6545_v49 }
 0x201   : > { %v3671_v6 = vadd.f32 %v3670_v1, %v3669_v13  ;;  %v3106_v33 = vmul.f32 %v7775_v14, %v1500_v50  ;;  %v1626_v39 = vadd.f32 %v4697_v8, %v6589_v0  ;;  %v1624_v5 = vadd.f32 %v6589_v0, %v1503_v7 }
 0x202   : > { %v3041_v38 = vsel %vm3039_vm5, %v6695_v31, 0.0  ;;  %v3040_v16 = vsel %vm3039_vm5, %v6701_v9, 0.0  ;;  %v6750_v42 = vmul.f32 %v6599_v15, %v1623_v48  ;;  %v6753_v63 = vmul.f32 %v6603_v12, %v1625_v20 }
 0x203   : > { %v3137_v32 = vsel %vm584_vm3, %v3106_v33, 0.0  ;;  %v6757_v14 = vmul.f32 %v6605_v4, %v1624_v5  ;;  %v6760_v40 = vmul.f32 %v6737_v45, %v3210_v60  ;;  %v6765_v15 = vmul.f32 %v6609_v18, %v1626_v39  ;;  %v3565_v60 = vpop.permute.xlu0 %3564 }
 0x204   : > { %v4700_v24 = vpop.f32.mrb[12].mxu0  ;;  %v3138_v13 = vadd.f32 %v3137_v32, %v3136_v30  ;;  %v3448_v1 = vmul.f32 %v6681_v19, %v6750_v42  ;;  %v3225_v12 = vadd.f32 %v3224_v52, %v6553_v37  ;;  %v3042_v20 = vadd.f32 %v3041_v38, %v3040_v16 }
 0x205   : > { %v1516_v50 = vpop.f32.mrb[13].mxu0  ;;  %7809 = vst [vmem:[#allocation32_spill] sm:$0xff] %v6760_v40  ;;  %7810 = vst [vmem:[#allocation41_spill] sm:$0xff] %v6765_v15  ;;  %v3072_v4 = vsel %vm3039_vm5, %v6709_v26, 0.0  ;;  %v3071_v33 = vsel %vm3039_vm5, %v6714_v22, 0.0  ;;  %v3108_v30 = vmul.f32 %v4696_v29, %v7779_v62  ;;  %v3107_v18 = vmul.f32 %v7780_v3, %v1503_v7 }
 0x206   : > { %v6767_v48 = vpop.f32.mrb[14].mxu0  ;;  %v3479_v32 = vsel %vm3039_vm5, %v3448_v1, 0.0  ;;  %v3449_v39 = vmul.f32 %v6681_v19, %v6757_v14  ;;  %v3450_v52 = vmul.f32 %v6678_v11, %v6753_v63  ;;  %v3610_v16 = vmul.f32 %v3563_v47, %v6750_v42 }
 0x207   : > { %v1519_v5 = vpop.f32.mrb[15].mxu0  ;;  %v3480_v38 = vadd.f32 %v3479_v32, %v3478_v21  ;;  %v3611_v26 = vmul.f32 %v3563_v47, %v6757_v14  ;;  %v3168_v31 = vsel %vm584_vm3, %v3107_v18, 0.0  ;;  %v3612_v62 = vmul.f32 %v3565_v60, %v6753_v63 }
 0x208   : > { %v3510_v22 = vsel %vm3039_vm5, %v3449_v39, 0.0  ;;  %v3613_v29 = vmul.f32 %v3565_v60, %v6765_v15  ;;  %v3169_v3 = vadd.f32 %v3168_v31, %v3167_v27  ;;  %v3641_v19 = vsel %vm3039_vm5, %v3610_v16, 0.0 }
 0x209   : > { %v3511_v7 = vadd.f32 %v3510_v22, %v3509_v46  ;;  %v3672_v1 = vsel %vm3039_vm5, %v3611_v26, 0.0  ;;  %v3139_v21 = vsel %vm584_vm3, %v3108_v30, 0.0  ;;  %v3109_v32 = vmul.f32 %v4697_v8, %v7784_v55 }
 0x20a   : > { %v3642_v9 = vadd.f32 %v3641_v19, %v3640_v10  ;;  %v3673_v47 = vadd.f32 %v3672_v1, %v3671_v6  ;;  %v3481_v18 = vsel %vm3039_vm5, %v3450_v52, 0.0  ;;  %v3643_v39 = vsel %vm3039_vm5, %v3612_v62, 0.0 }
 0x20b   : > { %v3674_v40 = vsel %vm3039_vm5, %v3613_v29, 0.0  ;;  %v1627_v60 = vadd.f32 %v6589_v0, %v1516_v50  ;;  %v3110_v26 = vmul.f32 %v7783_v23, %v1516_v50  ;;  %v3140_v27 = vadd.f32 %v3139_v21, %v3138_v13 }
 0x20c   : > { %v3644_v46 = vadd.f32 %v3643_v39, %v3642_v9  ;;  %v3675_v22 = vadd.f32 %v3674_v40, %v3673_v47  ;;  %v3043_v55 = vsel %vm3039_vm5, %v6750_v42, 0.0  ;;  %v3451_v8 = vmul.f32 %v6678_v11, %v6765_v15 }
 0x20d   : > { %v6795_v31 = vpop.f32.mrb[16].mxu0  ;;  %v6803_v10 = vmul.f32 %v6607_v35, %v1627_v60  ;;  %v3482_v6 = vadd.f32 %v3481_v18, %v3480_v38  ;;  %v3074_v9 = vsel %vm3039_vm5, %v6757_v14, 0.0  ;;  %v1629_v40 = vadd.f32 %v4700_v24, %v6589_v0 }
 0x20e   : > { %v1532_v30 = vpop.f32.mrb[17].mxu0  ;;  %v3141_v23 = vsel %vm584_vm3, %v3110_v26, 0.0  ;;  %v1628_v50 = vadd.f32 %v6589_v0, %v1519_v5  ;;  %v6815_v16 = vmul.f32 %v6737_v45, %v3225_v12  ;;  %v3073_v11 = vadd.f32 %v3072_v4, %v3071_v33 }
 0x20f   : > { %7811 = vst [vmem:[#allocation35_spill] sm:$0xff] %v6803_v10  ;;  %v6805_v52 = vpop.f32.mrb[18].mxu0  ;;  %v3045_v35 = vsel %vm3039_vm5, %v6753_v63, 0.0  ;;  %v3142_v38 = vadd.f32 %v3141_v23, %v3140_v27  ;;  %v3044_v62 = vadd.f32 %v3043_v55, %v3042_v20  ;;  %v3170_v29 = vsel %vm584_vm3, %v3109_v32, 0.0 }
 0x210   : > { %v6812_v13 = vpop.f32.mrb[19].mxu0  ;;  %v3112_v19 = vmul.f32 %v4700_v24, %v7786_v34  ;;  %v3452_v1 = vmul.f32 %v6692_v41, %v6803_v10  ;;  %v3076_v21 = vsel %vm3039_vm5, %v6765_v15, 0.0  ;;  %v3075_v47 = vadd.f32 %v3074_v9, %v3073_v11 }
 0x211   : > { %v6826_v45 = vmul.f32 %v6613_v57, %v1628_v50  ;;  %v3111_v12 = vmul.f32 %v7788_v44, %v1519_v5  ;;  %v3512_v4 = vsel %vm3039_vm5, %v3451_v8, 0.0  ;;  %v6831_v20 = vmul.f32 %v6611_v56, %v1629_v40  ;;  %v3567_v44 = vpop.permute.xlu0 %3566 }
 0x212   : > { %v3483_v33 = vsel %vm3039_vm5, %v3452_v1, 0.0  ;;  %v3171_v34 = vadd.f32 %v3170_v29, %v3169_v3  ;;  %v3047_v24 = vsel %vm3039_vm5, %v6803_v10, 0.0  ;;  %v3143_v5 = vsel %vm584_vm3, %v3112_v19, 0.0 }
 0x213   : > { %7812 = vst [vmem:[#allocation48_spill] sm:$0xff] %v6826_v45  ;;  %v6836_v32 = vadd.f32 %v3483_v33, %v3482_v6  ;;  %v3172_v18 = vsel %vm584_vm3, %v3111_v12, 0.0  ;;  %v3453_v57 = vmul.f32 %v6692_v41, %v6826_v45  ;;  %v3046_v60 = vadd.f32 %v3045_v35, %v3044_v62 }
 0x214   : > { %v3173_v56 = vadd.f32 %v3172_v18, %v3171_v34  ;;  %v3513_v26 = vadd.f32 %v3512_v4, %v3511_v7  ;;  %v1630_v3 = vadd.f32 %v6767_v48, %v6589_v0  ;;  %v3614_v8 = vmul.f32 %v3567_v44, %v6803_v10 }
 0x215   : > { %v4708_v39 = vpop.f32.mrb[20].mxu0  ;;  %v3514_v55 = vsel %vm3039_vm5, %v3453_v57, 0.0  ;;  %v3615_v6 = vmul.f32 %v3567_v44, %v6826_v45  ;;  %v3454_v41 = vmul.f32 %v6685_v53, %v6831_v20  ;;  %v3048_v40 = vadd.f32 %v3047_v24, %v3046_v60 }
 0x216   : > { %v1548_v27 = vpop.f32.mrb[21].mxu0  ;;  %v3113_v23 = vmul.f32 %v6767_v48, %v7791_v2  ;;  %v6853_v7 = vadd.f32 %v3514_v55, %v3513_v26  ;;  %v3049_v11 = vsel %vm3039_vm5, %v6831_v20, 0.0  ;;  %v3645_v35 = vsel %vm3039_vm5, %v3614_v8, 0.0 }
 0x217   : > { %v6847_v9 = vpop.f32.mrb[22].mxu0  ;;  %v3676_v62 = vsel %vm3039_vm5, %v3615_v6, 0.0  ;;  %v1631_v29 = vadd.f32 %v6589_v0, %v1532_v30  ;;  %v3078_v19 = vsel %vm3039_vm5, %v6826_v45, 0.0  ;;  %v6862_v1 = vadd.f32 %v3645_v35, %v3644_v46 }
 0x218   : > { %v1551_v50 = vpop.f32.mrb[23].mxu0  ;;  %v6864_v12 = vadd.f32 %v3676_v62, %v3675_v22  ;;  %v1633_v2 = vadd.f32 %v6795_v31, %v6589_v0  ;;  %v6869_v48 = vmul.f32 %v6617_v51, %v1630_v3  ;;  %v3077_v4 = vadd.f32 %v3076_v21, %v3075_v47 }
 0x219   : > { %v6872_v33 = vmul.f32 %v6615_v36, %v1631_v29  ;;  %v3114_v34 = vmul.f32 %v7790_v58, %v1532_v30  ;;  %v6876_v24 = vsel %vm3039_vm5, %v3454_v41, 0.0  ;;  %v3174_v46 = vsel %vm584_vm3, %v3113_v23, 0.0  ;;  %v7813_v23 = vld [vmem:[#allocation18_spill] sm:$0xff] }
 0x21a   : > { %v3116_v22 = vmul.f32 %v6795_v31, %v7794_v61  ;;  %v3050_v18 = vadd.f32 %v3049_v11, %v3048_v40  ;;  %v3079_v57 = vadd.f32 %v3078_v19, %v3077_v4  ;;  %v3144_v44 = vadd.f32 %v3143_v5, %v3142_v38  ;;  %v6902_v40 = vpop.permute.xlu1 %3408 }
 0x21b   : > { %v3051_v51 = vsel %vm3039_vm5, %v6872_v33, 0.0  ;;  %v3145_v21 = vsel %vm584_vm3, %v3114_v34, 0.0  ;;  %v6885_v47 = vmul.f32 %v6619_v17, %v1633_v2  ;;  %v1634_v30 = vadd.f32 %v6805_v52, %v6589_v0  ;;  %v7815_v2 = vld [vmem:[#allocation25_spill] sm:$0xff]  ;;  %v7816_v34 = vld [vmem:[#allocation12_spill] sm:$0xff] }
 0x21c   : > { %v3052_v58 = vadd.f32 %v3051_v51, %v3050_v18  ;;  %v1632_v60 = vadd.f32 %v6589_v0, %v6812_v13  ;;  %v3146_v31 = vadd.f32 %v3145_v21, %v3144_v44  ;;  %v3117_v26 = vmul.f32 %v6805_v52, %v7799_v59  ;;  %v7814_v52 = vld [vmem:[#allocation58_spill] sm:$0xff] }
 0x21d   : > { %v4712_v36 = vpop.f32.mrb[24].mxu0  ;;  %v3115_v38 = vmul.f32 %v7795_v54, %v6812_v13  ;;  %v3175_v5 = vadd.f32 %v3174_v46, %v3173_v56  ;;  %v3080_v17 = vsel %vm3039_vm5, %v6869_v48, 0.0  ;;  %v3147_v55 = vsel %vm584_vm3, %v3116_v22, 0.0  ;;  %v7817_v22 = vld [vmem:[#allocation51_spill] sm:$0xff] }
 0x21e   : > { %v1564_v61 = vpop.f32.mrb[25].mxu0  ;;  %v6899_v8 = vmul.f32 %v6621_v25, %v1632_v60  ;;  %v1637_v6 = vadd.f32 %v4708_v39, %v6589_v0  ;;  %v6905_v59 = vmul.f32 %v7813_v23, %v1634_v30  ;;  %v3120_v13 = vmul.f32 %v4708_v39, %v7814_v52  ;;  %v7820_v23 = vld [vmem:[#allocation15_spill] sm:$0xff]  ;;  %v7821_v52 = vld [vmem:[#allocation13_spill] sm:$0xff] }
 0x21f   : > { %v4713_v3 = vpop.f32.mrb[26].mxu0  ;;  %v3176_v54 = vsel %vm584_vm3, %v3115_v38, 0.0  ;;  %v1635_v56 = vadd.f32 %v6589_v0, %v1548_v27  ;;  %v3053_v11 = vsel %vm3039_vm5, %v6885_v47, 0.0  ;;  %v6914_v25 = vmul.f32 %v6902_v40, %v6872_v33  ;;  %v7818_v38 = vld [vmem:[#allocation78_spill] sm:$0xff] }
 0x220   : > { %v1567_v41 = vpop.f32.mrb[27].mxu0  ;;  %v3082_v35 = vsel %vm3039_vm5, %v6899_v8, 0.0  ;;  %v3177_v62 = vadd.f32 %v3176_v54, %v3175_v5  ;;  %v3178_v29 = vsel %vm584_vm3, %v3117_v26, 0.0  ;;  %v3081_v19 = vadd.f32 %v3080_v17, %v3079_v57 }
 0x221   : > { %v6920_v4 = vmul.f32 %v7815_v2, %v1637_v6  ;;  %v3054_v39 = vadd.f32 %v3053_v11, %v3052_v58  ;;  %v6923_v46 = vmul.f32 %v7816_v34, %v1635_v56  ;;  %v3118_v18 = vmul.f32 %v7817_v22, %v1548_v27  ;;  %v7822_v22 = vld [vmem:[#allocation65_spill] sm:$0xff] }
 0x222   : > { %v3148_v51 = vadd.f32 %v3147_v55, %v3146_v31  ;;  %v1638_v44 = vadd.f32 %v6847_v9, %v6589_v0  ;;  %v3084_v21 = vsel %vm3039_vm5, %v6905_v59, 0.0  ;;  %v3083_v30 = vadd.f32 %v3082_v35, %v3081_v19  ;;  %v7819_v31 = vld [vmem:[#allocation76_spill] sm:$0xff] }
 0x223   : > { %v3151_v60 = vsel %vm584_vm3, %v3120_v13, 0.0  ;;  %v1636_v57 = vadd.f32 %v6589_v0, %v1551_v50  ;;  %v3055_v58 = vsel %vm3039_vm5, %v6923_v46, 0.0  ;;  %v3149_v26 = vsel %vm584_vm3, %v3118_v18, 0.0 }
 0x224   : > { %v3121_v27 = vmul.f32 %v6847_v9, %v7818_v38  ;;  %v3119_v5 = vmul.f32 %v7819_v31, %v1551_v50  ;;  %v3057_v55 = vsel %vm3039_vm5, %v6920_v4, 0.0  ;;  %v3150_v6 = vadd.f32 %v3149_v26, %v3148_v51  ;;  %v7823_v38 = vld [vmem:[#allocation42_spill] sm:$0xff]  ;;  %v7825_v31 = vld [vmem:[#allocation36_spill] sm:$0xff] }
 0x225   : > { %v6941_v54 = vmul.f32 %v7820_v23, %v1638_v44  ;;  %v6944_v13 = vmul.f32 %v7821_v52, %v1636_v57  ;;  %v3056_v11 = vadd.f32 %v3055_v58, %v3054_v39  ;;  %v3179_v35 = vadd.f32 %v3178_v29, %v3177_v62  ;;  %v7824_v62 = vld [vmem:[#allocation63_spill] sm:$0xff] }
 0x226   : > { %v4716_v17 = vpop.f32.mrb[28].mxu0  ;;  %v3180_v19 = vsel %vm584_vm3, %v3119_v5, 0.0  ;;  %v1641_v9 = vadd.f32 %v4712_v36, %v6589_v0  ;;  %v3085_v50 = vadd.f32 %v3084_v21, %v3083_v30  ;;  %v3124_v18 = vmul.f32 %v4712_v36, %v7822_v22  ;;  %v7828_v22 = vld [vmem:[#allocation21_spill] sm:$0xff] }
 0x227   : > { %v1580_v56 = vpop.f32.mrb[29].mxu0  ;;  %v3086_v34 = vsel %vm3039_vm5, %v6944_v13, 0.0  ;;  %v1639_v51 = vadd.f32 %v6589_v0, %v1564_v61  ;;  %v3182_v57 = vsel %vm584_vm3, %v3121_v27, 0.0  ;;  %v3181_v26 = vadd.f32 %v3180_v19, %v3179_v35 }
 0x228   : > { %v4717_v2 = vpop.f32.mrb[30].mxu0  ;;  %v6954_v39 = vmul.f32 %v7823_v38, %v1641_v9  ;;  %v3122_v29 = vmul.f32 %v7824_v62, %v1564_v61  ;;  %v3087_v58 = vadd.f32 %v3086_v34, %v3085_v50  ;;  %v3152_v21 = vadd.f32 %v3151_v60, %v3150_v6  ;;  %v7826_v9 = vld [vmem:[#allocation30_spill] sm:$0xff]  ;;  %v7827_v50 = vld [vmem:[#allocation85_spill] sm:$0xff] }
 0x229   : > { %v1583_v44 = vpop.f32.mrb[31].mxu0  ;;  %v6958_v5 = vmul.f32 %v7825_v31, %v1639_v51  ;;  %v1642_v30 = vadd.f32 %v4713_v3, %v6589_v0  ;;  %v3088_v36 = vsel %vm3039_vm5, %v6941_v54, 0.0  ;;  %v3058_v23 = vadd.f32 %v3057_v55, %v3056_v11  ;;  %v7829_v11 = vld [vmem:[#allocation82_spill] sm:$0xff]  ;;  %v7830_v31 = vld [vmem:[#allocation75_spill] sm:$0xff] }
 0x22a   : > { %v3153_v52 = vsel %vm584_vm3, %v3122_v29, 0.0  ;;  %v1640_v27 = vadd.f32 %v6589_v0, %v1567_v41  ;;  %v3155_v35 = vsel %vm584_vm3, %v3124_v18, 0.0  ;;  %v3125_v34 = vmul.f32 %v4713_v3, %v7827_v50  ;;  %v7831_v50 = vld [vmem:[#allocation74_spill] sm:$0xff] }
 0x22b   : > { %v3154_v19 = vadd.f32 %v3153_v52, %v3152_v21  ;;  %v6967_v61 = vmul.f32 %v7826_v9, %v1642_v30  ;;  %v3061_v60 = vsel %vm3039_vm5, %v6954_v39, 0.0  ;;  %v3059_v6 = vsel %vm3039_vm5, %v6958_v5, 0.0 }
 0x22c   : > { %v6975_v55 = vmul.f32 %v7828_v22, %v1640_v27  ;;  %v3123_v51 = vmul.f32 %v7829_v11, %v1567_v41  ;;  %v3089_v62 = vadd.f32 %v3088_v36, %v3087_v58  ;;  %v3183_v18 = vadd.f32 %v3182_v57, %v3181_v26 }
 0x22d   : > { %v1645_v29 = vadd.f32 %v4716_v17, %v6589_v0  ;;  %v3128_v21 = vmul.f32 %v4716_v17, %v7830_v31  ;;  %v1643_v9 = vadd.f32 %v6589_v0, %v1580_v56  ;;  %v3126_v27 = vmul.f32 %v7831_v50, %v1580_v56  ;;  %v7832_v56 = vld [vmem:[#allocation86_spill] sm:$0xff] }
 0x22e   : > { %v4720_v38 = vpop.f32.mrb[32].mxu0  ;;  %v3090_v3 = vsel %vm3039_vm5, %v6975_v55, 0.0  ;;  %v3184_v52 = vsel %vm584_vm3, %v3123_v51, 0.0  ;;  %v3060_v45 = vadd.f32 %v3059_v6, %v3058_v23  ;;  %v3092_v41 = vsel %vm3039_vm5, %v6967_v61, 0.0  ;;  %v7833_v6 = vld [vmem:[#allocation16_spill] sm:$0xff] }
 0x22f   : > { %v1596_v30 = vpop.f32.mrb[33].mxu0  ;;  %v3186_v57 = vsel %vm584_vm3, %v3125_v34, 0.0  ;;  %v3185_v26 = vadd.f32 %v3184_v52, %v3183_v18  ;;  %v3091_v17 = vadd.f32 %v3090_v3, %v3089_v62  ;;  %v3156_v36 = vadd.f32 %v3155_v35, %v3154_v19  ;;  %v7834_v18 = vld [vmem:[#allocation46_spill] sm:$0xff] }
 0x230   : > { %v4721_v22 = vpop.f32.mrb[34].mxu0  ;;  %v3157_v11 = vsel %vm584_vm3, %v3126_v27, 0.0  ;;  %v1646_v31 = vadd.f32 %v4717_v2, %v6589_v0  ;;  %v3129_v51 = vmul.f32 %v4717_v2, %v6533_v28  ;;  %v1644_v10 = vadd.f32 %v6589_v0, %v1583_v44  ;;  %v7835_v3 = vld [vmem:[#allocation22_spill] sm:$0xff] }
 0x231   : > { %v1599_v58 = vpop.f32.mrb[35].mxu0  ;;  %v3127_v50 = vmul.f32 %v7832_v56, %v1583_v44  ;;  %v3187_v23 = vadd.f32 %v3186_v57, %v3185_v26  ;;  %v6994_v15 = vmul.f32 %v7833_v6, %v1645_v29  ;;  %v3159_v34 = vsel %vm584_vm3, %v3128_v21, 0.0  ;;  %v7836_v57 = vld [vmem:[#allocation83_spill] sm:$0xff]  ;;  %v7837_v26 = vld [vmem:[#allocation14_spill] sm:$0xff] }
 0x232   : > { %v6998_v52 = vmul.f32 %v7834_v18, %v1643_v9  ;;  %v3158_v35 = vadd.f32 %v3157_v11, %v3156_v36  ;;  %v1649_v62 = vadd.f32 %v4720_v38, %v6589_v0  ;;  %v3132_v28 = vmul.f32 %v4720_v38, %v6498_v43  ;;  %v7838_v36 = vld [vmem:[#allocation19_spill] sm:$0xff] }
 0x233   : > { %v3188_v19 = vsel %vm584_vm3, %v3127_v50, 0.0  ;;  %v1647_v2 = vadd.f32 %v6589_v0, %v1596_v30  ;;  %v7005_v44 = vmul.f32 %v7835_v3, %v1646_v31  ;;  %v3190_v29 = vsel %vm584_vm3, %v3129_v51, 0.0  ;;  %v7839_v51 = vld [vmem:[#allocation33_spill] sm:$0xff]  ;;  %v7840_v3 = vld [vmem:[#allocation26_spill] sm:$0xff] }
 0x234   : > { %v3189_v27 = vadd.f32 %v3188_v19, %v3187_v23  ;;  %v3130_v21 = vmul.f32 %v7836_v57, %v1596_v30  ;;  %v7010_v9 = vmul.f32 %v7837_v26, %v1644_v10  ;;  %v3160_v56 = vadd.f32 %v3159_v34, %v3158_v35 }
 0x235   : > { %v7013_v11 = vmul.f32 %v7838_v36, %v1647_v2  ;;  %v3133_v50 = vmul.f32 %v4721_v22, %v6553_v37  ;;  %v1648_v38 = vadd.f32 %v6589_v0, %v1599_v58  ;;  %v3131_v31 = vmul.f32 %v6545_v49, %v1599_v58  ;;  %v7841_v36 = vld [vmem:[#allocation24_spill] sm:$0xff] }
 0x236   : > { %v3161_v43 = vsel %vm584_vm3, %v3130_v21, 0.0  ;;  %v3191_v6 = vadd.f32 %v3190_v29, %v3189_v27  ;;  %v7020_v23 = vmul.f32 %v7839_v51, %v1649_v62  ;;  %v3163_v30 = vsel %vm584_vm3, %v3132_v28, 0.0  ;;  %v3411_v29 = vpop.permute.xlu1 %3410 }
 0x237   : > { %v3162_v10 = vadd.f32 %v3161_v43, %v3160_v56  ;;  %v3062_v18 = vadd.f32 %v3061_v60, %v3060_v45  ;;  %v1650_v19 = vadd.f32 %v4721_v22, %v6589_v0  ;;  %v3194_v34 = vsel %vm584_vm3, %v3133_v50, 0.0 }
 0x238   : > { %v3192_v37 = vsel %vm584_vm3, %v3131_v31, 0.0  ;;  %v3063_v35 = vsel %vm3039_vm5, %v6998_v52, 0.0  ;;  %v7029_v49 = vmul.f32 %v7840_v3, %v1648_v38  ;;  %v3065_v28 = vsel %vm3039_vm5, %v6994_v15, 0.0 }
 0x239   : > { %v3164_v2 = vadd.f32 %v3163_v30, %v3162_v10  ;;  %v3193_v58 = vadd.f32 %v3192_v37, %v3191_v6  ;;  %v3064_v62 = vadd.f32 %v3063_v35, %v3062_v18  ;;  %v3067_v0 = vsel %vm3039_vm5, %v7013_v11, 0.0 }
 0x23a   : > { %v3093_v45 = vadd.f32 %v3092_v41, %v3091_v17  ;;  %v3094_v60 = vsel %vm3039_vm5, %v7010_v9, 0.0  ;;  %v3455_v22 = vmul.f32 %v6685_v53, %v6869_v48  ;;  %v3458_v27 = vmul.f32 %v3411_v29, %v6885_v47  ;;  %v7842_v17 = vld [vmem:[#allocation32_spill] sm:$0xff] }
 0x23b   : > { %v3195_v57 = vadd.f32 %v3194_v34, %v3193_v58  ;;  %v3066_v21 = vadd.f32 %v3065_v28, %v3064_v62  ;;  %v3457_v26 = vmul.f32 %v6902_v40, %v6899_v8  ;;  %v7043_v56 = vmul.f32 %v7841_v36, %v1650_v19  ;;  %v7844_v28 = vld [vmem:[#allocation17_spill] sm:$0xff] }
 0x23c   : > { %v3095_v50 = vadd.f32 %v3094_v60, %v3093_v45  ;;  %v3096_v41 = vsel %vm3039_vm5, %v7005_v44, 0.0  ;;  %v7048_v43 = vadd.f32 %v7842_v17, %v3164_v2  ;;  %v3098_v31 = vsel %vm3039_vm5, %v7029_v49, 0.0  ;;  %v7846_v45 = vld [vmem:[#allocation37_spill] sm:$0xff]  ;;  %v7847_v60 = vld [vmem:[#allocation43_spill] sm:$0xff]  ;;  %v7856_v17 = vld [vmem:[#allocation34_spill] sm:$0xff] }
 0x23d   : > { %v7051_v38 = vadd.f32 %v6815_v16, %v3195_v57  ;;  %v3068_v53 = vadd.f32 %v3067_v0, %v3066_v21  ;;  %v3069_v40 = vsel %vm3039_vm5, %v7020_v23, 0.0  ;;  %v3486_v51 = vadd.f32 %v6876_v24, %v6836_v32  ;;  %v7845_v0 = vld [vmem:[#allocation20_spill] sm:$0xff]  ;;  %v7850_v57 = vld [vmem:[#allocation23_spill] sm:$0xff]  ;;  %v7851_v21 = vld [vmem:[#allocation29_spill] sm:$0xff] }
 0x23e   : > { %v3097_v6 = vadd.f32 %v3096_v41, %v3095_v50  ;;  %v3487_v30 = vsel %vm3039_vm5, %v6914_v25, 0.0  ;;  %v3516_v10 = vsel %vm3039_vm5, %v3455_v22, 0.0  ;;  %v3459_v18 = vmul.f32 %v3411_v29, %v6905_v59  ;;  %v7848_v22 = vld [vmem:[#allocation60_spill] sm:$0xff]  ;;  %v7853_v36 = vld [vmem:[#allocation53_spill] sm:$0xff]  ;;  %v7854_v50 = vld [vmem:[#allocation71_spill] sm:$0xff] }
 0x23f   : > { %v3070_v16 = vadd.f32 %v3069_v40, %v3068_v53  ;;  %v4828_v19 = vpack.i.bf16 %v7051_v38, %v7048_v43  ;;  %v3488_v37 = vadd.f32 %v3487_v30, %v3486_v51  ;;  %v3517_v35 = vadd.f32 %v3516_v10, %v6853_v7  ;;  %v7843_v7 = vld [vmem:[#allocation55_spill] sm:$0xff]  ;;  %v7855_v41 = vld [vmem:[#allocation68_spill] sm:$0xff]  ;;  %v7857_v43 = vld [vmem:[#allocation38_spill] sm:$0xff] }
 0x240   : > { %v3099_v34 = vadd.f32 %v3098_v31, %v3097_v6  ;;  %v3518_v2 = vsel %vm3039_vm5, %v3457_v26, 0.0  ;;  %v3100_v32 = vsel %vm3039_vm5, %v7043_v56, 0.0  ;;  %v3489_v24 = vsel %vm3039_vm5, %v3458_v27, 0.0  ;;  %v7849_v27 = vld [vmem:[#allocation67_spill] sm:$0xff]  ;;  %v7858_v38 = vld [vmem:[#allocation56_spill] sm:$0xff]  ;;  %v4862_v31 = vld [vmem:[%s5279_s22] sm:$0xff]  }
 0x241   : > { %3540 = vrot.lane.b32.xlu1 %v3070_v16, %s5178_s14  ;;  %v7070_v3 = vadd.f32 %v3489_v24, %v3488_v37  ;;  %v3519_v58 = vadd.f32 %v3518_v2, %v3517_v35  ;;  %v3520_v62 = vsel %vm3039_vm5, %v3459_v18, 0.0  ;;  %v7852_v26 = vld [vmem:[#allocation47_spill] sm:$0xff]  ;;  %v7859_v53 = vld [vmem:[#allocation80_spill] sm:$0xff]  ;;  %v7860_v40 = vld [vmem:[#allocation61_spill] sm:$0xff]  ;;  %4723 = vmatpush3.bf16.msra.mxu1 %v4862_v31  ;;  %v7862_v51 = vmov 0.0  }
 0x242   : > { %v3101_v25 = vadd.f32 %v3100_v32, %v3099_v34  ;;  %v7861_v6 = vld [vmem:[#allocation44_spill] sm:$0xff]  ;;  %4724 = vmatprep.subr.bf16.mxu1 %v7862_v51  ;;  %v4863_v30 = vld [vmem:[%s5279_s22 + $0x8] sm:$0xff]   ;;  %v7863_v10 = vld [vmem:[#allocation69_spill] sm:$0xff] }
 0x243   : > { %v7073_v29 = vadd.f32 %v3520_v62, %v3519_v58  ;;  %v7864_v18 = vld [vmem:[#allocation49_spill] sm:$0xff]  ;;  %v4864_v16 = vld [vmem:[%s5279_s22 + $0x10] sm:$0xff]   ;;  %v7865_v34 = vld [vmem:[#allocation72_spill] sm:$0xff] }
 0x244   : > { %3542 = vrot.lane.b32.xlu0 %v3101_v25, %s5178_s14  ;;  %v7866_v37 = vld [vmem:[#allocation54_spill] sm:$0xff]  ;;  %v4865_v35 = vld [vmem:[%s5279_s22 + $0x18] sm:$0xff]   ;;  %v4866_v2 = vld [vmem:[%s5279_s22 + $0x30] sm:$0xff]  }
 0x245   : > { %3416 = vrot.lane.b32.xlu1 %v7843_v7, %s5177_s19  ;;  %4725 = vmatpush3.bf16.msra.mxu1 %v4863_v30  ;;  %v7867_v32 = vld [vmem:[#allocation77_spill] sm:$0xff]  ;;  %v4867_v24 = vld [vmem:[%s5279_s22 + $0x38] sm:$0xff]   ;;  %v7870_v7 = vld [vmem:[#allocation62_spill] sm:$0xff] }
 0x246   : > { %4726 = vmatprep.subr.bf16.mxu1 %v7862_v51  ;;  %4743 = vmatpush3.bf16.msra.mxu0 %v4866_v2  ;;  %v7868_v25 = vld [vmem:[#allocation57_spill] sm:$0xff] }
 0x247   : > { %4744 = vmatprep.subr.bf16.mxu0 %v7862_v51  ;;  %v7869_v58 = vld [vmem:[#allocation81_spill] sm:$0xff] }
 0x248   : > { %3714 = vrot.lane.b32.xlu0 %v7844_v28, %s5177_s19  ;;  %v4868_v62 = vld [vmem:[%s5279_s22 + $0x40] sm:$0xff]   ;;  %v4869_v28 = vld [vmem:[%s5279_s22 + $0x48] sm:$0xff]  }
 0x249   : > { %3716 = vrot.lane.b32.xlu1 %v7845_v0, %s5177_s19  ;;  %4727 = vmatpush3.bf16.msra.mxu1 %v4864_v16  ;;  %v3413_v0 = vpop.permute.xlu1 %3412 }
 0x24a   : > { %4728 = vmatprep.subr.bf16.mxu1 %v7862_v51  ;;  %4745 = vmatpush3.bf16.msra.mxu0 %v4867_v24  ;;  %v3461_v31 = vmul.f32 %v3413_v0, %v6944_v13 }
 0x24b   : > { %4746 = vmatprep.subr.bf16.mxu0 %v7862_v51 }
 0x24c   : > { %3570 = vrot.lane.b32.xlu0 %v7846_v45, %s5177_s19  ;;  %v3522_v2 = vsel %vm3039_vm5, %v3461_v31, 0.0 }
 0x24d   : > { %3572 = vrot.lane.b32.xlu1 %v7847_v60, %s5177_s19  ;;  %4729 = vmatpush3.bf16.msra.mxu1 %v4865_v35  ;;  %v3415_v45 = vpop.permute.xlu1 %3414 }
 0x24e   : > { %4734 = vmatprep.subr.bf16.mxu1 %v7862_v51  ;;  %4747 = vmatpush3.bf16.msra.mxu0 %v4868_v62  ;;  %v3462_v16 = vmul.f32 %v3415_v45, %v6920_v4 }
 0x24f   : > { %4748 = vmatprep.subr.bf16.mxu0 %v7862_v51 }
 0x250   : > { %3418 = vrot.lane.b32.xlu0 %v7848_v22, %s5177_s19  ;;  %v3569_v22 = vpop.permute.xlu0 %3568 }
 0x251   : > { %3420 = vrot.lane.b32.xlu1 %v7849_v27, %s5177_s19  ;;  %v3713_v60 = vpop.permute.xlu1 %3712 }
 0x252   : > { %4749 = vmatpush3.bf16.msra.mxu0 %v4869_v28 }
 0x254   : > { %3718 = vrot.lane.b32.xlu0 %v7850_v57, %s5177_s19  ;;  %v7147_v57 = vld [vmem:[#allocation3] sm:$0xff] }
 0x255   : > { %3720 = vrot.lane.b32.xlu1 %v7851_v21, %s5177_s19 }
 0x258   : > { %3574 = vrot.lane.b32.xlu0 %v7852_v26, %s5177_s19  ;;  %v7871_v26 = vld [vmem:[#allocation31_spill] sm:$0xff] }
 0x259   : > { %3576 = vrot.lane.b32.xlu1 %v7853_v36, %s5177_s19  ;;  %v3760_v36 = vmul.f32 %v3713_v60, %v7871_v26 }
 0x25b   : > { %v3792_v30 = vsel %vm3039_vm5, %v3760_v36, 0.0 }
 0x25c   : > { %3422 = vrot.lane.b32.xlu0 %v7854_v50, %s5177_s19  ;;  %v7872_v50 = vld [vmem:[#allocation40_spill] sm:$0xff] }
 0x25d   : > { %3424 = vrot.lane.b32.xlu1 %v7855_v41, %s5177_s19  ;;  %v3616_v41 = vmul.f32 %v3569_v22, %v6831_v20 }
 0x260   : > { %3722 = vrot.lane.b32.xlu0 %v7856_v17, %s5177_s19 }
 0x261   : > { %3724 = vrot.lane.b32.xlu1 %v7857_v43, %s5177_s19  ;;  %v7157_v43 = vld [vmem:[#allocation3 + $0x8] sm:$0xff] }
 0x264   : > { %3578 = vrot.lane.b32.xlu0 %v7858_v38, %s5177_s19 }
 0x265   : > { %3426 = vrot.lane.b32.xlu1 %v7859_v53, %s5177_s19  ;;  %v3460_v53 = vmul.f32 %v3413_v0, %v6923_v46  ;;  %v3463_v0 = vmul.f32 %v3415_v45, %v6941_v54 }
 0x267   : > { %v3491_v35 = vsel %vm3039_vm5, %v3460_v53, 0.0 }
 0x268   : > { %3580 = vrot.lane.b32.xlu0 %v7860_v40, %s5177_s19 }
 0x269   : > { %3726 = vrot.lane.b32.xlu1 %v7861_v6, %s5177_s19  ;;  %v3617_v6 = vmul.f32 %v3569_v22, %v6869_v48 }
 0x26b   : > { %v3678_v26 = vsel %vm3039_vm5, %v3617_v6, 0.0 }
 0x26c   : > { %3582 = vrot.lane.b32.xlu0 %v7863_v10, %s5177_s19 }
 0x26d   : > { %3728 = vrot.lane.b32.xlu1 %v7864_v18, %s5177_s19  ;;  %v3647_v18 = vsel %vm3039_vm5, %v3616_v41, 0.0  ;;  %v3492_v41 = vadd.f32 %v3491_v35, %v7070_v3  ;;  %v3493_v3 = vsel %vm3039_vm5, %v3462_v16, 0.0 }
 0x270   : > { %3584 = vrot.lane.b32.xlu0 %v7865_v34, %s5177_s19 }
 0x271   : > { %3730 = vrot.lane.b32.xlu1 %v7866_v37, %s5177_s19  ;;  %v7873_v37 = vld [vmem:[#allocation70_spill] sm:$0xff] }
 0x274   : > { %3586 = vrot.lane.b32.xlu0 %v7867_v32, %s5177_s19  ;;  %v7874_v32 = vld [vmem:[#allocation27_spill] sm:$0xff] }
 0x275   : > { %3732 = vrot.lane.b32.xlu1 %v7868_v25, %s5177_s19  ;;  %v7875_v25 = vld [vmem:[#allocation28_spill] sm:$0xff] }
 0x278   : > { %3588 = vrot.lane.b32.xlu0 %v7869_v58, %s5177_s19 }
 0x279   : > { %3734 = vrot.lane.b32.xlu1 %v7870_v7, %s5177_s19  ;;  %v7175_v7 = vld [vmem:[#allocation3 + $0x10] sm:$0xff] }
 0x27c   : > { %4829 = vrot.lane.b32.xlu0 %v4828_v19, %s5177_s19  ;;  %v3761_v19 = vmul.f32 %v3713_v60, %v7872_v50 }
 0x27e   : > { %v3823_v10 = vsel %vm3039_vm5, %v3761_v19, 0.0  ;;  %v7876_v19 = vld [vmem:[#allocation73_spill] sm:$0xff] }
 0x2b3   : > { %v7145_v27 = vpop.permute.xlu1 %3540 }
 0x2b4   : > { %v3546_v21 = vmul.f32 %v7147_v57, %v7145_v27  ;;  %v3700_v28 = vmul.f32 %v7175_v7, %v7145_v27 }
 0x2b6   : > { %v7154_v17 = vpop.permute.xlu0 %3542  ;;  %3550 = vrot.lane.b32.xlu0 %v3546_v21, %s5177_s19  ;;  %v3648_v21 = vadd.f32 %v3647_v18, %v6862_v1  ;;  %v3679_v1 = vadd.f32 %v3678_v26, %v6864_v12 }
 0x2b7   : > { %v3547_v38 = vmul.f32 %v7157_v43, %v7154_v17  ;;  %v3417_v40 = vpop.permute.xlu1 %3416 }
 0x2b8   : > { %v3464_v60 = vmul.f32 %v3417_v40, %v6958_v5  ;;  %v3465_v22 = vmul.f32 %v3417_v40, %v6975_v55  ;;  %v7192_v40 = vld [vmem:[#allocation3 + $0x18] sm:$0xff] }
 0x2b9   : > { %3552 = vrot.lane.b32.xlu1 %v3547_v38, %s5177_s19  ;;  %v3523_v38 = vadd.f32 %v3522_v2, %v7073_v29  ;;  %v3701_v6 = vmul.f32 %v7192_v40, %v7154_v17  ;;  %v3524_v29 = vsel %vm3039_vm5, %v3463_v0, 0.0  ;;  %v7877_v0 = vld [vmem:[#allocation79_spill] sm:$0xff] }
 0x2ba   : > { %v3715_v34 = vpop.permute.xlu0 %3714  ;;  %3736 = vrot.lane.b32.xlu0 %v7873_v37, %s5177_s19 }
 0x2bb   : > { %v3762_v24 = vmul.f32 %v3715_v34, %v7874_v32  ;;  %v3763_v58 = vmul.f32 %v3715_v34, %v7875_v25  ;;  %v3717_v62 = vpop.permute.xlu1 %3716  ;;  %v3525_v25 = vadd.f32 %v3524_v29, %v3523_v38  ;;  %v7879_v29 = vld [vmem:[#allocation41_spill] sm:$0xff] }
 0x2bc   : > { %v3764_v12 = vmul.f32 %v3717_v62, %v6750_v42  ;;  %v3765_v35 = vmul.f32 %v3717_v62, %v6757_v14 }
 0x2bd   : > { %v3793_v36 = vsel %vm3039_vm5, %v3762_v24, 0.0  ;;  %v3824_v50 = vsel %vm3039_vm5, %v3763_v58, 0.0  ;;  %3738 = vrot.lane.b32.xlu1 %v7876_v19, %s5177_s19  ;;  %v3494_v24 = vadd.f32 %v3493_v3, %v3492_v41 }
 0x2be   : > { %v3794_v45 = vadd.f32 %v3793_v36, %v3792_v30  ;;  %v3825_v53 = vadd.f32 %v3824_v50, %v3823_v10  ;;  %v3571_v31 = vpop.permute.xlu0 %3570  ;;  %3704 = vrot.lane.b32.xlu0 %v3700_v28, %s5177_s19  ;;  %v3495_v30 = vsel %vm3039_vm5, %v3464_v60, 0.0  ;;  %v3526_v10 = vsel %vm3039_vm5, %v3465_v22, 0.0  ;;  %v7209_v60 = vld [vmem:[#allocation3 + $0x20] sm:$0xff] }
 0x2bf   : > { %v3618_v18 = vmul.f32 %v3571_v31, %v6872_v33  ;;  %v3619_v34 = vmul.f32 %v3571_v31, %v6899_v8  ;;  %v3573_v37 = vpop.permute.xlu1 %3572  ;;  %v3854_v42 = vmul.f32 %v7209_v60, %v7145_v27  ;;  %v3496_v26 = vadd.f32 %v3495_v30, %v3494_v24  ;;  %v7878_v27 = vld [vmem:[#allocation84_spill] sm:$0xff] }
 0x2c0   : > { %v3527_v36 = vadd.f32 %v3526_v10, %v3525_v25  ;;  %v3620_v50 = vmul.f32 %v3573_v37, %v6885_v47  ;;  %v3795_v19 = vsel %vm3039_vm5, %v3764_v12, 0.0  ;;  %v3826_v41 = vsel %vm3039_vm5, %v3765_v35, 0.0 }
 0x2c1   : > { %v3649_v2 = vsel %vm3039_vm5, %v3618_v18, 0.0  ;;  %v3680_v32 = vsel %vm3039_vm5, %v3619_v34, 0.0  ;;  %3706 = vrot.lane.b32.xlu1 %v3701_v6, %s5177_s19  ;;  %v7224_v34 = vld [vmem:[#allocation3 + $0x28] sm:$0xff]  ;;  %v3796_v10 = vadd.f32 %v3795_v19, %v3794_v45  ;;  %v3827_v12 = vadd.f32 %v3826_v41, %v3825_v53 }
 0x2c2   : > { %v3650_v58 = vadd.f32 %v3649_v2, %v3648_v21  ;;  %v3681_v16 = vadd.f32 %v3680_v32, %v3679_v1  ;;  %v3419_v28 = vpop.permute.xlu0 %3418  ;;  %3740 = vrot.lane.b32.xlu0 %v7877_v0, %s5177_s19  ;;  %v3621_v21 = vmul.f32 %v3573_v37, %v6905_v59  ;;  %v3855_v37 = vmul.f32 %v7224_v34, %v7154_v17 }
 0x2c3   : > { %v3466_v14 = vmul.f32 %v3419_v28, %v6954_v39  ;;  %v3467_v62 = vmul.f32 %v3419_v28, %v6967_v61  ;;  %v3421_v22 = vpop.permute.xlu1 %3420  ;;  %v3651_v35 = vsel %vm3039_vm5, %v3620_v50, 0.0  ;;  %v7881_v50 = vld [vmem:[#allocation48_spill] sm:$0xff] }
 0x2c4   : > { %v3682_v2 = vsel %vm3039_vm5, %v3621_v21, 0.0  ;;  %v3468_v24 = vmul.f32 %v3421_v22, %v6998_v52  ;;  %v3469_v25 = vmul.f32 %v3421_v22, %v7010_v9 }
 0x2c5   : > { %v3497_v38 = vsel %vm3039_vm5, %v3466_v14, 0.0  ;;  %v3528_v31 = vsel %vm3039_vm5, %v3467_v62, 0.0  ;;  %3742 = vrot.lane.b32.xlu1 %v7878_v27, %s5177_s19  ;;  %v3652_v14 = vadd.f32 %v3651_v35, %v3650_v58  ;;  %v3683_v62 = vadd.f32 %v3682_v2, %v3681_v16 }
 0x2c6   : > { %v3498_v1 = vadd.f32 %v3497_v38, %v3496_v26  ;;  %v3529_v6 = vadd.f32 %v3528_v31, %v3527_v36  ;;  %v3719_v18 = vpop.permute.xlu0 %3718  ;;  %3858 = vrot.lane.b32.xlu0 %v3854_v42, %s5177_s19  ;;  %v7880_v26 = vld [vmem:[#allocation35_spill] sm:$0xff]  ;;  %v3499_v22 = vsel %vm3039_vm5, %v3468_v24, 0.0  ;;  %v3530_v19 = vsel %vm3039_vm5, %v3469_v25, 0.0 }
 0x2c7   : > { %v3766_v3 = vmul.f32 %v3719_v18, %v6753_v63  ;;  %v3767_v30 = vmul.f32 %v3719_v18, %v7879_v29  ;;  %v3721_v32 = vpop.permute.xlu1 %3720 }
 0x2c8   : > { %v3768_v36 = vmul.f32 %v3721_v32, %v7880_v26  ;;  %v3769_v21 = vmul.f32 %v3721_v32, %v7881_v50  ;;  %v3500_v16 = vadd.f32 %v3499_v22, %v3498_v1  ;;  %v3531_v29 = vadd.f32 %v3530_v19, %v3529_v6 }
 0x2c9   : > { %v3797_v28 = vsel %vm3039_vm5, %v3766_v3, 0.0  ;;  %v3828_v0 = vsel %vm3039_vm5, %v3767_v30, 0.0  ;;  %3860 = vrot.lane.b32.xlu1 %v3855_v37, %s5177_s19 }
 0x2ca   : > { %v3798_v63 = vadd.f32 %v3797_v28, %v3796_v10  ;;  %v3829_v17 = vadd.f32 %v3828_v0, %v3827_v12  ;;  %v3575_v42 = vpop.permute.xlu0 %3574  ;;  %v3799_v30 = vsel %vm3039_vm5, %v3768_v36, 0.0  ;;  %v3830_v10 = vsel %vm3039_vm5, %v3769_v21, 0.0 }
 0x2cb   : > { %v3622_v45 = vmul.f32 %v3575_v42, %v6923_v46  ;;  %v3623_v53 = vmul.f32 %v3575_v42, %v6944_v13  ;;  %v3577_v18 = vpop.permute.xlu1 %3576 }
 0x2cc   : > { %v3624_v12 = vmul.f32 %v3577_v18, %v6920_v4  ;;  %v3625_v35 = vmul.f32 %v3577_v18, %v6941_v54  ;;  %v3800_v0 = vadd.f32 %v3799_v30, %v3798_v63  ;;  %v3831_v42 = vadd.f32 %v3830_v10, %v3829_v17 }
 0x2cd   : > { %v3653_v41 = vsel %vm3039_vm5, %v3622_v45, 0.0  ;;  %v3684_v38 = vsel %vm3039_vm5, %v3623_v53, 0.0 }
 0x2ce   : > { %v3654_v31 = vadd.f32 %v3653_v41, %v3652_v14  ;;  %v3685_v27 = vadd.f32 %v3684_v38, %v3683_v62  ;;  %v3423_v37 = vpop.permute.xlu0 %3422  ;;  %v3655_v45 = vsel %vm3039_vm5, %v3624_v12, 0.0  ;;  %v3686_v53 = vsel %vm3039_vm5, %v3625_v35, 0.0 }
 0x2cf   : > { %v3470_v3 = vmul.f32 %v3423_v37, %v6994_v15  ;;  %v3471_v58 = vmul.f32 %v3423_v37, %v7005_v44 }
 0x2d0   : > { %v3687_v63 = vadd.f32 %v3686_v53, %v3685_v27 }
 0x2d1   : > { %v3501_v2 = vsel %vm3039_vm5, %v3470_v3, 0.0  ;;  %v3532_v32 = vsel %vm3039_vm5, %v3471_v58, 0.0 }
 0x2d2   : > { %v7253_v24 = vadd.f32 %v3501_v2, %v3500_v16  ;;  %v7255_v25 = vadd.f32 %v3532_v32, %v3531_v29  ;;  %v3723_v28 = vpop.permute.xlu0 %3722 }
 0x2d3   : > { %v3770_v1 = vmul.f32 %v3723_v28, %v6831_v20  ;;  %v3771_v6 = vmul.f32 %v3723_v28, %v6869_v48  ;;  %v3656_v48 = vadd.f32 %v3655_v45, %v3654_v31 }
 0x2d5   : > { %v3801_v14 = vsel %vm3039_vm5, %v3770_v1, 0.0  ;;  %v3832_v62 = vsel %vm3039_vm5, %v3771_v6, 0.0 }
 0x2d6   : > { %v7263_v26 = vadd.f32 %v3801_v14, %v3800_v0  ;;  %v7265_v36 = vadd.f32 %v3832_v62, %v3831_v42  ;;  %v3579_v50 = vpop.permute.xlu0 %3578 }
 0x2d7   : > { %v3626_v21 = vmul.f32 %v3579_v50, %v6958_v5  ;;  %v3627_v20 = vmul.f32 %v3579_v50, %v6975_v55 }
 0x2d9   : > { %v3657_v17 = vsel %vm3039_vm5, %v3626_v21, 0.0  ;;  %v3688_v22 = vsel %vm3039_vm5, %v3627_v20, 0.0 }
 0x2da   : > { %v3658_v19 = vadd.f32 %v3657_v17, %v3656_v48  ;;  %v3689_v41 = vadd.f32 %v3688_v22, %v3687_v63  ;;  %v3581_v38 = vpop.permute.xlu0 %3580 }
 0x2db   : > { %v3628_v18 = vmul.f32 %v3581_v38, %v6954_v39  ;;  %v3629_v37 = vmul.f32 %v3581_v38, %v6967_v61 }
 0x2dd   : > { %v3659_v3 = vsel %vm3039_vm5, %v3628_v18, 0.0  ;;  %v3690_v58 = vsel %vm3039_vm5, %v3629_v37, 0.0 }
 0x2de   : > { %v3660_v16 = vadd.f32 %v3659_v3, %v3658_v19  ;;  %v3691_v29 = vadd.f32 %v3690_v58, %v3689_v41  ;;  %v3583_v30 = vpop.permute.xlu0 %3582 }
 0x2df   : > { %v3630_v31 = vmul.f32 %v3583_v30, %v6998_v52  ;;  %v3631_v27 = vmul.f32 %v3583_v30, %v7010_v9  ;;  %v7299_v30 = vld [vmem:[#allocation2] sm:$0xff] }
 0x2e1   : > { %v3661_v10 = vsel %vm3039_vm5, %v3630_v31, 0.0  ;;  %v3692_v12 = vsel %vm3039_vm5, %v3631_v27, 0.0 }
 0x2e2   : > { %v3662_v35 = vadd.f32 %v3661_v10, %v3660_v16  ;;  %v3693_v2 = vadd.f32 %v3692_v12, %v3691_v29  ;;  %v3585_v32 = vpop.permute.xlu0 %3584  ;;  %v7295_v16 = vld [vmem:[#allocation2 + $0x8] sm:$0xff]  ;;  %v3425_v10 = vpop.permute.xlu1 %3424 }
 0x2e3   : > { %v3632_v28 = vmul.f32 %v3585_v32, %v6994_v15  ;;  %v3633_v1 = vmul.f32 %v3585_v32, %v7005_v44 }
 0x2e5   : > { %v3663_v6 = vsel %vm3039_vm5, %v3632_v28, 0.0  ;;  %v3694_v0 = vsel %vm3039_vm5, %v3633_v1, 0.0  ;;  %v3472_v1 = vmul.f32 %v3425_v10, %v7013_v11 }
 0x2e6   : > { %v3664_v42 = vadd.f32 %v3663_v6, %v3662_v35  ;;  %v3695_v45 = vadd.f32 %v3694_v0, %v3693_v2  ;;  %v3587_v53 = vpop.permute.xlu0 %3586  ;;  %v3725_v12 = vpop.permute.xlu1 %3724 }
 0x2e7   : > { %v3634_v14 = vmul.f32 %v3587_v53, %v7013_v11  ;;  %v3635_v62 = vmul.f32 %v3587_v53, %v7029_v49  ;;  %v3772_v6 = vmul.f32 %v3725_v12, %v6872_v33  ;;  %v3773_v0 = vmul.f32 %v3725_v12, %v6899_v8 }
 0x2e9   : > { %v3665_v50 = vsel %vm3039_vm5, %v3634_v14, 0.0  ;;  %v3696_v21 = vsel %vm3039_vm5, %v3635_v62, 0.0 }
 0x2ea   : > { %v3589_v20 = vpop.permute.xlu0 %3588  ;;  %v3666_v48 = vadd.f32 %v3665_v50, %v3664_v42  ;;  %v3697_v63 = vadd.f32 %v3696_v21, %v3695_v45  ;;  %v3427_v35 = vpop.permute.xlu1 %3426  ;;  %v3473_v42 = vmul.f32 %v3425_v10, %v7029_v49  ;;  %v3503_v50 = vsel %vm3039_vm5, %v3472_v1, 0.0 }
 0x2eb   : > { %v3636_v17 = vmul.f32 %v3589_v20, %v7020_v23  ;;  %v3637_v22 = vmul.f32 %v3589_v20, %v7043_v56  ;;  %v3474_v45 = vmul.f32 %v3427_v35, %v7020_v23  ;;  %v3475_v21 = vmul.f32 %v3427_v35, %v7043_v56 }
 0x2ec   : > { %v3803_v20 = vsel %vm3039_vm5, %v3772_v6, 0.0 }
 0x2ed   : > { %v3667_v19 = vsel %vm3039_vm5, %v3636_v17, 0.0  ;;  %v3698_v41 = vsel %vm3039_vm5, %v3637_v22, 0.0  ;;  %v3505_v17 = vsel %vm3039_vm5, %v3474_v45, 0.0 }
 0x2ee   : > { %v4830_v38 = vpop.permute.xlu0 %4829  ;;  %v7291_v18 = vadd.f32 %v3667_v19, %v3666_v48  ;;  %v7293_v37 = vadd.f32 %v3698_v41, %v3697_v63  ;;  %v3727_v2 = vpop.permute.xlu1 %3726  ;;  %v3834_v48 = vsel %vm3039_vm5, %v3773_v0, 0.0  ;;  %v3534_v63 = vsel %vm3039_vm5, %v3473_v42, 0.0 }
 0x2ef   : > { %v4832_v3 = vunpack.i.h.bf16 %v4830_v38  ;;  %v4831_v58 = vunpack.i.l.bf16 %v4830_v38  ;;  %v3774_v14 = vmul.f32 %v3727_v2, %v6885_v47  ;;  %v3775_v62 = vmul.f32 %v3727_v2, %v6905_v59 }
 0x2f0   : > { %v3804_v41 = vadd.f32 %v3803_v20, %v7263_v26  ;;  %v3835_v38 = vadd.f32 %v3834_v48, %v7265_v36  ;;  %v3535_v26 = vadd.f32 %v3534_v63, %v7255_v25 }
 0x2f1   : > { %v3243_v29 = vsel %vm584_vm3, %v7295_v16, %v4832_v3  ;;  %v3242_v31 = vsel %vm584_vm3, %v7299_v30, %v4831_v58  ;;  %v3805_v47 = vsel %vm3039_vm5, %v3774_v14, 0.0  ;;  %v3836_v59 = vsel %vm3039_vm5, %v3775_v62, 0.0 }
 0x2f2   : > { %v3244_v27 = vpack.c.bf16 %v3243_v29, %v3242_v31  ;;  %v3729_v32 = vpop.permute.xlu1 %3728  ;;  %v3837_v10 = vadd.f32 %v3836_v59, %v3835_v38 }
 0x2f3   : > { %v3776_v33 = vmul.f32 %v3729_v32, %v6923_v46  ;;  %v3777_v8 = vmul.f32 %v3729_v32, %v6944_v13  ;;  %v3504_v46 = vadd.f32 %v3503_v50, %v7253_v24  ;;  %v3536_v13 = vsel %vm3039_vm5, %v3475_v21, 0.0 }
 0x2f4   : > { %4731 = vmatmul.mubr.msk.bf16.vlgmr.msra.gmra.mrb[32].mxu1 %vm1401_vm8, %v3244_v27 }
 0x2f5   : > { %4738 = vmatprep.mubr.msk.bf16.mxu1 %vm5175_vm2, %v7862_v51  ;;  %v3807_v58 = vsel %vm3039_vm5, %v3776_v33, 0.0  ;;  %v3838_v29 = vsel %vm3039_vm5, %v3777_v8, 0.0 }
 0x2f6   : > { %v3731_v28 = vpop.permute.xlu1 %3730 }
 0x2f7   : > { %v3778_v22 = vmul.f32 %v3731_v28, %v6920_v4  ;;  %v3779_v19 = vmul.f32 %v3731_v28, %v6941_v54  ;;  %v3806_v4 = vadd.f32 %v3805_v47, %v3804_v41  ;;  %v3506_v54 = vadd.f32 %v3505_v17, %v3504_v46 }
 0x2f8   : > { %v3839_v28 = vadd.f32 %v3838_v29, %v3837_v10 }
 0x2f9   : > { %v3809_v36 = vsel %vm3039_vm5, %v3778_v22, 0.0  ;;  %v3840_v24 = vsel %vm3039_vm5, %v3779_v19, 0.0  ;;  %v3808_v32 = vadd.f32 %v3807_v58, %v3806_v4 }
 0x2fa   : > { %v3733_v53 = vpop.permute.xlu1 %3732  ;;  %v3841_v45 = vadd.f32 %v3840_v24, %v3839_v28 }
 0x2fb   : > { %v3780_v31 = vmul.f32 %v3733_v53, %v6958_v5  ;;  %v3781_v27 = vmul.f32 %v3733_v53, %v6975_v55  ;;  %v3537_v5 = vadd.f32 %v3536_v13, %v3535_v26  ;;  %v3810_v42 = vadd.f32 %v3809_v36, %v3808_v32 }
 0x2fd   : > { %v3811_v55 = vsel %vm3039_vm5, %v3780_v31, 0.0  ;;  %v3842_v6 = vsel %vm3039_vm5, %v3781_v27, 0.0 }
 0x2fe   : > { %v3735_v3 = vpop.permute.xlu1 %3734  ;;  %v3812_v50 = vadd.f32 %v3811_v55, %v3810_v42  ;;  %v3843_v21 = vadd.f32 %v3842_v6, %v3841_v45  ;;  %v4871_v42 = vld [vmem:[%s5279_s22 + $0x28] sm:$0xff]   ;;  %v7384_v45 = vld [vmem:[%s5269_s16] sm:$0xff] }
 0x2ff   : > { %v3782_v35 = vmul.f32 %v3735_v3, %v6954_v39  ;;  %v3783_v2 = vmul.f32 %v3735_v3, %v6967_v61 }
 0x301   : > { %v3813_v14 = vsel %vm3039_vm5, %v3782_v35, 0.0  ;;  %v3844_v62 = vsel %vm3039_vm5, %v3783_v2, 0.0 }
 0x302   : > { %v3814_v47 = vadd.f32 %v3813_v14, %v3812_v50  ;;  %v3845_v59 = vadd.f32 %v3844_v62, %v3843_v21 }
 0x328   : > { %v3551_v12 = vpop.permute.xlu0 %3550 }
 0x329   : > { %v3556_v1 = vsub.f32 %v3506_v54, %v3551_v12 }
 0x32b   : > { %v3553_v0 = vpop.permute.xlu1 %3552  ;;  %v3866_v20 = vsel %vm584_vm3, %v7147_v57, %v3556_v1 }
 0x32c   : > { %v3557_v25 = vsub.f32 %v3537_v5, %v3553_v0  ;;  %v3737_v53 = vpop.permute.xlu0 %3736  ;;  %v4870_v0 = vld [vmem:[%s5279_s22 + $0x20] sm:$0xff]  }
 0x32d   : > { %v3784_v39 = vmul.f32 %v3737_v53, %v6998_v52  ;;  %v3785_v61 = vmul.f32 %v3737_v53, %v7010_v9  ;;  %4735 = vmatpush3.bf16.msra.mxu1 %v4870_v0 }
 0x32e   : > { %v3867_v48 = vsel %vm584_vm3, %v7157_v43, %v3557_v25  ;;  %4736 = vmatprep.subr.bf16.mxu1 %v7862_v51  ;;  %v7882_v25 = vld [vmem:[#allocation8_spill] sm:$0xff] }
 0x32f   : > { %v3872_v33 = vpack.c.bf16 %v3867_v48, %v3866_v20  ;;  %v3815_v8 = vsel %vm3039_vm5, %v3784_v39, 0.0  ;;  %v3846_v63 = vsel %vm3039_vm5, %v3785_v61, 0.0  ;;  %v3739_v17 = vpop.permute.xlu1 %3738  ;;  %v3248_v53 = vrot.slane %v7384_v45, %v7882_v25 }
 0x330   : > { %v3786_v52 = vmul.f32 %v3739_v17, %v6994_v15  ;;  %v3787_v9 = vmul.f32 %v3739_v17, %v7005_v44  ;;  %v3705_v22 = vpop.permute.xlu0 %3704  ;;  %v3816_v19 = vadd.f32 %v3815_v8, %v3814_v47  ;;  %v3847_v41 = vadd.f32 %v3846_v63, %v3845_v59 }
 0x331   : > { %4751 = vmatmul.mubr.msk.bf16.vlgmr.msra.gmra.mrb[36].mxu0 %vm1401_vm8, %v3872_v33  ;;  %v3710_v38 = vsub.f32 %v7291_v18, %v3705_v22  ;;  %4737 = vmatpush3.bf16.msra.mxu1 %v4871_v42  ;;  %v4872_v22 = vld [vmem:[%s5279_s22 + $0x50] sm:$0xff]  }
 0x332   : > { %4754 = vmatprep.mubr.msk.bf16.mxu0 %vm5175_vm2, %v7862_v51  ;;  %v3817_v3 = vsel %vm3039_vm5, %v3786_v52, 0.0  ;;  %v3848_v46 = vsel %vm3039_vm5, %v3787_v9, 0.0  ;;  %4762 = vmatprep.subr.bf16.mxu1 %v7862_v51 }
 0x333   : > { %v3707_v13 = vpop.permute.xlu1 %3706  ;;  %v3818_v31 = vadd.f32 %v3817_v3, %v3816_v19  ;;  %v3849_v27 = vadd.f32 %v3848_v46, %v3847_v41  ;;  %v3868_v18 = vsel %vm584_vm3, %v7175_v7, %v3710_v38  ;;  %v4873_v41 = vld [vmem:[%s5279_s22 + $0x58] sm:$0xff]   ;;  %v7883_v38 = vld [vmem:[#allocation10_spill] sm:$0xff] }
 0x334   : > { %v3711_v58 = vsub.f32 %v7293_v37, %v3707_v13  ;;  %v3741_v15 = vpop.permute.xlu0 %3740  ;;  %v3878_v3 = vrot.slane %v7384_v45, %v7883_v38 }
 0x335   : > { %v3788_v44 = vmul.f32 %v3741_v15, %v7013_v11  ;;  %v3789_v29 = vmul.f32 %v3741_v15, %v7029_v49 }
 0x336   : > { %v3869_v4 = vsel %vm584_vm3, %v7192_v40, %v3711_v58 }
 0x337   : > { %v3873_v10 = vpack.c.bf16 %v3869_v4, %v3868_v18  ;;  %v3819_v54 = vsel %vm3039_vm5, %v3788_v44, 0.0  ;;  %v3850_v12 = vsel %vm3039_vm5, %v3789_v29, 0.0  ;;  %v3743_v26 = vpop.permute.xlu1 %3742 }
 0x338   : > { %v3790_v37 = vmul.f32 %v3743_v26, %v7020_v23  ;;  %v3791_v11 = vmul.f32 %v3743_v26, %v7043_v56  ;;  %v3820_v36 = vadd.f32 %v3819_v54, %v3818_v31  ;;  %v3851_v49 = vadd.f32 %v3850_v12, %v3849_v27  ;;  %v3859_v23 = vpop.permute.xlu0 %3858 }
 0x339   : > { %4755 = vmatmul.mubr.msk.bf16.gmra.mrb[40].mxu0 %vm1401_vm8, %v3873_v10 }
 0x33a   : > { %v3821_v24 = vsel %vm3039_vm5, %v3790_v37, 0.0  ;;  %v3852_v35 = vsel %vm3039_vm5, %v3791_v11, 0.0  ;;  %4758 = vmatprep.mubr.msk.bf16.mxu0 %vm5175_vm2, %v7862_v51 }
 0x33b   : > { %v3822_v2 = vadd.f32 %v3821_v24, %v3820_v36  ;;  %v3861_v32 = vpop.permute.xlu1 %3860  ;;  %v3853_v28 = vadd.f32 %v3852_v35, %v3851_v49 }
 0x33d   : > { %v3864_v1 = vsub.f32 %v3822_v2, %v3859_v23  ;;  %v3865_v56 = vsub.f32 %v3853_v28, %v3861_v32 }
 0x33f   : > { %v3870_v5 = vsel %vm584_vm3, %v7209_v60, %v3864_v1  ;;  %v3871_v55 = vsel %vm584_vm3, %v7224_v34, %v3865_v56 }
 0x340   : > { %v3874_v6 = vpack.c.bf16 %v3871_v55, %v3870_v5 }
 0x342   : > { %4759 = vmatmul.mubr.msk.bf16.gmra.mrb[44].mxu0 %vm1401_vm8, %v3874_v6 }
 0x3c7   : > { %v3310_v14 = vpop.f32.mrb[32].mxu1 }
 0x3c8   : > { %v3311_v62 = vadd.f32 %v3310_v14, %v3248_v53  ;;  %v4732_v39 = vpop.f32.mrb[33].mxu1 }
 0x3c9   : > { %v3313_v61 = vpop.f32.mrb[34].mxu1 }
 0x3ca   : > { %v4527_v50 = vmul.f32 -1.442695, %v3311_v62  ;;  %v3314_v21 = vadd.f32 %v3313_v61, %v3248_v53  ;;  %v4733_v20 = vpop.f32.mrb[35].mxu1 }
 0x3cc   : > { %5066 = vpow2.f32 %v4527_v50  ;;  %v4528_v48 = vmul.f32 -1.442695, %v3314_v21 }
 0x3ce   : > { %5068 = vpow2.f32 %v4528_v48 }
 0x3d6   : > { %v5067_v33 = vpop.eup %5066 }
 0x3d7   : > { %v3323_v8 = vadd.f32 1.0, %v5067_v33 }
 0x3d8   : > { %v5069_v63 = vpop.eup %5068 }
 0x3d9   : > { %5070 = vrcp.f32 %v3323_v8  ;;  %v3324_v17 = vadd.f32 1.0, %v5069_v63 }
 0x3db   : > { %5072 = vrcp.f32 %v3324_v17 }
 0x3e3   : > { %v5071_v47 = vpop.eup %5070 }
 0x3e4   : > { %v3329_v52 = vmul.f32 %v5071_v47, %v3311_v62 }
 0x3e5   : > { %v5073_v59 = vpop.eup %5072 }
 0x3e6   : > { %v3330_v9 = vmul.f32 %v5073_v59, %v3314_v21 }
 0x3e8   : > { %v3331_v19 = vpack.c.bf16 %v3330_v9, %v3329_v52 }
 0x3ea   : > { %4739 = vmatmul.mubr.msk.bf16.vlgmr.msra.gmra.mrb[36].mxu1 %vm584_vm3, %v3331_v19 }
 0x3eb   : > { %4763 = vmatpush3.bf16.msra.mxu1 %v4872_v22  ;;  %4766 = vmatprep.mubr.msk.bf16.mxu1 %vm5175_vm2, %v7862_v51 }
 0x3ec   : > { %4764 = vmatprep.subr.bf16.mxu1 %v7862_v51 }
 0x3ef   : > { %4765 = vmatpush3.bf16.msra.mxu1 %v4873_v41  ;;  %v7884_v41 = vld [vmem:[#allocation9_spill] sm:$0xff] }
 0x3f0   : > { %v3393_v38 = vrot.slane %v7384_v45, %v7884_v41 }
 0x404   : > { %v3946_v46 = vpop.f32.mrb[36].mxu0 }
 0x405   : > { %v3947_v13 = vadd.f32 %v3946_v46, %v3878_v3  ;;  %v4752_v58 = vpop.f32.mrb[37].mxu0 }
 0x406   : > { %v3949_v15 = vpop.f32.mrb[38].mxu0 }
 0x407   : > { %v4539_v44 = vmul.f32 -1.442695, %v3947_v13  ;;  %v3950_v29 = vadd.f32 %v3949_v15, %v3878_v3  ;;  %v4753_v31 = vpop.f32.mrb[39].mxu0 }
 0x408   : > { %v7885_v31 = vld [vmem:[#allocation11_spill] sm:$0xff] }
 0x409   : > { %5074 = vpow2.f32 %v4539_v44  ;;  %v4540_v27 = vmul.f32 -1.442695, %v3950_v29 }
 0x40b   : > { %5076 = vpow2.f32 %v4540_v27  ;;  %v4101_v27 = vrot.slane %v7384_v45, %v7885_v31 }
 0x40c   : > { %v3954_v18 = vpop.f32.mrb[40].mxu0 }
 0x40d   : > { %v3955_v4 = vadd.f32 %v3954_v18, %v3878_v3  ;;  %v4756_v10 = vpop.f32.mrb[41].mxu0 }
 0x40e   : > { %v3957_v54 = vpop.f32.mrb[42].mxu0 }
 0x40f   : > { %v4541_v12 = vmul.f32 -1.442695, %v3955_v4  ;;  %v3958_v26 = vadd.f32 %v3957_v54, %v3878_v3  ;;  %v4757_v37 = vpop.f32.mrb[43].mxu0 }
 0x411   : > { %5078 = vpow2.f32 %v4541_v12  ;;  %v4542_v11 = vmul.f32 -1.442695, %v3958_v26 }
 0x413   : > { %v5075_v36 = vpop.eup %5074  ;;  %5080 = vpow2.f32 %v4542_v11 }
 0x414   : > { %v3987_v49 = vadd.f32 1.0, %v5075_v36 }
 0x415   : > { %v5077_v24 = vpop.eup %5076  ;;  %v3962_v35 = vpop.f32.mrb[44].mxu0 }
 0x416   : > { %5082 = vrcp.f32 %v3987_v49  ;;  %v3988_v2 = vadd.f32 1.0, %v5077_v24  ;;  %v3963_v32 = vadd.f32 %v3962_v35, %v3878_v3  ;;  %v4760_v28 = vpop.f32.mrb[45].mxu0 }
 0x417   : > { %v3965_v23 = vpop.f32.mrb[46].mxu0 }
 0x418   : > { %5084 = vrcp.f32 %v3988_v2  ;;  %v4543_v1 = vmul.f32 -1.442695, %v3963_v32  ;;  %v3966_v56 = vadd.f32 %v3965_v23, %v3878_v3  ;;  %v4761_v5 = vpop.f32.mrb[47].mxu0 }
 0x419   : > { %v5179_v5 = vmov (!%p4550_p5), 0.0  }
 0x41a   : > { %5086 = vpow2.f32 %v4543_v1  ;;  %v4544_v55 = vmul.f32 -1.442695, %v3966_v56  ;;  %4778 = vmatprep.subr.bf16.mxu0 (!%p4550_p5), %v5179_v5  ;;  %4786 = vmatprep.subr.bf16.mxu1 (!%p4550_p5), %v5179_v5 }
 0x41b   : > { %v5079_v6 = vpop.eup %5078 }
 0x41c   : > { %v3989_v0 = vadd.f32 1.0, %v5079_v6  ;;  %5088 = vpow2.f32 %v4544_v55  ;;  %v5116_v55 = vld [vmem:[%s7489_s9] sm:$0xff] (!%p4550_p5)   ;;  %v5117_v6 = vld [vmem:[%s7489_s9 + $0x8] sm:$0xff] (!%p4550_p5)  }
 0x41d   : > { %v5081_v42 = vpop.eup %5080 }
 0x41e   : > { %5090 = vrcp.f32 %v3989_v0  ;;  %v3990_v25 = vadd.f32 1.0, %v5081_v42  ;;  %v4551_v0 = vld [vmem:[%s7488_s8] ss:$0 sm:$0xff] (!%p4550_p5) }
 0x420   : > { %v5083_v53 = vpop.eup %5082  ;;  %5092 = vrcp.f32 %v3990_v25 }
 0x421   : > { %v4005_v62 = vmul.f32 %v5083_v53, %v3947_v13 }
 0x422   : > { %v5085_v14 = vpop.eup %5084 }
 0x423   : > { %v4006_v39 = vmul.f32 %v5085_v14, %v3950_v29 }
 0x424   : > { %v5087_v61 = vpop.eup %5086 }
 0x425   : > { %v4011_v50 = vpack.c.bf16 %v4006_v39, %v4005_v62  ;;  %v3991_v21 = vadd.f32 1.0, %v5087_v61 }
 0x426   : > { %v5089_v20 = vpop.eup %5088 }
 0x427   : > { %5094 = vrcp.f32 %v3991_v21  ;;  %v3992_v48 = vadd.f32 1.0, %v5089_v20  ;;  %4767 = vmatmul.mubr.msk.bf16.vlgmr.msra.gmra.mrb[40].mxu1 %vm584_vm3, %v4011_v50 }
 0x428   : > { %v5091_v33 = vpop.eup %5090  ;;  %4770 = vmatprep.mubr.msk.bf16.mxu1 %vm5175_vm2, %v7862_v51  ;;  %4787 = vmatpush3.bf16.msra.mxu1 (!%p4550_p5), %v5116_v55 }
 0x429   : > { %5096 = vrcp.f32 %v3992_v48  ;;  %v4007_v63 = vmul.f32 %v5091_v33, %v3955_v4  ;;  %4788 = vmatprep.subr.bf16.mxu1 (!%p4550_p5), %v5179_v5 }
 0x42a   : > { %v5093_v8 = vpop.eup %5092 }
 0x42b   : > { %v4008_v17 = vmul.f32 %v5093_v8, %v3958_v26 }
 0x42c   : > { %4789 = vmatpush3.bf16.msra.mxu1 (!%p4550_p5), %v5117_v6 }
 0x42d   : > { %v4012_v47 = vpack.c.bf16 %v4008_v17, %v4007_v63 }
 0x42f   : > { %4771 = vmatmul.mubr.msk.bf16.gmra.mrb[44].mxu1 %vm584_vm3, %v4012_v47 }
 0x430   : > { %4774 = vmatprep.mubr.msk.bf16.mxu1 %vm5175_vm2, %v7862_v51  ;;  %vm5180_vm2 = vmmov (!%p4550_p5), 0  }
 0x431   : > { %v5095_v59 = vpop.eup %5094  ;;  %4782 = vmatprep.mubr.msk.bf16.mxu0 (!%p4550_p5), %vm5180_vm2, %v5179_v5 }
 0x432   : > { %v4009_v9 = vmul.f32 %v5095_v59, %v3963_v32 }
 0x433   : > { %v5097_v52 = vpop.eup %5096 }
 0x434   : > { %v4010_v22 = vmul.f32 %v5097_v52, %v3966_v56  ;;  %v5118_v52 = vld [vmem:[%s7491_s11] sm:$0xff] (!%p4550_p5)  }
 0x436   : > { %v4013_v19 = vpack.c.bf16 %v4010_v22, %v4009_v9  ;;  %v5119_v9 = vld [vmem:[%s7491_s11 + $0x8] sm:$0xff] (!%p4550_p5)   ;;  %v4557_v22 = vld [vmem:[%s7490_s10] ss:$0 sm:$0xff] (!%p4550_p5) }
 0x438   : > { %4775 = vmatmul.mubr.msk.bf16.gmra.mrb[48].mxu1 %vm584_vm3, %v4013_v19 }
 0x439   : > { %4790 = vmatprep.mubr.msk.bf16.mxu1 (!%p4550_p5), %vm5180_vm2, %v5179_v5 }
 0x4bd   : > { %v3381_v3 = vpop.f32.mrb[36].mxu1 }
 0x4be   : > { %v3388_v46 = vadd.f32 %v7299_v30, %v3381_v3  ;;  %v4740_v13 = vpop.f32.mrb[37].mxu1 }
 0x4bf   : > { %v3384_v58 = vpop.f32.mrb[38].mxu1 }
 0x4c0   : > { %v3394_v15 = vadd.f32 %v3393_v38, %v3388_v46  ;;  %v3389_v44 = vadd.f32 %v7295_v16, %v3384_v58  ;;  %v4741_v29 = vpop.f32.mrb[39].mxu1 }
 0x4c2   : > { %4108 = vst.msk [vmem:[#allocation2] sm:$0xff] %vm584_vm3, %v3394_v15  ;;  %v3395_v51 = vadd.f32 %v3393_v38, %v3389_v44 }
 0x4c4   : > { %4109 = vst.msk [vmem:[#allocation2 + $0x8] sm:$0xff] %vm584_vm3, %v3395_v51 }
 0x4fa   : > { %v4069_v18 = vpop.f32.mrb[40].mxu1 }
 0x4fb   : > { %v4092_v4 = vadd.f32 %v7147_v57, %v4069_v18  ;;  %v4768_v10 = vpop.f32.mrb[41].mxu1 }
 0x4fc   : > { %v4072_v54 = vpop.f32.mrb[42].mxu1 }
 0x4fd   : > { %v4102_v30 = vadd.f32 %v4101_v27, %v4092_v4  ;;  %v4093_v12 = vadd.f32 %v7157_v43, %v4072_v54  ;;  %v4769_v26 = vpop.f32.mrb[43].mxu1 }
 0x4ff   : > { %4110 = vst.msk [vmem:[#allocation3] sm:$0xff] %vm584_vm3, %v4102_v30  ;;  %v4103_v16 = vadd.f32 %v4101_v27, %v4093_v12  ;;  %v4563_v30 = vld [vmem:[%s7492_s12] ss:$0 sm:$0xff] (!%p4550_p5) }
 0x501   : > { %4111 = vst.msk [vmem:[#allocation3 + $0x8] sm:$0xff] %vm584_vm3, %v4103_v16 }
 0x502   : > { %v4077_v37 = vpop.f32.mrb[44].mxu1 }
 0x503   : > { %v4094_v11 = vadd.f32 %v7175_v7, %v4077_v37  ;;  %v4772_v36 = vpop.f32.mrb[45].mxu1 }
 0x504   : > { %v4080_v49 = vpop.f32.mrb[46].mxu1 }
 0x505   : > { %v4104_v45 = vadd.f32 %v4101_v27, %v4094_v11  ;;  %v4095_v24 = vadd.f32 %v7192_v40, %v4080_v49  ;;  %v4773_v57 = vpop.f32.mrb[47].mxu1  ;;  %v5114_v40 = vld [vmem:[%s7487_s7] sm:$0xff] (!%p4550_p5)  }
 0x506   : > { %4779 = vmatpush3.bf16.msra.mxu0 (!%p4550_p5), %v5114_v40 }
 0x507   : > { %4112 = vst.msk [vmem:[#allocation3 + $0x10] sm:$0xff] %vm584_vm3, %v4104_v45  ;;  %v4105_v35 = vadd.f32 %v4101_v27, %v4095_v24  ;;  %4780 = vmatprep.subr.bf16.mxu0 (!%p4550_p5), %v5179_v5 }
 0x509   : > { %4113 = vst.msk [vmem:[#allocation3 + $0x18] sm:$0xff] %vm584_vm3, %v4105_v35 }
 0x50b   : > { %v4085_v43 = vpop.f32.mrb[48].mxu1 }
 0x50c   : > { %v4096_v2 = vadd.f32 %v7209_v60, %v4085_v43  ;;  %v4776_v32 = vpop.f32.mrb[49].mxu1  ;;  %4119 = sbr.rel (%p4550_p5) target bundleno = 2005 (0x7d5), region = 80  ;;  %v5115_v60 = vld [vmem:[%s7487_s7 + $0x8] sm:$0xff] (!%p4550_p5)  }
 0x50d   : > { %v4088_v28 = vpop.f32.mrb[50].mxu1  ;;  %4781 = vmatpush3.bf16.msra.mxu0 (!%p4550_p5), %v5115_v60 }
 0x50e   : > { %v4106_v23 = vadd.f32 %v4101_v27, %v4096_v2  ;;  %v4097_v1 = vadd.f32 %v7224_v34, %v4088_v28  ;;  %v4777_v7 = vpop.f32.mrb[51].mxu1  ;;  %v4120_v34 = vpack.c.bf16 (!%p4550_p5), %v3395_v51, %v3394_v15  ;;  %4794 = vmatprep.subr.bf16.mxu0 (!%p4550_p5), %v5179_v5 }
 0x510   : > { %4114 = vst.msk [vmem:[#allocation3 + $0x20] sm:$0xff] %vm584_vm3, %v4106_v23  ;;  %v4107_v56 = vadd.f32 %v4101_v27, %v4097_v1  ;;  %4783 = vmatmul.mubr.msk.bf16.vlgmr.msra.gmra.mrb[0].mxu0 (!%p4550_p5), %vm584_vm3, %v4120_v34 }
 0x511   : > { %4798 = vmatprep.mubr.msk.bf16.mxu0 (!%p4550_p5), %vm5180_vm2, %v5179_v5  ;;  %4795 = vmatpush3.bf16.msra.mxu0 (!%p4550_p5), %v5118_v52 }
 0x512   : > { %4115 = vst.msk [vmem:[#allocation3 + $0x28] sm:$0xff] %vm584_vm3, %v4107_v56  ;;  %4796 = vmatprep.subr.bf16.mxu0 (!%p4550_p5), %v5179_v5 }
 0x515   : > { %4797 = vmatpush3.bf16.msra.mxu0 %v5119_v9 }
 0x5e3   : > { %v4181_v42 = vpop.f32.mrb[0].mxu0 }
 0x5e4   : > { %v4182_v25 = vadd.f32 %v4551_v0, %v4181_v42  ;;  %v4784_v53 = vpop.f32.mrb[1].mxu0 }
 0x5e5   : > { %v4184_v14 = vpop.f32.mrb[2].mxu0 }
 0x5e6   : > { %v4555_v62 = vmul.f32 -1.442695, %v4182_v25  ;;  %v4185_v39 = vadd.f32 %v4551_v0, %v4184_v14  ;;  %v4785_v61 = vpop.f32.mrb[3].mxu0 }
 0x5e8   : > { %5120 = vpow2.f32 %v4555_v62  ;;  %v4556_v50 = vmul.f32 -1.442695, %v4185_v39 }
 0x5ea   : > { %5122 = vpow2.f32 %v4556_v50 }
 0x5f2   : > { %v5121_v21 = vpop.eup %5120 }
 0x5f3   : > { %v4194_v20 = vadd.f32 1.0, %v5121_v21 }
 0x5f4   : > { %v5123_v48 = vpop.eup %5122 }
 0x5f5   : > { %5124 = vrcp.f32 %v4194_v20  ;;  %v4195_v33 = vadd.f32 1.0, %v5123_v48 }
 0x5f7   : > { %5126 = vrcp.f32 %v4195_v33 }
 0x5ff   : > { %v5125_v8 = vpop.eup %5124 }
 0x600   : > { %v4200_v17 = vmul.f32 %v5125_v8, %v4182_v25 }
 0x601   : > { %v5127_v63 = vpop.eup %5126 }
 0x602   : > { %v4201_v47 = vmul.f32 %v5127_v63, %v4185_v39 }
 0x604   : > { %v4202_v59 = vpack.c.bf16 %v4201_v47, %v4200_v17 }
 0x606   : > { %4791 = vmatmul.mubr.msk.bf16.vlgmr.msra.gmra.mrb[0].mxu1 %vm584_vm3, %v4202_v59 }
 0x6d9   : > { %v4263_v19 = vpop.f32.mrb[0].mxu1 }
 0x6da   : > { %v4264_v41 = vadd.f32 %v4557_v22, %v4263_v19  ;;  %v4792_v38 = vpop.f32.mrb[1].mxu1 }
 0x6db   : > { %v4266_v3 = vpop.f32.mrb[2].mxu1 }
 0x6dc   : > { %v4561_v46 = vmul.f32 -1.442695, %v4264_v41  ;;  %v4267_v13 = vadd.f32 %v4557_v22, %v4266_v3  ;;  %v4793_v58 = vpop.f32.mrb[3].mxu1 }
 0x6de   : > { %5128 = vpow2.f32 %v4561_v46  ;;  %v4562_v15 = vmul.f32 -1.442695, %v4267_v13 }
 0x6e0   : > { %5130 = vpow2.f32 %v4562_v15 }
 0x6e8   : > { %v5129_v44 = vpop.eup %5128 }
 0x6e9   : > { %v4276_v29 = vadd.f32 1.0, %v5129_v44 }
 0x6ea   : > { %v5131_v51 = vpop.eup %5130 }
 0x6eb   : > { %5132 = vrcp.f32 %v4276_v29  ;;  %v4277_v31 = vadd.f32 1.0, %v5131_v51 }
 0x6ed   : > { %5134 = vrcp.f32 %v4277_v31 }
 0x6f5   : > { %v5133_v27 = vpop.eup %5132 }
 0x6f6   : > { %v4282_v4 = vmul.f32 %v5133_v27, %v4264_v41 }
 0x6f7   : > { %v5135_v18 = vpop.eup %5134 }
 0x6f8   : > { %v4283_v10 = vmul.f32 %v5135_v18, %v4267_v13 }
 0x6fa   : > { %v4284_v54 = vpack.c.bf16 %v4283_v10, %v4282_v4 }
 0x6fc   : > { %4799 = vmatmul.mubr.msk.bf16.vlgmr.msra.gmra.mrb[4].mxu0 %vm584_vm3, %v4284_v54 }
 0x7cf   : > { %v4345_v12 = vpop.f32.mrb[4].mxu0 }
 0x7d0   : > { %v4346_v26 = vadd.f32 %v4563_v30, %v4345_v12  ;;  %v4800_v16 = vpop.f32.mrb[5].mxu0 }
 0x7d1   : > { %v4348_v37 = vpop.f32.mrb[6].mxu0 }
 0x7d2   : > { %4352 = vst [vmem:[#allocation4] sm:$0xff] %v4346_v26  ;;  %v4349_v11 = vadd.f32 %v4563_v30, %v4348_v37  ;;  %v4801_v36 = vpop.f32.mrb[7].mxu0 }
 0x7d4   : > { %4353 = vst [vmem:[#allocation4 + $0x8] sm:$0xff] %v4349_v11 }
 0x7d5 PF: > { %p4808_p6 = scmp.eq.s32.totalorder %s5260_s26, 1  ;;  %s5181_s30 = smov [#allocation4]  }
 0x7d6   : > { %s4360_s15 = sshll.u32 %s5181_s30, 4  ;;  %s4361_s15 = int_to_ptr.vmem [resolvable:$true] %s4360_s15 }
 0x7d7   : > { %s5136_s17 = scalar_lea.vmem %s4361_s15, 256  ;;  %p5143_p10 = scmp.lt.s32.totalorder %s4361_s15, %s4361_s15 }
 0x7d8   : > { %p5137_p7 = scmp.ne.s32.totalorder %s4361_s15, %s5136_s17  ;;  %p5144_p11 = scmp.lt.s32.totalorder %s5136_s17, %s5136_s17 }
 0x7da   : > { %p5138_p8 = pnand %p5137_p7, %p4808_p6  ;;  %p5145_p12 = por %p5144_p11, %p5143_p10 }
 0x7dc   : > { %p5139_p9 = pneg %p5138_p8 }
 0x7de   : > { %p5146_p13 = pnand %p5145_p12, %p5139_p9 }
 0x7e0   : > { %5149 = shalt.err (!%p5146_p13)
}
 0x7e1   : > { %s5150_s21 = scalar_lea.hbm %s7493_s13, 256 }
 0x7e2   : > { %p5151_p0 = scmp.ne.s32.totalorder %s7493_s13, %s5150_s21  ;;  %p5156_p3 = scmp.lt.u32.totalorder %s5150_s21, %s7493_s13 }
 0x7e4   : > { %p5152_p1 = pnand %p5151_p0, %p4808_p6 }
 0x7e6   : > { %p5153_p2 = pneg %p5152_p1 }
 0x7e8   : > { %p5158_p4 = pnand %p5156_p3, %p5153_p2 }
 0x7ea   : > { %5161 = shalt.err (!%p5158_p4)
}
 0x7eb   : > { %s5182_s19 = smov 128   ;;  %s5183_s14 = smov 8  }
 0x7ec   : > { %4805 = dma.vmem_to_hbm [thread:$0]  (%p4808_p6), %s4361_s15, 256, %s7493_s13, [#allocation5], %s5182_s19, %s5182_s19, %s5183_s14  }
 0x7ed   : > { %5167 = dma.done.wait (%p4808_p6), [#allocation5], 256  }
 0x7ee   : > { %5169 = vsyncadd (%p4808_p6), [#allocation5], 4294967040 }
 0x7ef PF: > { %s24_s25 = sadd.s32 1, %s5172_s25  }
 0x7f0   : > { %p21_p5 = scmp.ge.s32.totalorder %s24_s25, 4  }
 0x7f2   :  { %23 = sbr.rel (!%p21_p5) target bundleno = 1 (0x1), region = 113 }
 0x7f9   :  { %4376 = vsyncpa [#allocation5], 1 }
 0x7fa   :  { %4378 = vsyncpa [#allocation5 + $0x1], 1 }

</bundles_post_ra>
